<compile_context>
chip_gen: v7x
topology: tpu7x:2x2x1
jax: 0.10.0
libtpu: 0.0.40
codegen_flags: <defaults>
</compile_context>

<pallas_src>
import jax
import jax.numpy as jnp
from jax.experimental import pallas as pl
from jax.experimental.pallas import tpu as pltpu

HIDDEN = 1024
FC3_PAD = 128   # lane-dense fc3 output width; only column 0 is the real logit


def da_ins_head_kernel(x_ref, w1_ref, b1_ref, w2_hbm, b2_ref, w3_ref, b3_ref,
                       o_ref, w2_vmem, w2_sem):
    # Start the W2 HBM->VMEM DMA on the first grid step so it overlaps with the
    # fc1 matmul.  The VMEM scratch persists across grid steps, so later steps
    # simply reuse the resident copy (grid axis is "arbitrary" => sequential).
    @pl.when(pl.program_id(0) == 0)
    def _():
        pltpu.make_async_copy(w2_hbm, w2_vmem, w2_sem).start()

    # fc1 + bias + relu  (bf16 operands, f32 MXU accumulation)
    h = jnp.dot(x_ref[...], w1_ref[...], preferred_element_type=jnp.float32)
    h = jnp.maximum(h + b1_ref[...], 0.0).astype(jnp.bfloat16)
    # (dropout: identity in eval mode)

    # Wait for W2 only now, just before it is needed.
    @pl.when(pl.program_id(0) == 0)
    def _():
        pltpu.make_async_copy(w2_hbm, w2_vmem, w2_sem).wait()

    # fc2 + bias + relu  (bf16 operands, f32 MXU accumulation)
    h = jnp.dot(h, w2_vmem[...], preferred_element_type=jnp.float32)
    h = jnp.maximum(h + b2_ref[...], 0.0).astype(jnp.bfloat16)
    # (dropout: identity in eval mode)

    # fc3 on the MXU against a zero-padded [HIDDEN, 128] weight: the output
    # block is lane-dense (full 128-lane stores).  b3 is an SMEM scalar.
    out = jnp.dot(h, w3_ref[...], preferred_element_type=jnp.float32)
    o_ref[...] = (out + b3_ref[0]).astype(o_ref.dtype)


def _round_up(x, m):
    return (x + m - 1) // m * m


def _pick_tile_m(n):
    """Single block for small batches; 512-row tiles (multiple of 256) else."""
    if n <= 512:
        return _round_up(n, 16)   # bf16 packs 16 sublanes per vreg
    return 512


def da_ins_head(x, params, *, tile_m=None):
    """x: [N, C] float32/bfloat16.  Returns [N, 1] float32 (domain logits)."""
    w1, b1, w2, b2, w3_pad, b3 = params
    N, C = x.shape
    Cp = w1.shape[0]                      # in_channels padded to mult of 128
    assert C <= Cp and Cp % 128 == 0

    if tile_m is None:
        tile_m = _pick_tile_m(N)
    num_tiles = pl.cdiv(N, tile_m)
    Np = num_tiles * tile_m

    # Zero-pad batch to the tile grid and K to a multiple of 128 (zero K
    # columns contribute nothing to the fc1 dot).
    xp = jnp.pad(x.astype(jnp.bfloat16), ((0, Np - N), (0, Cp - C)))

    # Constant-index_map operands: single-buffer (no need to double-buffer
    # weights that never change across grid steps).
    const = dict(pipeline_mode=pl.Buffered(1))

    cost = pl.CostEstimate(
        flops=2 * Np * (Cp * HIDDEN + HIDDEN * HIDDEN + HIDDEN * FC3_PAD),
        transcendentals=0,
        bytes_accessed=(int(xp.size) * 2
                        + sum(int(p.size) * p.dtype.itemsize for p in params)
                        + Np * FC3_PAD * 4),
    )

    out = pl.pallas_call(
        da_ins_head_kernel,
        out_shape=jax.ShapeDtypeStruct((Np, FC3_PAD), jnp.float32),
        grid_spec=pltpu.PrefetchScalarGridSpec(
            num_scalar_prefetch=0,
            grid=(num_tiles,),
            in_specs=[
                pl.BlockSpec((tile_m, Cp), lambda i: (i, 0)),                # x tile
                pl.BlockSpec((Cp, HIDDEN), lambda i: (0, 0), **const),       # W1 (bf16)
                pl.BlockSpec((1, HIDDEN), lambda i: (0, 0), **const),        # b1 (f32)
                pl.BlockSpec(memory_space=pl.ANY),                           # W2 (HBM, manual DMA)
                pl.BlockSpec((1, HIDDEN), lambda i: (0, 0), **const),        # b2 (f32)
                pl.BlockSpec((HIDDEN, FC3_PAD), lambda i: (0, 0), **const),  # W3 padded (bf16)
                pl.BlockSpec(memory_space=pltpu.MemorySpace.SMEM),           # b3 scalar (f32)
            ],
            out_specs=pl.BlockSpec((tile_m, FC3_PAD), lambda i: (i, 0)),
            scratch_shapes=[
                pltpu.VMEM((HIDDEN, HIDDEN), jnp.bfloat16),  # resident W2 copy
                pltpu.SemaphoreType.DMA,                     # W2 DMA semaphore
            ],
        ),
        compiler_params=pltpu.CompilerParams(
            # "arbitrary": step 0 (which loads W2 into scratch) must run first;
            # also avoids duplicating the 2 MiB W2 DMA across both v7x cores
            # for typical small instance-head batches.
            dimension_semantics=("arbitrary",),
        ),
        cost_estimate=cost,
    )(xp, w1, b1, w2, b2, w3_pad, b3)

    return out[:N, :1]


def init_params(key, in_channels):
    """Deterministic init mirroring DAInsHead.__init__ (normal std / zero bias).

    Weights are stored [in, out] (transposed vs. PyTorch) in bf16.  W1 is
    zero-padded along the input dim to a multiple of 128; W3 is stored as a
    zero-padded [HIDDEN, 128] block whose column 0 holds the real fc3 weight.
    Any checkpoint-loading path must transpose/pad PyTorch's weights the same
    way.  Biases stay f32; b3 is a (1,) scalar placed in SMEM."""
    k1, k2, k3 = jax.random.split(key, 3)
    c_pad = _round_up(in_channels, 128)

    w1_core = (0.01 * jax.random.normal(k1, (in_channels, HIDDEN), jnp.float32)
               ).astype(jnp.bfloat16)
    w1 = jnp.zeros((c_pad, HIDDEN), jnp.bfloat16).at[:in_channels, :].set(w1_core)
    b1 = jnp.zeros((1, HIDDEN), jnp.float32)

    w2 = (0.01 * jax.random.normal(k2, (HIDDEN, HIDDEN), jnp.float32)
          ).astype(jnp.bfloat16)
    b2 = jnp.zeros((1, HIDDEN), jnp.float32)

    w3_core = (0.05 * jax.random.normal(k3, (HIDDEN,), jnp.float32)
               ).astype(jnp.bfloat16)
    w3_pad = jnp.zeros((HIDDEN, FC3_PAD), jnp.bfloat16).at[:, 0].set(w3_core)
    b3 = jnp.zeros((1,), jnp.float32)
    return (w1, b1, w2, b2, w3_pad, b3)


def da_ins_head_ref(x, params):
    """Pure-JAX reference (f32 math on the same bf16 weights)."""
    w1, b1, w2, b2, w3_pad, b3 = params
    C = x.shape[1]
    w1f = w1[:C, :].astype(jnp.float32)
    w2f = w2.astype(jnp.float32)
    w3f = w3_pad[:, :1].astype(jnp.float32)   # [HIDDEN, 1]
    h = jnp.maximum(x @ w1f + b1, 0.0)
    h = jnp.maximum(h @ w2f + b2, 0.0)
    return h @ w3f + b3[0]


if __name__ == "__main__":
    key = jax.random.PRNGKey(0)
    k_x, k_p, k_x2 = jax.random.split(key, 3)

    N, C = 128, 32                       # small synthetic ROI-feature batch
    x = jax.random.normal(k_x, (N, C), jnp.float32)
    params = init_params(k_p, C)

    # Single-tile path.
    out = jax.block_until_ready(da_ins_head(x, params))
    ref = da_ins_head_ref(x, params)
    assert out.shape == (N, 1), out.shape
    # bf16 operands/intermediates -> loosened tolerance vs f32 reference
    assert jnp.allclose(out, ref, atol=1e-2, rtol=2e-2), "mismatch vs reference"

    # Multi-tile path (grid > 1: W2 scratch is loaded once and reused).
    N2 = 80
    x2 = jax.random.normal(k_x2, (N2, C), jnp.float32)
    out2 = jax.block_until_ready(da_ins_head(x2, params, tile_m=32))
    ref2 = da_ins_head_ref(x2, params)
    assert out2.shape == (N2, 1), out2.shape
    assert jnp.allclose(out2, ref2, atol=1e-2, rtol=2e-2), "mismatch (multi-tile)"

    print("KERNEL_OK")
</pallas_src>

<mosaic_0001>
module attributes {stable_mosaic.version = 11 : i64} {
  func.func @da_ins_head_kernel(%arg0: i32, %arg1: memref<128x128xbf16, #tpu.memory_space<vmem>>, %arg2: memref<128x1024xbf16, #tpu.memory_space<vmem>>, %arg3: memref<1x1024xf32, #tpu.memory_space<vmem>>, %arg4: memref<1024x1024xbf16, #tpu.memory_space<any>>, %arg5: memref<1x1024xf32, #tpu.memory_space<vmem>>, %arg6: memref<1024x128xbf16, #tpu.memory_space<vmem>>, %arg7: memref<1xf32, #tpu.memory_space<smem>>, %arg8: memref<128x128xf32, #tpu.memory_space<vmem>>, %arg9: memref<1024x1024xbf16, #tpu.memory_space<vmem>>, %arg10: memref<!tpu.dma_semaphore, #tpu.memory_space<semaphore_mem>>) attributes {dimension_semantics = [#tpu.dimension_semantics<arbitrary>], iteration_bounds = array<i64: 1>, scalar_prefetch = 0 : i64, scratch_operands = 2 : i64, tpu.core_type = #tpu.core_type<tc>, window_params = [{transform_indices = @transform_0, window_bounds = array<i64: 128, 128>}, {pipeline_mode = #tpu.pipeline_mode<synchronous>, transform_indices = @transform_1, window_bounds = array<i64: 128, 1024>}, {pipeline_mode = #tpu.pipeline_mode<synchronous>, transform_indices = @transform_2, window_bounds = array<i64: 1, 1024>}, {}, {pipeline_mode = #tpu.pipeline_mode<synchronous>, transform_indices = @transform_4, window_bounds = array<i64: 1, 1024>}, {pipeline_mode = #tpu.pipeline_mode<synchronous>, transform_indices = @transform_5, window_bounds = array<i64: 1024, 128>}, {transform_indices = @transform_6, window_bounds = array<i64: 1>}, {transform_indices = @transform_7, window_bounds = array<i64: 128, 128>}]} {
    %c0_i32 = arith.constant 0 : i32
    %0 = arith.cmpi eq, %arg0, %c0_i32 : i32
    %1 = arith.extui %0 : i1 to i32
    %c0_i32_0 = arith.constant 0 : i32
    %2 = arith.cmpi ne, %1, %c0_i32_0 : i32
    scf.if %2 {
      tpu.enqueue_dma source(%arg4 : memref<1024x1024xbf16, #tpu.memory_space<any>>) target(%arg9 : memref<1024x1024xbf16, #tpu.memory_space<vmem>>) target_semaphore(%arg10 : memref<!tpu.dma_semaphore, #tpu.memory_space<semaphore_mem>>)
    } else {
    }
    %c0 = arith.constant 0 : index
    %c0_1 = arith.constant 0 : index
    %3 = vector.load %arg1[%c0, %c0_1] : memref<128x128xbf16, #tpu.memory_space<vmem>>, vector<128x128xbf16>
    %c0_2 = arith.constant 0 : index
    %c0_3 = arith.constant 0 : index
    %4 = vector.load %arg2[%c0_2, %c0_3] : memref<128x1024xbf16, #tpu.memory_space<vmem>>, vector<128x1024xbf16>
    %cst = arith.constant dense<0.000000e+00> : vector<128x1024xf32>
    %5 = tpu.matmul %3, %4, %cst {dimension_numbers = #tpu.dot_dimension_numbers<[1], [0], [0], [1], [0, 0, 1, 1], [], []>} : vector<128x128xbf16>, vector<128x1024xbf16>, vector<128x1024xf32> -> vector<128x1024xf32>
    %c0_4 = arith.constant 0 : index
    %c0_5 = arith.constant 0 : index
    %6 = vector.load %arg3[%c0_4, %c0_5] : memref<1x1024xf32, #tpu.memory_space<vmem>>, vector<1x1024xf32>
    %7 = vector.broadcast %6 : vector<1x1024xf32> to vector<128x1024xf32>
    %8 = arith.addf %5, %7 : vector<128x1024xf32>
    %cst_6 = arith.constant 0.000000e+00 : f32
    %9 = vector.broadcast %cst_6 : f32 to vector<128x1024xf32>
    %10 = arith.maximumf %8, %9 : vector<128x1024xf32>
    %11 = arith.truncf %10 : vector<128x1024xf32> to vector<128x1024xbf16>
    %c0_i32_7 = arith.constant 0 : i32
    %12 = arith.cmpi eq, %arg0, %c0_i32_7 : i32
    %13 = arith.extui %12 : i1 to i32
    %c0_i32_8 = arith.constant 0 : i32
    %14 = arith.cmpi ne, %13, %c0_i32_8 : i32
    scf.if %14 {
      tpu.wait_dma2 semaphore(%arg10 : memref<!tpu.dma_semaphore, #tpu.memory_space<semaphore_mem>>) src(%arg4 : memref<1024x1024xbf16, #tpu.memory_space<any>>) dst(%arg9 : memref<1024x1024xbf16, #tpu.memory_space<vmem>>)
    } else {
    }
    %c0_9 = arith.constant 0 : index
    %c0_10 = arith.constant 0 : index
    %15 = vector.load %arg9[%c0_9, %c0_10] : memref<1024x1024xbf16, #tpu.memory_space<vmem>>, vector<1024x1024xbf16>
    %cst_11 = arith.constant dense<0.000000e+00> : vector<128x1024xf32>
    %16 = tpu.matmul %11, %15, %cst_11 {dimension_numbers = #tpu.dot_dimension_numbers<[1], [0], [0], [1], [0, 0, 1, 1], [], []>} : vector<128x1024xbf16>, vector<1024x1024xbf16>, vector<128x1024xf32> -> vector<128x1024xf32>
    %c0_12 = arith.constant 0 : index
    %c0_13 = arith.constant 0 : index
    %17 = vector.load %arg5[%c0_12, %c0_13] : memref<1x1024xf32, #tpu.memory_space<vmem>>, vector<1x1024xf32>
    %18 = vector.broadcast %17 : vector<1x1024xf32> to vector<128x1024xf32>
    %19 = arith.addf %16, %18 : vector<128x1024xf32>
    %cst_14 = arith.constant 0.000000e+00 : f32
    %20 = vector.broadcast %cst_14 : f32 to vector<128x1024xf32>
    %21 = arith.maximumf %19, %20 : vector<128x1024xf32>
    %22 = arith.truncf %21 : vector<128x1024xf32> to vector<128x1024xbf16>
    %c0_15 = arith.constant 0 : index
    %c0_16 = arith.constant 0 : index
    %23 = vector.load %arg6[%c0_15, %c0_16] : memref<1024x128xbf16, #tpu.memory_space<vmem>>, vector<1024x128xbf16>
    %cst_17 = arith.constant dense<0.000000e+00> : vector<128x128xf32>
    %24 = tpu.matmul %22, %23, %cst_17 {dimension_numbers = #tpu.dot_dimension_numbers<[1], [0], [0], [1], [0, 0, 1, 1], [], []>} : vector<128x1024xbf16>, vector<1024x128xbf16>, vector<128x128xf32> -> vector<128x128xf32>
    %c0_18 = arith.constant 0 : index
    %25 = memref.load %arg7[%c0_18] : memref<1xf32, #tpu.memory_space<smem>>
    %26 = vector.broadcast %25 : f32 to vector<128x128xf32>
    %27 = arith.addf %24, %26 : vector<128x128xf32>
    %c0_19 = arith.constant 0 : index
    %c0_20 = arith.constant 0 : index
    %28 = vector.load %arg8[%c0_19, %c0_20] : memref<128x128xf32, #tpu.memory_space<vmem>>, vector<128x128xf32>
    tpu.vector_store %arg8[%c0_19, %c0_20], %27 {strides = array<i32>} : memref<128x128xf32, #tpu.memory_space<vmem>>, vector<128x128xf32>,
    return
  }
  func.func @transform_0(%arg0: i32) -> (i32, i32) {
    %c0_i32 = arith.constant 0 : i32
    %c0_i32_0 = arith.constant 0 : i32
    return %arg0, %c0_i32 : i32, i32
  }
  func.func @transform_1(%arg0: i32) -> (i32, i32) {
    %c0_i32 = arith.constant 0 : i32
    %c0_i32_0 = arith.constant 0 : i32
    %c0_i32_1 = arith.constant 0 : i32
    return %c0_i32, %c0_i32_0 : i32, i32
  }
  func.func @transform_2(%arg0: i32) -> (i32, i32) {
    %c0_i32 = arith.constant 0 : i32
    %c0_i32_0 = arith.constant 0 : i32
    %c0_i32_1 = arith.constant 0 : i32
    return %c0_i32, %c0_i32_0 : i32, i32
  }
  func.func @transform_4(%arg0: i32) -> (i32, i32) {
    %c0_i32 = arith.constant 0 : i32
    %c0_i32_0 = arith.constant 0 : i32
    %c0_i32_1 = arith.constant 0 : i32
    return %c0_i32, %c0_i32_0 : i32, i32
  }
  func.func @transform_5(%arg0: i32) -> (i32, i32) {
    %c0_i32 = arith.constant 0 : i32
    %c0_i32_0 = arith.constant 0 : i32
    %c0_i32_1 = arith.constant 0 : i32
    return %c0_i32, %c0_i32_0 : i32, i32
  }
  func.func @transform_6(%arg0: i32) -> i32 {
    %c0_i32 = arith.constant 0 : i32
    %c0_i32_0 = arith.constant 0 : i32
    return %c0_i32 : i32
  }
  func.func @transform_7(%arg0: i32) -> (i32, i32) {
    %c0_i32 = arith.constant 0 : i32
    %c0_i32_0 = arith.constant 0 : i32
    return %arg0, %c0_i32 : i32, i32
  }
}

</mosaic_0001>

<bundles_post_ra>
// kernel: tpu_custom_call.1
= control target key start
LH: loop header
LB: loop body
LE: loop exit
PB: predicated region body
PF: predicated region fallthrough
CT: control target
= control target key end

     0   :  { %13 = vsyncpa [#allocation6], 0  ;;  %s6996_s0 = inlined_call_operand.hbm [shape: bf16[128,128], index: 0, kind: input, shape index: {}]   ;;  %s6997_s1 = inlined_call_operand.hbm [shape: bf16[128,1024], index: 1, kind: input, shape index: {}]   ;;  %s6998_s2 = inlined_call_operand.hbm [shape: f32[1,1024], index: 2, kind: input, shape index: {}]   ;;  %s6999_s3 = inlined_call_operand.hbm [shape: bf16[1024,1024], index: 3, kind: input, shape index: {}]   ;;  %s7000_s4 = inlined_call_operand.hbm [shape: f32[1,1024], index: 4, kind: input, shape index: {}]   ;;  %s7001_s5 = inlined_call_operand.hbm [shape: bf16[1024,128], index: 5, kind: input, shape index: {}]   ;;  %s7002_s6 = inlined_call_operand.<no memory space> [shape: f32[1], index: 6, kind: input, shape index: {}]   ;;  %s7003_s7 = inlined_call_operand.hbm [shape: f32[128,128], index: 7, kind: output, shape index: {}]  }
   0x1   :  { %14 = vsyncpa [#allocation9], 0 }
   0x2   :  { %15 = vsyncpa [#allocation12], 0 }
   0x3   :  { %16 = vsyncpa [#allocation7], 0  ;;  %s5913_s24 = smov [#allocation8]   ;;  %s5771_s28 = scalar_lea.hbm %s6997_s1, 8192 }
   0x4   :  { %s34_s25 = sshll.u32 %s5913_s24, 4  ;;  %p5772_p0 = scmp.ne.s32.totalorder %s6997_s1, %s5771_s28  ;;  %s35_s25 = int_to_ptr.vmem [resolvable:$true] %s34_s25 }
   0x5   :  { %p5775_p1 = scmp.lt.u32.totalorder %s5771_s28, %s6997_s1 }
   0x7   :  { %p5777_p2 = pnand %p5775_p1, %p5772_p0 }
   0x9   :  { %5780 = shalt.err (!%p5777_p2)
}
   0xa   :  { %s5781_s10 = scalar_lea.vmem %s35_s25, 8192  ;;  %p5786_p4 = scmp.lt.s32.totalorder %s35_s25, %s35_s25 }
   0xb   :  { %p5782_p3 = scmp.ne.s32.totalorder %s35_s25, %s5781_s10  ;;  %p5787_p5 = scmp.lt.s32.totalorder %s5781_s10, %s5781_s10 }
   0xd   :  { %p5788_p6 = por %p5787_p5, %p5786_p4 }
   0xf   :  { %p5789_p7 = pnand %p5788_p6, %p5782_p3 }
  0x11   :  { %5792 = shalt.err (!%p5789_p7)
}
  0x12   :  { %s5914_s11 = smov 512   ;;  %s5915_s12 = smov 32  }
  0x13   :  { %40 = dma.hbm_to_vmem [thread:$0]  %s6997_s1, 8192, %s35_s25, [#allocation9], %s5914_s11, %s5914_s11, %s5915_s12  }
  0x14   :  { %s5916_s15 = smov [#allocation11]   ;;  %s5917_s17 = smov [#allocation5]  }
  0x15   :  { %s57_s16 = sshll.u32 %s5916_s15, 4  ;;  %s22_s18 = sshll.u32 %s5917_s17, 4  ;;  %s58_s16 = int_to_ptr.vmem [resolvable:$true] %s57_s16  ;;  %s23_s18 = int_to_ptr.vmem [resolvable:$true] %s22_s18 }
  0x16   :  { %s5793_s21 = scalar_lea.hbm %s7000_s4, 128 }
  0x17   :  { %p5794_p8 = scmp.ne.s32.totalorder %s7000_s4, %s5793_s21  ;;  %p5797_p9 = scmp.lt.u32.totalorder %s5793_s21, %s7000_s4 }
  0x19   :  { %p5799_p10 = pnand %p5797_p9, %p5794_p8 }
  0x1b   :  { %5802 = shalt.err (!%p5799_p10)
}
  0x1c   :  { %s5803_s1 = scalar_lea.vmem %s58_s16, 128  ;;  %p5808_p12 = scmp.lt.s32.totalorder %s58_s16, %s58_s16 }
  0x1d   :  { %p5804_p11 = scmp.ne.s32.totalorder %s58_s16, %s5803_s1  ;;  %p5809_p13 = scmp.lt.s32.totalorder %s5803_s1, %s5803_s1 }
  0x1f   :  { %p5810_p0 = por %p5809_p13, %p5808_p12 }
  0x21   :  { %p5811_p1 = pnand %p5810_p0, %p5804_p11 }
  0x23   :  { %5814 = shalt.err (!%p5811_p1)
}
  0x24   :  { %60 = dma.hbm_to_vmem [thread:$0]  %s7000_s4, 128, %s58_s16, [#allocation12]  }
  0x25   :  { %s5815_s30 = scalar_lea.hbm %s6996_s0, 1024 }
  0x26   :  { %p5816_p2 = scmp.ne.s32.totalorder %s6996_s0, %s5815_s30  ;;  %p5819_p3 = scmp.lt.u32.totalorder %s5815_s30, %s6996_s0 }
  0x28   :  { %p5821_p4 = pnand %p5819_p3, %p5816_p2 }
  0x2a   :  { %5824 = shalt.err (!%p5821_p4)
}
  0x2b   :  { %s5825_s12 = scalar_lea.vmem %s23_s18, 1024  ;;  %p5830_p6 = scmp.lt.s32.totalorder %s23_s18, %s23_s18 }
  0x2c   :  { %p5826_p5 = scmp.ne.s32.totalorder %s23_s18, %s5825_s12  ;;  %p5831_p7 = scmp.lt.s32.totalorder %s5825_s12, %s5825_s12 }
  0x2e   :  { %p5832_p8 = por %p5831_p7, %p5830_p6 }
  0x30   :  { %p5833_p9 = pnand %p5832_p8, %p5826_p5 }
  0x32   :  { %5836 = shalt.err (!%p5833_p9)
}
  0x33   :  { %s5918_s4 = smov 64   ;;  %s5919_s13 = smov 4  }
  0x34   :  { %28 = dma.hbm_to_vmem [thread:$0]  %s6996_s0, 1024, %s23_s18, [#allocation6], %s5918_s4, %s5918_s4, %s5919_s13  }
  0x35   :  { %s5920_s16 = smov [#allocation10]   ;;  %s5921_s19 = smov [#allocation13]  }
  0x36   :  { %s47_s17 = sshll.u32 %s5920_s16, 4  ;;  %s66_s20 = sshll.u32 %s5921_s19, 4  ;;  %s48_s17 = int_to_ptr.vmem [resolvable:$true] %s47_s17  ;;  %s67_s20 = int_to_ptr.vmem [resolvable:$true] %s66_s20 }
  0x37   :  { %s5837_s23 = scalar_lea.hbm %s6998_s2, 128 }
  0x38   :  { %p5838_p10 = scmp.ne.s32.totalorder %s6998_s2, %s5837_s23  ;;  %p5841_p11 = scmp.lt.u32.totalorder %s5837_s23, %s6998_s2 }
  0x3a   :  { %p5843_p12 = pnand %p5841_p11, %p5838_p10 }
  0x3c   :  { %5846 = shalt.err (!%p5843_p12)
}
  0x3d   :  { %s5847_s0 = scalar_lea.vmem %s48_s17, 128  ;;  %p5852_p0 = scmp.lt.s32.totalorder %s48_s17, %s48_s17 }
  0x3e   :  { %p5848_p13 = scmp.ne.s32.totalorder %s48_s17, %s5847_s0  ;;  %p5853_p1 = scmp.lt.s32.totalorder %s5847_s0, %s5847_s0 }
  0x40   :  { %p5854_p2 = por %p5853_p1, %p5852_p0 }
  0x42   :  { %p5855_p3 = pnand %p5854_p2, %p5848_p13 }
  0x44   :  { %5858 = shalt.err (!%p5855_p3)
}
  0x45   :  { %50 = dma.hbm_to_vmem [thread:$0]  %s6998_s2, 128, %s48_s17, [#allocation9]  }
  0x46   :  { %s5859_s30 = scalar_lea.hbm %s7001_s5, 8192 }
  0x47   :  { %p5860_p4 = scmp.ne.s32.totalorder %s7001_s5, %s5859_s30  ;;  %p5863_p5 = scmp.lt.u32.totalorder %s5859_s30, %s7001_s5 }
  0x49   :  { %p5865_p6 = pnand %p5863_p5, %p5860_p4 }
  0x4b   :  { %5868 = shalt.err (!%p5865_p6)
}
  0x4c   :  { %s5869_s12 = scalar_lea.vmem %s67_s20, 8192  ;;  %p5874_p8 = scmp.lt.s32.totalorder %s67_s20, %s67_s20 }
  0x4d   :  { %p5870_p7 = scmp.ne.s32.totalorder %s67_s20, %s5869_s12  ;;  %p5875_p9 = scmp.lt.s32.totalorder %s5869_s12, %s5869_s12 }
  0x4f   :  { %p5876_p10 = por %p5875_p9, %p5874_p8 }
  0x51   :  { %p5877_p11 = pnand %p5876_p10, %p5870_p7 }
  0x53   :  { %5880 = shalt.err (!%p5877_p11)
}
  0x54   :  { %72 = dma.hbm_to_vmem [thread:$0]  %s7001_s5, 8192, %s67_s20, [#allocation12], %s5918_s4, %s5918_s4, %s5919_s13  }
  0x55   :  { %5903 = dma.done.wait [#allocation6], 1024  }
  0x56   :  { %5904 = vsyncadd [#allocation6], 4294966272 }
  0x57   :  { %5905 = dma.done.wait [#allocation9], 8320  }
  0x58   :  { %5906 = vsyncadd [#allocation9], 4294958976 }
  0x59   :  { %5907 = dma.done.wait [#allocation12], 8320  }
  0x5a   :  { %5908 = vsyncadd [#allocation12], 4294958976 }
  0x5b   :  { %s99_s15 = sld [smem:[#allocation0]]   ;;  %s5922_s16 = smov [#allocation2]   ;;  %v5932_v8 = vmov 0  }
  0x5c   :  { %s107_s17 = sshll.u32 %s5922_s16, 4  ;;  %s5923_s19 = smov 1024   ;;  %652 = vmatprep.mubr.bf16.mxu0 %v5932_v8  ;;  %765 = vmatprep.mubr.bf16.mxu1 %v5932_v8  ;;  %s108_s17 = int_to_ptr.vmem [resolvable:$true] %s107_s17 }
  0x5d   :  { %111 = sst [smem:[#allocation16]] %s5923_s19  ;;  %s5924_s21 = smov 8  }
  0x5e   :  { %113 = sst [smem:[#allocation16 + $0x1]] %s5923_s19  ;;  %s5925_s22 = smov 64  }
  0x5f   :  { %115 = sst [smem:[#allocation16 + $0x2]] %s5924_s21  ;;  %s5926_s24 = smov 128  }
  0x60   :  { %117 = sst [smem:[#allocation16 + $0x3]] %s5925_s22  ;;  %s5927_s4 = smov 2  }
  0x61   :  { %s4768_s23 = sshll.u32 %s99_s15, 26  ;;  %119 = sst [smem:[#allocation16 + $0x4]] %s5926_s24 }
  0x62   :  { %s4769_s5 = sadd.s32 134217728, %s4768_s23  ;;  %121 = sst [smem:[#allocation16 + $0x5]] %s5927_s4 }
  0x63   :  { %s5928_s13 = smov 512   ;;  %125 = sst [smem:[#allocation16 + $0x7]] %s5925_s22 }
  0x64   :  { %123 = sst [smem:[#allocation16 + $0x6]] %s5928_s13  ;;  %s5929_s20 = smov 4  }
  0x65   :  { %127 = sst [smem:[#allocation16 + $0x8]] %s5929_s20  ;;  %s5930_s26 = smov [#allocation3]  }
  0x66   :  { %s5931_s1 = smov [#allocation15]  }
  0x67   :  { %129 = dma.general %s6999_s3, 65536, %s108_s17, %s5930_s26, %s5931_s1, [#allocation16], %s4769_s5, 0  }
  0x68   :  { %v146_v0 = vld [vmem:[#allocation8] sm:$0xff]  ;;  %v147_v2 = vld [vmem:[#allocation8 + $0x8] sm:$0xff]  ;;  %v148_v63 = vld [vmem:[#allocation8 + $0x10] sm:$0xff] }
  0x69   :  { %v150_v1 = vld [vmem:[#allocation8 + $0x20] sm:$0xff]  ;;  %v151_v4 = vld [vmem:[#allocation8 + $0x28] sm:$0xff] }
  0x6a   :  { %v4779_v3 = vcombine.high %v146_v0, %v150_v1  ;;  %v4778_v5 = vcombine.low %v146_v0, %v150_v1  ;;  %v154_v6 = vld [vmem:[#allocation8 + $0x40] sm:$0xff]  ;;  %v4781_v9 = vcombine.high %v147_v2, %v151_v4  ;;  %v4780_v10 = vcombine.low %v147_v2, %v151_v4  ;;  %v155_v12 = vld [vmem:[#allocation8 + $0x48] sm:$0xff]  ;;  %v152_v0 = vld [vmem:[#allocation8 + $0x30] sm:$0xff] }
  0x6b   :  { %v158_v7 = vld [vmem:[#allocation8 + $0x60] sm:$0xff]  ;;  %v159_v13 = vld [vmem:[#allocation8 + $0x68] sm:$0xff]  ;;  %v149_v1 = vld [vmem:[#allocation8 + $0x18] sm:$0xff] }
  0x6c   :  { %v4787_v11 = vcombine.high %v154_v6, %v158_v7  ;;  %v162_v14 = vld [vmem:[#allocation8 + $0x80] sm:$0xff]  ;;  %620 = vmatprep.subr.bf16.mxu0 %v4779_v3  ;;  %v4789_v15 = vcombine.high %v155_v12, %v159_v13  ;;  %v163_v17 = vld [vmem:[#allocation8 + $0x88] sm:$0xff]  ;;  %733 = vmatprep.subr.bf16.mxu1 %v4781_v9  ;;  %v4786_v19 = vcombine.low %v154_v6, %v158_v7  ;;  %v153_v2 = vld [vmem:[#allocation8 + $0x38] sm:$0xff] }
  0x6d   :  { %v166_v16 = vld [vmem:[#allocation8 + $0xa0] sm:$0xff]  ;;  %v167_v18 = vld [vmem:[#allocation8 + $0xa8] sm:$0xff]  ;;  %621 = vmatpush1.bf16.msra.mxu0 %v4778_v5  ;;  %734 = vmatpush1.bf16.msra.mxu1 %v4780_v10  ;;  %v4788_v20 = vcombine.low %v155_v12, %v159_v13  ;;  %v4783_v5 = vcombine.high %v148_v63, %v152_v0  ;;  %v4785_v6 = vcombine.high %v149_v1, %v153_v2  ;;  %v156_v9 = vld [vmem:[#allocation8 + $0x50] sm:$0xff] }
  0x6e   :  { %622 = vmatprep.subr.bf16.mxu0 %v4787_v11  ;;  %v4795_v21 = vcombine.high %v162_v14, %v166_v16  ;;  %735 = vmatprep.subr.bf16.mxu1 %v4789_v15  ;;  %v4797_v22 = vcombine.high %v163_v17, %v167_v18  ;;  %v170_v23 = vld [vmem:[#allocation8 + $0xc0] sm:$0xff]  ;;  %v171_v25 = vld [vmem:[#allocation8 + $0xc8] sm:$0xff]  ;;  %v4794_v27 = vcombine.low %v162_v14, %v166_v16  ;;  %v160_v10 = vld [vmem:[#allocation8 + $0x70] sm:$0xff] }
  0x6f   :  { %v174_v24 = vld [vmem:[#allocation8 + $0xe0] sm:$0xff]  ;;  %v175_v26 = vld [vmem:[#allocation8 + $0xe8] sm:$0xff]  ;;  %v4796_v28 = vcombine.low %v163_v17, %v167_v18  ;;  %v4782_v11 = vcombine.low %v148_v63, %v152_v0  ;;  %v157_v12 = vld [vmem:[#allocation8 + $0x58] sm:$0xff]  ;;  %v4784_v14 = vcombine.low %v149_v1, %v153_v2  ;;  %v4791_v15 = vcombine.high %v156_v9, %v160_v10 }
  0x70   :  { %v4803_v29 = vcombine.high %v170_v23, %v174_v24  ;;  %v4805_v30 = vcombine.high %v171_v25, %v175_v26  ;;  %v178_v31 = vld [vmem:[#allocation8 + $0x100] sm:$0xff]  ;;  %v179_v33 = vld [vmem:[#allocation8 + $0x108] sm:$0xff]  ;;  %v4802_v35 = vcombine.low %v170_v23, %v174_v24  ;;  %v4804_v36 = vcombine.low %v171_v25, %v175_v26  ;;  %v161_v13 = vld [vmem:[#allocation8 + $0x78] sm:$0xff] }
  0x71   :  { %623 = vmatpush1.bf16.msra.mxu0 %v4786_v19  ;;  %736 = vmatpush1.bf16.msra.mxu1 %v4788_v20  ;;  %v182_v32 = vld [vmem:[#allocation8 + $0x120] sm:$0xff]  ;;  %v183_v34 = vld [vmem:[#allocation8 + $0x128] sm:$0xff]  ;;  %v164_v16 = vld [vmem:[#allocation8 + $0x90] sm:$0xff]  ;;  %v4793_v18 = vcombine.high %v157_v12, %v161_v13 }
  0x72   :  { %624 = vmatprep.subr.bf16.mxu0 %v4795_v21  ;;  %737 = vmatprep.subr.bf16.mxu1 %v4797_v22  ;;  %v4811_v37 = vcombine.high %v178_v31, %v182_v32  ;;  %v4813_v38 = vcombine.high %v179_v33, %v183_v34  ;;  %v186_v39 = vld [vmem:[#allocation8 + $0x140] sm:$0xff]  ;;  %v187_v41 = vld [vmem:[#allocation8 + $0x148] sm:$0xff]  ;;  %v4810_v43 = vcombine.low %v178_v31, %v182_v32  ;;  %v168_v17 = vld [vmem:[#allocation8 + $0xb0] sm:$0xff] }
  0x73   :  { %v190_v40 = vld [vmem:[#allocation8 + $0x160] sm:$0xff]  ;;  %v191_v42 = vld [vmem:[#allocation8 + $0x168] sm:$0xff]  ;;  %v4812_v44 = vcombine.low %v179_v33, %v183_v34  ;;  %v165_v19 = vld [vmem:[#allocation8 + $0x98] sm:$0xff]  ;;  %v4790_v21 = vcombine.low %v156_v9, %v160_v10  ;;  %v4792_v22 = vcombine.low %v157_v12, %v161_v13  ;;  %v4799_v23 = vcombine.high %v164_v16, %v168_v17 }
  0x74   :  { %v4819_v45 = vcombine.high %v186_v39, %v190_v40  ;;  %v4821_v46 = vcombine.high %v187_v41, %v191_v42  ;;  %v194_v47 = vld [vmem:[#allocation8 + $0x180] sm:$0xff]  ;;  %v195_v49 = vld [vmem:[#allocation8 + $0x188] sm:$0xff]  ;;  %v4818_v51 = vcombine.low %v186_v39, %v190_v40  ;;  %v4820_v52 = vcombine.low %v187_v41, %v191_v42  ;;  %v169_v20 = vld [vmem:[#allocation8 + $0xb8] sm:$0xff] }
  0x75   :  { %625 = vmatpush1.bf16.msra.mxu0 %v4794_v27  ;;  %738 = vmatpush1.bf16.msra.mxu1 %v4796_v28  ;;  %v198_v48 = vld [vmem:[#allocation8 + $0x1a0] sm:$0xff]  ;;  %v199_v50 = vld [vmem:[#allocation8 + $0x1a8] sm:$0xff]  ;;  %v4801_v24 = vcombine.high %v165_v19, %v169_v20  ;;  %v172_v26 = vld [vmem:[#allocation8 + $0xd0] sm:$0xff]  ;;  %v4800_v31 = vcombine.low %v165_v19, %v169_v20 }
  0x76   :  { %626 = vmatprep.subr.bf16.mxu0 %v4803_v29  ;;  %739 = vmatprep.subr.bf16.mxu1 %v4805_v30  ;;  %v4827_v53 = vcombine.high %v194_v47, %v198_v48  ;;  %v202_v54 = vld [vmem:[#allocation8 + $0x1c0] sm:$0xff]  ;;  %v4829_v55 = vcombine.high %v195_v49, %v199_v50  ;;  %v203_v57 = vld [vmem:[#allocation8 + $0x1c8] sm:$0xff]  ;;  %v4826_v59 = vcombine.low %v194_v47, %v198_v48  ;;  %v176_v27 = vld [vmem:[#allocation8 + $0xf0] sm:$0xff] }
  0x77   :  { %v206_v56 = vld [vmem:[#allocation8 + $0x1e0] sm:$0xff]  ;;  %v207_v58 = vld [vmem:[#allocation8 + $0x1e8] sm:$0xff]  ;;  %v4828_v60 = vcombine.low %v195_v49, %v199_v50  ;;  %v173_v28 = vld [vmem:[#allocation8 + $0xd8] sm:$0xff]  ;;  %v4798_v30 = vcombine.low %v164_v16, %v168_v17  ;;  %v4807_v32 = vcombine.high %v172_v26, %v176_v27 }
  0x78   :  { %v4835_v61 = vcombine.high %v202_v54, %v206_v56  ;;  %v4837_v62 = vcombine.high %v203_v57, %v207_v58  ;;  %v4834_v3 = vcombine.low %v202_v54, %v206_v56  ;;  %v4836_v4 = vcombine.low %v203_v57, %v207_v58  ;;  %v6047_v7 = vld [vmem:[#allocation5] sm:$0xff]   ;;  %v6053_v25 = vld [vmem:[#allocation5 + $0x8] sm:$0xff]   ;;  %v177_v29 = vld [vmem:[#allocation8 + $0xf8] sm:$0xff] }
  0x79   :  { %627 = vmatpush1.bf16.msra.mxu0 %v4802_v35  ;;  %740 = vmatpush1.bf16.msra.mxu1 %v4804_v36  ;;  %v4809_v33 = vcombine.high %v173_v28, %v177_v29  ;;  %v180_v34 = vld [vmem:[#allocation8 + $0x110] sm:$0xff]  ;;  %v181_v36 = vld [vmem:[#allocation8 + $0x118] sm:$0xff]  ;;  %v4808_v39 = vcombine.low %v173_v28, %v177_v29  ;;  %v5703_v9 = vld [vmem:[#allocation5 + $0x28] sm:$0xff]  }
  0x7a   :  { %628 = vmatprep.subr.bf16.mxu0 %v4811_v37  ;;  %741 = vmatprep.subr.bf16.mxu1 %v4813_v38  ;;  %v184_v35 = vld [vmem:[#allocation8 + $0x130] sm:$0xff]  ;;  %v185_v37 = vld [vmem:[#allocation8 + $0x138] sm:$0xff]  ;;  %v4806_v38 = vcombine.low %v172_v26, %v176_v27 }
  0x7b   :  { %v4815_v40 = vcombine.high %v180_v34, %v184_v35  ;;  %v6059_v41 = vld [vmem:[#allocation5 + $0x10] sm:$0xff]   ;;  %v4817_v42 = vcombine.high %v181_v36, %v185_v37  ;;  %v4814_v47 = vcombine.low %v180_v34, %v184_v35  ;;  %v4816_v48 = vcombine.low %v181_v36, %v185_v37  ;;  %v201_v54 = vld [vmem:[#allocation8 + $0x1b8] sm:$0xff] }
  0x7c   :  { %v5701_v58 = vld [vmem:[#allocation5 + $0x18] sm:$0xff]   ;;  %v5704_v10 = vld [vmem:[#allocation5 + $0x30] sm:$0xff]  }
  0x7d   :  { %629 = vmatpush1.bf16.msra.mxu0 %v4810_v43  ;;  %742 = vmatpush1.bf16.msra.mxu1 %v4812_v44  ;;  %v188_v43 = vld [vmem:[#allocation8 + $0x150] sm:$0xff]  ;;  %v209_v63 = vld [vmem:[#allocation8 + $0x1f8] sm:$0xff] }
  0x7e   :  { %630 = vmatprep.subr.bf16.mxu0 %v4819_v45  ;;  %743 = vmatprep.subr.bf16.mxu1 %v4821_v46  ;;  %v192_v44 = vld [vmem:[#allocation8 + $0x170] sm:$0xff]  ;;  %v189_v45 = vld [vmem:[#allocation8 + $0x158] sm:$0xff] }
  0x7f   :  { %v193_v46 = vld [vmem:[#allocation8 + $0x178] sm:$0xff]  ;;  %v4823_v49 = vcombine.high %v188_v43, %v192_v44 }
  0x80   :  { %v4825_v50 = vcombine.high %v189_v45, %v193_v46  ;;  %v4824_v56 = vcombine.low %v189_v45, %v193_v46 }
  0x81   :  { %631 = vmatpush1.bf16.msra.mxu0 %v4818_v51  ;;  %744 = vmatpush1.bf16.msra.mxu1 %v4820_v52  ;;  %v196_v51 = vld [vmem:[#allocation8 + $0x190] sm:$0xff] }
  0x82   :  { %632 = vmatprep.subr.bf16.mxu0 %v4827_v53  ;;  %745 = vmatprep.subr.bf16.mxu1 %v4829_v55  ;;  %v200_v52 = vld [vmem:[#allocation8 + $0x1b0] sm:$0xff]  ;;  %v197_v53 = vld [vmem:[#allocation8 + $0x198] sm:$0xff]  ;;  %v4822_v55 = vcombine.low %v188_v43, %v192_v44 }
  0x83   :  { %v4831_v57 = vcombine.high %v196_v51, %v200_v52  ;;  %v4830_v0 = vcombine.low %v196_v51, %v200_v52  ;;  %v4832_v1 = vcombine.low %v197_v53, %v201_v54 }
  0x85   :  { %633 = vmatpush1.bf16.msra.mxu0 %v4826_v59  ;;  %746 = vmatpush1.bf16.msra.mxu1 %v4828_v60  ;;  %v4833_v59 = vcombine.high %v197_v53, %v201_v54  ;;  %v204_v60 = vld [vmem:[#allocation8 + $0x1d0] sm:$0xff] }
  0x86   :  { %634 = vmatprep.subr.bf16.mxu0 %v4835_v61  ;;  %747 = vmatprep.subr.bf16.mxu1 %v4837_v62  ;;  %v208_v61 = vld [vmem:[#allocation8 + $0x1f0] sm:$0xff]  ;;  %v205_v62 = vld [vmem:[#allocation8 + $0x1d8] sm:$0xff] }
  0x87   :  { %v4839_v2 = vcombine.high %v204_v60, %v208_v61 }
  0x89   :  { %635 = vmatpush1.bf16.msra.mxu0 %v4834_v3  ;;  %748 = vmatpush1.bf16.msra.mxu1 %v4836_v4  ;;  %v4841_v3 = vcombine.high %v205_v62, %v209_v63  ;;  %v4838_v4 = vcombine.low %v204_v60, %v208_v61 }
  0x8a   :  { %846 = vmatprep.subr.bf16.mxu0 %v4783_v5  ;;  %959 = vmatprep.subr.bf16.mxu1 %v4785_v6  ;;  %v4840_v5 = vcombine.low %v205_v62, %v209_v63  ;;  %v5702_v6 = vld [vmem:[#allocation5 + $0x20] sm:$0xff]  }
  0x8c   :  { %653 = vmatmul.mubr.bf16.vlgmr.msra.gmra.mrb[0].mxu0 %v6047_v7  ;;  %766 = vmatmul.mubr.bf16.vlgmr.msra.gmra.mrb[0].mxu1 %v6047_v7 }
  0x8d   :  { %847 = vmatpush1.bf16.msra.mxu0 %v4782_v11  ;;  %960 = vmatpush1.bf16.msra.mxu1 %v4784_v14  ;;  %v5705_v11 = vld [vmem:[#allocation5 + $0x38] sm:$0xff]   ;;  %v6098_v14 = vld [vmem:[#allocation10] sm:$0xff] }
  0x8e   :  { %662 = vmatprep.mubr.bf16.mxu0 %v5932_v8  ;;  %775 = vmatprep.mubr.bf16.mxu1 %v5932_v8 }
  0x8f   :  { %848 = vmatprep.subr.bf16.mxu0 %v4791_v15  ;;  %961 = vmatprep.subr.bf16.mxu1 %v4793_v18 }
  0x91   :  { %849 = vmatpush1.bf16.msra.mxu0 %v4790_v21  ;;  %962 = vmatpush1.bf16.msra.mxu1 %v4792_v22 }
  0x92   :  { %850 = vmatprep.subr.bf16.mxu0 %v4799_v23  ;;  %963 = vmatprep.subr.bf16.mxu1 %v4801_v24 }
  0x94   :  { %663 = vmatmul.mubr.bf16.gmra.mrb[4].mxu0 %v6053_v25  ;;  %776 = vmatmul.mubr.bf16.gmra.mrb[4].mxu1 %v6053_v25 }
  0x95   :  { %672 = vmatprep.mubr.bf16.mxu0 %v5932_v8  ;;  %785 = vmatprep.mubr.bf16.mxu1 %v5932_v8 }
  0x96   :  { %851 = vmatpush1.bf16.msra.mxu0 %v4798_v30  ;;  %964 = vmatpush1.bf16.msra.mxu1 %v4800_v31 }
  0x97   :  { %852 = vmatprep.subr.bf16.mxu0 %v4807_v32  ;;  %965 = vmatprep.subr.bf16.mxu1 %v4809_v33 }
  0x9a   :  { %853 = vmatpush1.bf16.msra.mxu0 %v4806_v38  ;;  %966 = vmatpush1.bf16.msra.mxu1 %v4808_v39 }
  0x9b   :  { %854 = vmatprep.subr.bf16.mxu0 %v4815_v40  ;;  %967 = vmatprep.subr.bf16.mxu1 %v4817_v42 }
  0x9c   :  { %673 = vmatmul.mubr.bf16.gmra.mrb[8].mxu0 %v6059_v41  ;;  %786 = vmatmul.mubr.bf16.gmra.mrb[8].mxu1 %v6059_v41 }
  0x9d   :  { %682 = vmatprep.mubr.bf16.mxu0 %v5932_v8  ;;  %795 = vmatprep.mubr.bf16.mxu1 %v5932_v8 }
  0x9e   :  { %855 = vmatpush1.bf16.msra.mxu0 %v4814_v47  ;;  %968 = vmatpush1.bf16.msra.mxu1 %v4816_v48 }
  0x9f   :  { %856 = vmatprep.subr.bf16.mxu0 %v4823_v49  ;;  %969 = vmatprep.subr.bf16.mxu1 %v4825_v50 }
  0xa2   :  { %857 = vmatpush1.bf16.msra.mxu0 %v4822_v55  ;;  %970 = vmatpush1.bf16.msra.mxu1 %v4824_v56 }
  0xa3   :  { %858 = vmatprep.subr.bf16.mxu0 %v4831_v57  ;;  %971 = vmatprep.subr.bf16.mxu1 %v4833_v59 }
  0xa4   :  { %683 = vmatmul.mubr.bf16.gmra.mrb[12].mxu0 %v5701_v58  ;;  %796 = vmatmul.mubr.bf16.gmra.mrb[12].mxu1 %v5701_v58 }
  0xa5   :  { %692 = vmatprep.mubr.bf16.mxu0 %v5932_v8  ;;  %805 = vmatprep.mubr.bf16.mxu1 %v5932_v8 }
  0xa6   :  { %859 = vmatpush1.bf16.msra.mxu0 %v4830_v0  ;;  %972 = vmatpush1.bf16.msra.mxu1 %v4832_v1 }
  0xa7   :  { %860 = vmatprep.subr.bf16.mxu0 %v4839_v2  ;;  %973 = vmatprep.subr.bf16.mxu1 %v4841_v3 }
  0xaa   :  { %861 = vmatpush1.bf16.msra.mxu0 %v4838_v4  ;;  %974 = vmatpush1.bf16.msra.mxu1 %v4840_v5 }
  0xac   :  { %693 = vmatmul.mubr.bf16.gmra.mrb[16].mxu0 %v5702_v6  ;;  %806 = vmatmul.mubr.bf16.gmra.mrb[16].mxu1 %v5702_v6 }
  0xad   :  { %702 = vmatprep.mubr.bf16.mxu0 %v5932_v8  ;;  %815 = vmatprep.mubr.bf16.mxu1 %v5932_v8 }
  0xb4   :  { %703 = vmatmul.mubr.bf16.gmra.mrb[20].mxu0 %v5703_v9  ;;  %816 = vmatmul.mubr.bf16.gmra.mrb[20].mxu1 %v5703_v9 }
  0xb5   :  { %712 = vmatprep.mubr.bf16.mxu0 %v5932_v8  ;;  %825 = vmatprep.mubr.bf16.mxu1 %v5932_v8 }
  0xbc   :  { %713 = vmatmul.mubr.bf16.gmra.mrb[24].mxu0 %v5704_v10  ;;  %826 = vmatmul.mubr.bf16.gmra.mrb[24].mxu1 %v5704_v10 }
  0xbd   :  { %722 = vmatprep.mubr.bf16.mxu0 %v5932_v8  ;;  %835 = vmatprep.mubr.bf16.mxu1 %v5932_v8 }
  0xc4   :  { %723 = vmatmul.mubr.bf16.gmra.mrb[28].mxu0 %v5705_v11  ;;  %836 = vmatmul.mubr.bf16.gmra.mrb[28].mxu1 %v5705_v11 }
  0xc5   :  { %878 = vmatprep.mubr.bf16.mxu0 %v5932_v8  ;;  %991 = vmatprep.mubr.bf16.mxu1 %v5932_v8 }
  0xcc   :  { %879 = vmatmul.mubr.bf16.vlgmr.msra.gmra.mrb[32].mxu0 %v6047_v7  ;;  %992 = vmatmul.mubr.bf16.vlgmr.msra.gmra.mrb[32].mxu1 %v6047_v7  ;;  %v212_v7 = vlaneseq }
  0xcd   :  { %888 = vmatprep.mubr.bf16.mxu0 %v5932_v8  ;;  %1001 = vmatprep.mubr.bf16.mxu1 %v5932_v8 }
  0xce   :  { %v6095_v12 = vshrl.u32 %v212_v7, 7 }
  0xd0   :  { %7047 = vst [vmem:[#allocation22_spill] sm:$0xff] %v6095_v12  ;;  %v7011_v13 = vsub.s32 0, %v6095_v12  ;;  %v7010_v15 = vsub.s32 2, %v6095_v12  ;;  %v7009_v16 = vsub.s32 1, %v6095_v12  ;;  %v7008_v17 = vsub.s32 3, %v6095_v12 }
  0xd2   :  { %v6106_v18 = vrot.slane %v6098_v14, %v7011_v13  ;;  %v6116_v19 = vrot.slane %v6098_v14, %v7009_v16  ;;  %v6121_v20 = vrot.slane %v6098_v14, %v7008_v17 }
  0xd4   :  { %889 = vmatmul.mubr.bf16.gmra.mrb[36].mxu0 %v6053_v25  ;;  %1002 = vmatmul.mubr.bf16.gmra.mrb[36].mxu1 %v6053_v25 }
  0xd5   :  { %898 = vmatprep.mubr.bf16.mxu0 %v5932_v8  ;;  %1011 = vmatprep.mubr.bf16.mxu1 %v5932_v8 }
  0xdc   :  { %899 = vmatmul.mubr.bf16.gmra.mrb[40].mxu0 %v6059_v41  ;;  %1012 = vmatmul.mubr.bf16.gmra.mrb[40].mxu1 %v6059_v41 }
  0xdd   :  { %908 = vmatprep.mubr.bf16.mxu0 %v5932_v8  ;;  %1021 = vmatprep.mubr.bf16.mxu1 %v5932_v8 }
  0xe4   :  { %909 = vmatmul.mubr.bf16.gmra.mrb[44].mxu0 %v5701_v58  ;;  %1022 = vmatmul.mubr.bf16.gmra.mrb[44].mxu1 %v5701_v58 }
  0xe5   :  { %918 = vmatprep.mubr.bf16.mxu0 %v5932_v8  ;;  %1031 = vmatprep.mubr.bf16.mxu1 %v5932_v8 }
  0xec   :  { %919 = vmatmul.mubr.bf16.gmra.mrb[48].mxu0 %v5702_v6  ;;  %1032 = vmatmul.mubr.bf16.gmra.mrb[48].mxu1 %v5702_v6 }
  0xed   :  { %928 = vmatprep.mubr.bf16.mxu0 %v5932_v8  ;;  %1041 = vmatprep.mubr.bf16.mxu1 %v5932_v8 }
  0xf4   :  { %929 = vmatmul.mubr.bf16.gmra.mrb[52].mxu0 %v5703_v9  ;;  %1042 = vmatmul.mubr.bf16.gmra.mrb[52].mxu1 %v5703_v9 }
  0xf5   :  { %938 = vmatprep.mubr.bf16.mxu0 %v5932_v8  ;;  %1051 = vmatprep.mubr.bf16.mxu1 %v5932_v8 }
  0xfc   :  { %939 = vmatmul.mubr.bf16.gmra.mrb[56].mxu0 %v5704_v10  ;;  %1052 = vmatmul.mubr.bf16.gmra.mrb[56].mxu1 %v5704_v10 }
  0xfd   :  { %948 = vmatprep.mubr.bf16.mxu0 %v5932_v8  ;;  %1061 = vmatprep.mubr.bf16.mxu1 %v5932_v8  ;;  %v6111_v8 = vrot.slane %v6098_v14, %v7010_v15 }
 0x104   :  { %949 = vmatmul.mubr.bf16.gmra.mrb[60].mxu0 %v5705_v11  ;;  %1062 = vmatmul.mubr.bf16.gmra.mrb[60].mxu1 %v5705_v11 }
 0x15f   :  { %v654_v21 = vpop.f32.mrb[0].mxu0  ;;  %v767_v23 = vpop.f32.mrb[0].mxu1 }
 0x160   :  { %v655_v22 = vadd.f32 %v654_v21, %v6106_v18  ;;  %v656_v24 = vpop.f32.mrb[1].mxu0  ;;  %v768_v25 = vadd.f32 %v767_v23, %v6111_v8  ;;  %v769_v27 = vpop.f32.mrb[1].mxu1 }
 0x161   :  { %v657_v26 = vadd.f32 %v656_v24, %v6116_v19  ;;  %v658_v28 = vpop.f32.mrb[2].mxu0  ;;  %v770_v29 = vadd.f32 %v769_v27, %v6121_v20  ;;  %v771_v31 = vpop.f32.mrb[2].mxu1 }
 0x162   :  { %v659_v30 = vadd.f32 %v658_v28, %v6106_v18  ;;  %v660_v32 = vpop.f32.mrb[3].mxu0  ;;  %v772_v33 = vadd.f32 %v771_v31, %v6111_v8  ;;  %v773_v35 = vpop.f32.mrb[3].mxu1  ;;  %v1072_v36 = vmax.f32 %v655_v22, 0.0  ;;  %v1074_v39 = vmax.f32 %v768_v25, 0.0 }
 0x163   :  { %v661_v34 = vadd.f32 %v660_v32, %v6116_v19  ;;  %v774_v38 = vadd.f32 %v773_v35, %v6121_v20  ;;  %v1073_v40 = vmax.f32 %v657_v26, 0.0  ;;  %v1075_v43 = vmax.f32 %v770_v29, 0.0 }
 0x164   :  { %v1080_v37 = vmax.f32 %v659_v30, 0.0  ;;  %v1082_v41 = vmax.f32 %v772_v33, 0.0 }
 0x165   :  { %v1081_v42 = vmax.f32 %v661_v34, 0.0  ;;  %v1083_v45 = vmax.f32 %v774_v38, 0.0 }
 0x166   :  { %v6131_v44 = vpack.c.bf16 %v1080_v37, %v1072_v36  ;;  %v6133_v46 = vpack.c.bf16 %v1082_v41, %v1074_v39 }
 0x167   :  { %v6135_v47 = vpack.c.bf16 %v1081_v42, %v1073_v40  ;;  %v664_v48 = vpop.f32.mrb[4].mxu0  ;;  %v6137_v49 = vpack.c.bf16 %v1083_v45, %v1075_v43  ;;  %v777_v51 = vpop.f32.mrb[4].mxu1 }
 0x168   :  { %v665_v50 = vadd.f32 %v664_v48, %v6106_v18  ;;  %v666_v52 = vpop.f32.mrb[5].mxu0  ;;  %v778_v53 = vadd.f32 %v777_v51, %v6111_v8  ;;  %v779_v55 = vpop.f32.mrb[5].mxu1 }
 0x169   :  { %v667_v54 = vadd.f32 %v666_v52, %v6116_v19  ;;  %v668_v56 = vpop.f32.mrb[6].mxu0  ;;  %v780_v57 = vadd.f32 %v779_v55, %v6121_v20  ;;  %v781_v59 = vpop.f32.mrb[6].mxu1 }
 0x16a   :  { %v669_v58 = vadd.f32 %v668_v56, %v6106_v18  ;;  %v670_v60 = vpop.f32.mrb[7].mxu0  ;;  %v782_v61 = vadd.f32 %v781_v59, %v6111_v8  ;;  %v783_v63 = vpop.f32.mrb[7].mxu1  ;;  %v1088_v0 = vmax.f32 %v665_v50, 0.0  ;;  %v1090_v3 = vmax.f32 %v778_v53, 0.0 }
 0x16b   :  { %v671_v62 = vadd.f32 %v670_v60, %v6116_v19  ;;  %v784_v2 = vadd.f32 %v783_v63, %v6121_v20  ;;  %v1089_v4 = vmax.f32 %v667_v54, 0.0  ;;  %v1091_v9 = vmax.f32 %v780_v57, 0.0 }
 0x16c   :  { %v1096_v1 = vmax.f32 %v669_v58, 0.0  ;;  %v1098_v5 = vmax.f32 %v782_v61, 0.0 }
 0x16d   :  { %v1097_v6 = vmax.f32 %v671_v62, 0.0  ;;  %v1099_v11 = vmax.f32 %v784_v2, 0.0 }
 0x16e   :  { %v6147_v10 = vpack.c.bf16 %v1096_v1, %v1088_v0  ;;  %v6149_v7 = vpack.c.bf16 %v1098_v5, %v1090_v3 }
 0x16f   :  { %v6151_v21 = vpack.c.bf16 %v1097_v6, %v1089_v4  ;;  %v674_v22 = vpop.f32.mrb[8].mxu0  ;;  %v6153_v23 = vpack.c.bf16 %v1099_v11, %v1091_v9  ;;  %v787_v25 = vpop.f32.mrb[8].mxu1 }
 0x170   :  { %v675_v24 = vadd.f32 %v674_v22, %v6106_v18  ;;  %v676_v26 = vpop.f32.mrb[9].mxu0  ;;  %v788_v27 = vadd.f32 %v787_v25, %v6111_v8  ;;  %v789_v29 = vpop.f32.mrb[9].mxu1 }
 0x171   :  { %v677_v28 = vadd.f32 %v676_v26, %v6116_v19  ;;  %v678_v30 = vpop.f32.mrb[10].mxu0  ;;  %v790_v31 = vadd.f32 %v789_v29, %v6121_v20  ;;  %v791_v33 = vpop.f32.mrb[10].mxu1 }
 0x172   :  { %v679_v32 = vadd.f32 %v678_v30, %v6106_v18  ;;  %v680_v34 = vpop.f32.mrb[11].mxu0  ;;  %v792_v35 = vadd.f32 %v791_v33, %v6111_v8  ;;  %v793_v37 = vpop.f32.mrb[11].mxu1  ;;  %v1104_v38 = vmax.f32 %v675_v24, 0.0  ;;  %v1106_v41 = vmax.f32 %v788_v27, 0.0 }
 0x173   :  { %v681_v36 = vadd.f32 %v680_v34, %v6116_v19  ;;  %v794_v40 = vadd.f32 %v793_v37, %v6121_v20  ;;  %v1105_v42 = vmax.f32 %v677_v28, 0.0  ;;  %v1107_v48 = vmax.f32 %v790_v31, 0.0 }
 0x174   :  { %v1112_v39 = vmax.f32 %v679_v32, 0.0  ;;  %v1114_v43 = vmax.f32 %v792_v35, 0.0 }
 0x175   :  { %v1113_v45 = vmax.f32 %v681_v36, 0.0  ;;  %v1115_v51 = vmax.f32 %v794_v40, 0.0 }
 0x176   :  { %v6163_v50 = vpack.c.bf16 %v1112_v39, %v1104_v38  ;;  %v6165_v52 = vpack.c.bf16 %v1114_v43, %v1106_v41 }
 0x177   :  { %v6167_v53 = vpack.c.bf16 %v1113_v45, %v1105_v42  ;;  %v684_v54 = vpop.f32.mrb[12].mxu0  ;;  %v6169_v55 = vpack.c.bf16 %v1115_v51, %v1107_v48  ;;  %v797_v57 = vpop.f32.mrb[12].mxu1 }
 0x178   :  { %v685_v56 = vadd.f32 %v684_v54, %v6106_v18  ;;  %v686_v58 = vpop.f32.mrb[13].mxu0  ;;  %v798_v59 = vadd.f32 %v797_v57, %v6111_v8  ;;  %v799_v61 = vpop.f32.mrb[13].mxu1 }
 0x179   :  { %v687_v60 = vadd.f32 %v686_v58, %v6116_v19  ;;  %v688_v62 = vpop.f32.mrb[14].mxu0  ;;  %v800_v63 = vadd.f32 %v799_v61, %v6121_v20  ;;  %v801_v1 = vpop.f32.mrb[14].mxu1 }
 0x17a   :  { %v689_v0 = vadd.f32 %v688_v62, %v6106_v18  ;;  %v690_v2 = vpop.f32.mrb[15].mxu0  ;;  %v802_v3 = vadd.f32 %v801_v1, %v6111_v8  ;;  %v803_v5 = vpop.f32.mrb[15].mxu1  ;;  %v1120_v6 = vmax.f32 %v685_v56, 0.0  ;;  %v1122_v22 = vmax.f32 %v798_v59, 0.0 }
 0x17b   :  { %v691_v4 = vadd.f32 %v690_v2, %v6116_v19  ;;  %v804_v11 = vadd.f32 %v803_v5, %v6121_v20  ;;  %v1121_v24 = vmax.f32 %v687_v60, 0.0  ;;  %v1123_v27 = vmax.f32 %v800_v63, 0.0 }
 0x17c   :  { %v1128_v9 = vmax.f32 %v689_v0, 0.0  ;;  %v1130_v25 = vmax.f32 %v802_v3, 0.0 }
 0x17d   :  { %v1129_v26 = vmax.f32 %v691_v4, 0.0  ;;  %v1131_v29 = vmax.f32 %v804_v11, 0.0 }
 0x17e   :  { %v6179_v28 = vpack.c.bf16 %v1128_v9, %v1120_v6  ;;  %v6181_v30 = vpack.c.bf16 %v1130_v25, %v1122_v22 }
 0x17f   :  { %v6183_v31 = vpack.c.bf16 %v1129_v26, %v1121_v24  ;;  %v694_v32 = vpop.f32.mrb[16].mxu0  ;;  %v6185_v33 = vpack.c.bf16 %v1131_v29, %v1123_v27  ;;  %v807_v35 = vpop.f32.mrb[16].mxu1 }
 0x180   :  { %v695_v34 = vadd.f32 %v694_v32, %v6106_v18  ;;  %v696_v36 = vpop.f32.mrb[17].mxu0  ;;  %v808_v37 = vadd.f32 %v807_v35, %v6111_v8  ;;  %v809_v39 = vpop.f32.mrb[17].mxu1 }
 0x181   :  { %v697_v38 = vadd.f32 %v696_v36, %v6116_v19  ;;  %v698_v40 = vpop.f32.mrb[18].mxu0  ;;  %v810_v41 = vadd.f32 %v809_v39, %v6121_v20  ;;  %v811_v43 = vpop.f32.mrb[18].mxu1 }
 0x182   :  { %v699_v42 = vadd.f32 %v698_v40, %v6106_v18  ;;  %v700_v45 = vpop.f32.mrb[19].mxu0  ;;  %v812_v48 = vadd.f32 %v811_v43, %v6111_v8  ;;  %v813_v54 = vpop.f32.mrb[19].mxu1  ;;  %v1136_v56 = vmax.f32 %v695_v34, 0.0  ;;  %v1138_v59 = vmax.f32 %v808_v37, 0.0 }
 0x183   :  { %v701_v51 = vadd.f32 %v700_v45, %v6116_v19  ;;  %v814_v58 = vadd.f32 %v813_v54, %v6121_v20  ;;  %v1137_v60 = vmax.f32 %v697_v38, 0.0  ;;  %v1139_v63 = vmax.f32 %v810_v41, 0.0 }
 0x184   :  { %v1144_v57 = vmax.f32 %v699_v42, 0.0  ;;  %v1146_v61 = vmax.f32 %v812_v48, 0.0 }
 0x185   :  { %v1145_v62 = vmax.f32 %v701_v51, 0.0  ;;  %v1147_v1 = vmax.f32 %v814_v58, 0.0 }
 0x186   :  { %v6195_v0 = vpack.c.bf16 %v1144_v57, %v1136_v56  ;;  %v6197_v2 = vpack.c.bf16 %v1146_v61, %v1138_v59 }
 0x187   :  { %v6199_v3 = vpack.c.bf16 %v1145_v62, %v1137_v60  ;;  %v704_v4 = vpop.f32.mrb[20].mxu0  ;;  %v6201_v5 = vpack.c.bf16 %v1147_v1, %v1139_v63  ;;  %v817_v9 = vpop.f32.mrb[20].mxu1 }
 0x188   :  { %v705_v6 = vadd.f32 %v704_v4, %v6106_v18  ;;  %v706_v11 = vpop.f32.mrb[21].mxu0  ;;  %v818_v22 = vadd.f32 %v817_v9, %v6111_v8  ;;  %v819_v25 = vpop.f32.mrb[21].mxu1 }
 0x189   :  { %v707_v24 = vadd.f32 %v706_v11, %v6116_v19  ;;  %v708_v26 = vpop.f32.mrb[22].mxu0  ;;  %v820_v27 = vadd.f32 %v819_v25, %v6121_v20  ;;  %v821_v32 = vpop.f32.mrb[22].mxu1 }
 0x18a   :  { %v709_v29 = vadd.f32 %v708_v26, %v6106_v18  ;;  %v710_v34 = vpop.f32.mrb[23].mxu0  ;;  %v822_v35 = vadd.f32 %v821_v32, %v6111_v8  ;;  %v823_v37 = vpop.f32.mrb[23].mxu1  ;;  %v1152_v38 = vmax.f32 %v705_v6, 0.0  ;;  %v1154_v41 = vmax.f32 %v818_v22, 0.0 }
 0x18b   :  { %v711_v36 = vadd.f32 %v710_v34, %v6116_v19  ;;  %v824_v40 = vadd.f32 %v823_v37, %v6121_v20  ;;  %v1153_v42 = vmax.f32 %v707_v24, 0.0  ;;  %v1155_v48 = vmax.f32 %v820_v27, 0.0 }
 0x18c   :  { %v1160_v39 = vmax.f32 %v709_v29, 0.0  ;;  %v1162_v43 = vmax.f32 %v822_v35, 0.0 }
 0x18d   :  { %v1161_v45 = vmax.f32 %v711_v36, 0.0  ;;  %v1163_v54 = vmax.f32 %v824_v40, 0.0 }
 0x18e   :  { %v6211_v51 = vpack.c.bf16 %v1160_v39, %v1152_v38  ;;  %v6213_v56 = vpack.c.bf16 %v1162_v43, %v1154_v41 }
 0x18f   :  { %v6215_v57 = vpack.c.bf16 %v1161_v45, %v1153_v42  ;;  %v714_v58 = vpop.f32.mrb[24].mxu0  ;;  %v6217_v59 = vpack.c.bf16 %v1163_v54, %v1155_v48  ;;  %v827_v61 = vpop.f32.mrb[24].mxu1  ;;  %v7007_v48 = vsub.s32 4, %v6095_v12  ;;  %v7006_v54 = vsub.s32 6, %v6095_v12 }
 0x190   :  { %v715_v60 = vadd.f32 %v714_v58, %v6106_v18  ;;  %v716_v62 = vpop.f32.mrb[25].mxu0  ;;  %v828_v63 = vadd.f32 %v827_v61, %v6111_v8  ;;  %v829_v4 = vpop.f32.mrb[25].mxu1 }
 0x191   :  { %v717_v1 = vadd.f32 %v716_v62, %v6116_v19  ;;  %v718_v6 = vpop.f32.mrb[26].mxu0  ;;  %v830_v9 = vadd.f32 %v829_v4, %v6121_v20  ;;  %v831_v22 = vpop.f32.mrb[26].mxu1 }
 0x192   :  { %v719_v11 = vadd.f32 %v718_v6, %v6106_v18  ;;  %v720_v24 = vpop.f32.mrb[27].mxu0  ;;  %v832_v25 = vadd.f32 %v831_v22, %v6111_v8  ;;  %v833_v27 = vpop.f32.mrb[27].mxu1  ;;  %v1168_v29 = vmax.f32 %v715_v60, 0.0  ;;  %v1170_v35 = vmax.f32 %v828_v63, 0.0 }
 0x193   :  { %v721_v26 = vadd.f32 %v720_v24, %v6116_v19  ;;  %v834_v34 = vadd.f32 %v833_v27, %v6121_v20  ;;  %v1169_v36 = vmax.f32 %v717_v1, 0.0  ;;  %v1171_v39 = vmax.f32 %v830_v9, 0.0 }
 0x194   :  { %v1176_v32 = vmax.f32 %v719_v11, 0.0  ;;  %v1178_v37 = vmax.f32 %v832_v25, 0.0  ;;  %v7005_v63 = vsub.s32 5, %v6095_v12 }
 0x195   :  { %v1177_v38 = vmax.f32 %v721_v26, 0.0  ;;  %v1179_v41 = vmax.f32 %v834_v34, 0.0  ;;  %v7004_v26 = vsub.s32 7, %v6095_v12  ;;  %v6249_v34 = vrot.slane %v6098_v14, %v7007_v48 }
 0x196   :  { %v6227_v40 = vpack.c.bf16 %v1176_v32, %v1168_v29  ;;  %v6229_v42 = vpack.c.bf16 %v1178_v37, %v1170_v35  ;;  %v6254_v35 = vrot.slane %v6098_v14, %v7006_v54 }
 0x197   :  { %v6231_v43 = vpack.c.bf16 %v1177_v38, %v1169_v36  ;;  %v724_v45 = vpop.f32.mrb[28].mxu0  ;;  %v6235_v58 = vpack.c.bf16 %v1179_v41, %v1171_v39  ;;  %v837_v61 = vpop.f32.mrb[28].mxu1 }
 0x198   :  { %v725_v60 = vadd.f32 %v724_v45, %v6106_v18  ;;  %v726_v62 = vpop.f32.mrb[29].mxu0  ;;  %v838_v1 = vadd.f32 %v837_v61, %v6111_v8  ;;  %v839_v6 = vpop.f32.mrb[29].mxu1 }
 0x199   :  { %v727_v4 = vadd.f32 %v726_v62, %v6116_v19  ;;  %v728_v9 = vpop.f32.mrb[30].mxu0  ;;  %v840_v11 = vadd.f32 %v839_v6, %v6121_v20  ;;  %v841_v24 = vpop.f32.mrb[30].mxu1 }
 0x19a   :  { %v729_v22 = vadd.f32 %v728_v9, %v6106_v18  ;;  %v730_v25 = vpop.f32.mrb[31].mxu0  ;;  %v842_v27 = vadd.f32 %v841_v24, %v6111_v8  ;;  %v843_v32 = vpop.f32.mrb[31].mxu1  ;;  %v1184_v18 = vmax.f32 %v725_v60, 0.0  ;;  %v6260_v8 = vrot.slane %v6098_v14, %v7005_v63 }
 0x19b   :  { %v731_v29 = vadd.f32 %v730_v25, %v6116_v19  ;;  %v844_v37 = vadd.f32 %v843_v32, %v6121_v20  ;;  %v1186_v19 = vmax.f32 %v838_v1, 0.0  ;;  %v1185_v38 = vmax.f32 %v727_v4, 0.0 }
 0x19c   :  { %v1192_v36 = vmax.f32 %v729_v22, 0.0  ;;  %v1194_v39 = vmax.f32 %v842_v27, 0.0  ;;  %v1187_v45 = vmax.f32 %v840_v11, 0.0  ;;  %v6267_v60 = vrot.slane %v6098_v14, %v7004_v26 }
 0x19d   :  { %v1193_v41 = vmax.f32 %v731_v29, 0.0  ;;  %v1195_v62 = vmax.f32 %v844_v37, 0.0 }
 0x19e   :  { %v6262_v61 = vpack.c.bf16 %v1192_v36, %v1184_v18  ;;  %v6269_v6 = vpack.c.bf16 %v1194_v39, %v1186_v19 }
 0x19f   :  { %v6271_v20 = vpack.c.bf16 %v1193_v41, %v1185_v38  ;;  %v880_v9 = vpop.f32.mrb[32].mxu0  ;;  %v6273_v22 = vpack.c.bf16 %v1195_v62, %v1187_v45  ;;  %v993_v4 = vpop.f32.mrb[32].mxu1 }
 0x1a0   :  { %v881_v1 = vadd.f32 %v880_v9, %v6249_v34  ;;  %v882_v24 = vpop.f32.mrb[33].mxu0  ;;  %v994_v11 = vadd.f32 %v993_v4, %v6254_v35  ;;  %v995_v27 = vpop.f32.mrb[33].mxu1 }
 0x1a1   :  { %v883_v25 = vadd.f32 %v882_v24, %v6260_v8  ;;  %v884_v29 = vpop.f32.mrb[34].mxu0  ;;  %v996_v14 = vadd.f32 %v995_v27, %v6267_v60  ;;  %v997_v18 = vpop.f32.mrb[34].mxu1 }
 0x1a2   :  { %v885_v32 = vadd.f32 %v884_v29, %v6249_v34  ;;  %v886_v36 = vpop.f32.mrb[35].mxu0  ;;  %v998_v37 = vadd.f32 %v997_v18, %v6254_v35  ;;  %v999_v38 = vpop.f32.mrb[35].mxu1  ;;  %v1076_v39 = vmax.f32 %v881_v1, 0.0  ;;  %v1078_v62 = vmax.f32 %v994_v11, 0.0 }
 0x1a3   :  { %v887_v19 = vadd.f32 %v886_v36, %v6260_v8  ;;  %v1000_v45 = vadd.f32 %v999_v38, %v6267_v60  ;;  %v1077_v9 = vmax.f32 %v883_v25, 0.0  ;;  %v1079_v26 = vmax.f32 %v996_v14, 0.0 }
 0x1a4   :  { %v1084_v41 = vmax.f32 %v885_v32, 0.0  ;;  %v1086_v4 = vmax.f32 %v998_v37, 0.0 }
 0x1a5   :  { %v1085_v24 = vmax.f32 %v887_v19, 0.0  ;;  %v1087_v27 = vmax.f32 %v1000_v45, 0.0 }
 0x1a6   :  { %v6283_v63 = vpack.c.bf16 %v1084_v41, %v1076_v39  ;;  %v6285_v29 = vpack.c.bf16 %v1086_v4, %v1078_v62 }
 0x1a7   :  { %v6287_v54 = vpack.c.bf16 %v1085_v24, %v1077_v9  ;;  %v890_v18 = vpop.f32.mrb[36].mxu0  ;;  %v6289_v48 = vpack.c.bf16 %v1087_v27, %v1079_v26  ;;  %v1003_v32 = vpop.f32.mrb[36].mxu1 }
 0x1a8   :  { %7048 = vst [vmem:[#allocation23_spill] sm:$0xff] %v6285_v29  ;;  %v891_v1 = vadd.f32 %v890_v18, %v6249_v34  ;;  %v892_v36 = vpop.f32.mrb[37].mxu0  ;;  %v1004_v11 = vadd.f32 %v1003_v32, %v6254_v35  ;;  %v1005_v37 = vpop.f32.mrb[37].mxu1 }
 0x1a9   :  { %7049 = vst [vmem:[#allocation24_spill] sm:$0xff] %v6289_v48  ;;  %v893_v25 = vadd.f32 %v892_v36, %v6260_v8  ;;  %v894_v14 = vpop.f32.mrb[38].mxu0  ;;  %v1006_v19 = vadd.f32 %v1005_v37, %v6267_v60  ;;  %v1007_v39 = vpop.f32.mrb[38].mxu1 }
 0x1aa   :  { %v895_v38 = vadd.f32 %v894_v14, %v6249_v34  ;;  %v896_v41 = vpop.f32.mrb[39].mxu0  ;;  %v1008_v45 = vadd.f32 %v1007_v39, %v6254_v35  ;;  %v1009_v62 = vpop.f32.mrb[39].mxu1  ;;  %v1092_v9 = vmax.f32 %v891_v1, 0.0  ;;  %v1094_v27 = vmax.f32 %v1004_v11, 0.0 }
 0x1ab   :  { %v897_v26 = vadd.f32 %v896_v41, %v6260_v8  ;;  %v1010_v24 = vadd.f32 %v1009_v62, %v6267_v60  ;;  %v1093_v18 = vmax.f32 %v893_v25, 0.0  ;;  %v1095_v17 = vmax.f32 %v1006_v19, 0.0 }
 0x1ac   :  { %v1100_v4 = vmax.f32 %v895_v38, 0.0  ;;  %v1102_v32 = vmax.f32 %v1008_v45, 0.0 }
 0x1ad   :  { %v1101_v36 = vmax.f32 %v897_v26, 0.0  ;;  %v1103_v37 = vmax.f32 %v1010_v24, 0.0 }
 0x1ae   :  { %v6299_v16 = vpack.c.bf16 %v1100_v4, %v1092_v9  ;;  %v6301_v14 = vpack.c.bf16 %v1102_v32, %v1094_v27 }
 0x1af   :  { %v6303_v15 = vpack.c.bf16 %v1101_v36, %v1093_v18  ;;  %v900_v39 = vpop.f32.mrb[40].mxu0  ;;  %v6305_v13 = vpack.c.bf16 %v1103_v37, %v1095_v17  ;;  %v1013_v38 = vpop.f32.mrb[40].mxu1 }
 0x1b0   :  { %7050 = vst [vmem:[#allocation25_spill] sm:$0xff] %v6301_v14  ;;  %v901_v1 = vadd.f32 %v900_v39, %v6249_v34  ;;  %v902_v41 = vpop.f32.mrb[41].mxu0  ;;  %v1014_v11 = vadd.f32 %v1013_v38, %v6254_v35  ;;  %v1015_v45 = vpop.f32.mrb[41].mxu1 }
 0x1b1   :  { %7051 = vst [vmem:[#allocation26_spill] sm:$0xff] %v6305_v13  ;;  %v903_v25 = vadd.f32 %v902_v41, %v6260_v8  ;;  %v904_v19 = vpop.f32.mrb[42].mxu0  ;;  %v1016_v26 = vadd.f32 %v1015_v45, %v6267_v60  ;;  %v1017_v9 = vpop.f32.mrb[42].mxu1 }
 0x1b2   :  { %v905_v62 = vadd.f32 %v904_v19, %v6249_v34  ;;  %v906_v4 = vpop.f32.mrb[43].mxu0  ;;  %v1018_v24 = vadd.f32 %v1017_v9, %v6254_v35  ;;  %v1019_v27 = vpop.f32.mrb[43].mxu1  ;;  %v1108_v18 = vmax.f32 %v901_v1, 0.0  ;;  %v1110_v37 = vmax.f32 %v1014_v11, 0.0 }
 0x1b3   :  { %v907_v17 = vadd.f32 %v906_v4, %v6260_v8  ;;  %v1020_v36 = vadd.f32 %v1019_v27, %v6267_v60  ;;  %v1109_v39 = vmax.f32 %v903_v25, 0.0  ;;  %v1111_v12 = vmax.f32 %v1016_v26, 0.0 }
 0x1b4   :  { %v1116_v32 = vmax.f32 %v905_v62, 0.0  ;;  %v1118_v38 = vmax.f32 %v1018_v24, 0.0 }
 0x1b5   :  { %v1117_v41 = vmax.f32 %v907_v17, 0.0  ;;  %v1119_v45 = vmax.f32 %v1020_v36, 0.0 }
 0x1b6   :  { %v6315_v14 = vpack.c.bf16 %v1116_v32, %v1108_v18  ;;  %v6317_v19 = vpack.c.bf16 %v1118_v38, %v1110_v37 }
 0x1b7   :  { %v6319_v13 = vpack.c.bf16 %v1117_v41, %v1109_v39  ;;  %v910_v9 = vpop.f32.mrb[44].mxu0  ;;  %v6321_v29 = vpack.c.bf16 %v1119_v45, %v1111_v12  ;;  %v1023_v62 = vpop.f32.mrb[44].mxu1 }
 0x1b8   :  { %7052 = vst [vmem:[#allocation27_spill] sm:$0xff] %v6315_v14  ;;  %7053 = vst [vmem:[#allocation28_spill] sm:$0xff] %v6317_v19  ;;  %v911_v1 = vadd.f32 %v910_v9, %v6249_v34  ;;  %v912_v4 = vpop.f32.mrb[45].mxu0  ;;  %v1024_v11 = vadd.f32 %v1023_v62, %v6254_v35  ;;  %v1025_v24 = vpop.f32.mrb[45].mxu1 }
 0x1b9   :  { %7054 = vst [vmem:[#allocation29_spill] sm:$0xff] %v6321_v29  ;;  %v913_v25 = vadd.f32 %v912_v4, %v6260_v8  ;;  %v914_v26 = vpop.f32.mrb[46].mxu0  ;;  %v1026_v17 = vadd.f32 %v1025_v24, %v6267_v60  ;;  %v1027_v18 = vpop.f32.mrb[46].mxu1 }
 0x1ba   :  { %v915_v27 = vadd.f32 %v914_v26, %v6249_v34  ;;  %v916_v32 = vpop.f32.mrb[47].mxu0  ;;  %v1028_v36 = vadd.f32 %v1027_v18, %v6254_v35  ;;  %v1029_v37 = vpop.f32.mrb[47].mxu1  ;;  %v1124_v39 = vmax.f32 %v911_v1, 0.0  ;;  %v1126_v45 = vmax.f32 %v1024_v11, 0.0 }
 0x1bb   :  { %v917_v12 = vadd.f32 %v916_v32, %v6260_v8  ;;  %v1030_v41 = vadd.f32 %v1029_v37, %v6267_v60  ;;  %v1125_v9 = vmax.f32 %v913_v25, 0.0  ;;  %v1127_v19 = vmax.f32 %v1026_v17, 0.0 }
 0x1bc   :  { %v1132_v38 = vmax.f32 %v915_v27, 0.0  ;;  %v1134_v62 = vmax.f32 %v1028_v36, 0.0 }
 0x1bd   :  { %v1133_v4 = vmax.f32 %v917_v12, 0.0  ;;  %v1135_v24 = vmax.f32 %v1030_v41, 0.0 }
 0x1be   :  { %v6331_v29 = vpack.c.bf16 %v1132_v38, %v1124_v39  ;;  %v6333_v26 = vpack.c.bf16 %v1134_v62, %v1126_v45 }
 0x1bf   :  { %v6335_v48 = vpack.c.bf16 %v1133_v4, %v1125_v9  ;;  %v920_v18 = vpop.f32.mrb[48].mxu0  ;;  %v6337_v14 = vpack.c.bf16 %v1135_v24, %v1127_v19  ;;  %v1033_v27 = vpop.f32.mrb[48].mxu1 }
 0x1c0   :  { %7055 = vst [vmem:[#allocation30_spill] sm:$0xff] %v6331_v29  ;;  %7056 = vst [vmem:[#allocation31_spill] sm:$0xff] %v6333_v26  ;;  %v921_v1 = vadd.f32 %v920_v18, %v6249_v34  ;;  %v922_v32 = vpop.f32.mrb[49].mxu0  ;;  %v1034_v11 = vadd.f32 %v1033_v27, %v6254_v35  ;;  %v1035_v36 = vpop.f32.mrb[49].mxu1 }
 0x1c1   :  { %7057 = vst [vmem:[#allocation32_spill] sm:$0xff] %v6335_v48  ;;  %7058 = vst [vmem:[#allocation33_spill] sm:$0xff] %v6337_v14  ;;  %v923_v25 = vadd.f32 %v922_v32, %v6260_v8  ;;  %v924_v17 = vpop.f32.mrb[50].mxu0  ;;  %v1036_v12 = vadd.f32 %v1035_v36, %v6267_v60  ;;  %v1037_v39 = vpop.f32.mrb[50].mxu1 }
 0x1c2   :  { %v925_v37 = vadd.f32 %v924_v17, %v6249_v34  ;;  %v926_v38 = vpop.f32.mrb[51].mxu0  ;;  %v1038_v41 = vadd.f32 %v1037_v39, %v6254_v35  ;;  %v1039_v45 = vpop.f32.mrb[51].mxu1  ;;  %v1140_v9 = vmax.f32 %v921_v1, 0.0  ;;  %v1142_v24 = vmax.f32 %v1034_v11, 0.0 }
 0x1c3   :  { %v927_v19 = vadd.f32 %v926_v38, %v6260_v8  ;;  %v1040_v4 = vadd.f32 %v1039_v45, %v6267_v60  ;;  %v1141_v18 = vmax.f32 %v923_v25, 0.0  ;;  %v1143_v26 = vmax.f32 %v1036_v12, 0.0 }
 0x1c4   :  { %v1148_v62 = vmax.f32 %v925_v37, 0.0  ;;  %v1150_v27 = vmax.f32 %v1038_v41, 0.0 }
 0x1c5   :  { %v1149_v32 = vmax.f32 %v927_v19, 0.0  ;;  %v1151_v36 = vmax.f32 %v1040_v4, 0.0 }
 0x1c6   :  { %v6347_v14 = vpack.c.bf16 %v1148_v62, %v1140_v9  ;;  %v6349_v17 = vpack.c.bf16 %v1150_v27, %v1142_v24 }
 0x1c7   :  { %v6351_v29 = vpack.c.bf16 %v1149_v32, %v1141_v18  ;;  %v930_v39 = vpop.f32.mrb[52].mxu0  ;;  %v6353_v48 = vpack.c.bf16 %v1151_v36, %v1143_v26  ;;  %v1043_v37 = vpop.f32.mrb[52].mxu1 }
 0x1c8   :  { %7059 = vst [vmem:[#allocation34_spill] sm:$0xff] %v6347_v14  ;;  %7060 = vst [vmem:[#allocation35_spill] sm:$0xff] %v6349_v17  ;;  %v931_v1 = vadd.f32 %v930_v39, %v6249_v34  ;;  %v932_v38 = vpop.f32.mrb[53].mxu0  ;;  %v1044_v11 = vadd.f32 %v1043_v37, %v6254_v35  ;;  %v1045_v41 = vpop.f32.mrb[53].mxu1 }
 0x1c9   :  { %7061 = vst [vmem:[#allocation36_spill] sm:$0xff] %v6351_v29  ;;  %7062 = vst [vmem:[#allocation37_spill] sm:$0xff] %v6353_v48  ;;  %v933_v25 = vadd.f32 %v932_v38, %v6260_v8  ;;  %v934_v12 = vpop.f32.mrb[54].mxu0  ;;  %v1046_v19 = vadd.f32 %v1045_v41, %v6267_v60  ;;  %v1047_v9 = vpop.f32.mrb[54].mxu1 }
 0x1ca   :  { %v935_v45 = vadd.f32 %v934_v12, %v6249_v34  ;;  %v936_v62 = vpop.f32.mrb[55].mxu0  ;;  %v1048_v4 = vadd.f32 %v1047_v9, %v6254_v35  ;;  %v1049_v24 = vpop.f32.mrb[55].mxu1  ;;  %v1156_v18 = vmax.f32 %v931_v1, 0.0  ;;  %v1158_v36 = vmax.f32 %v1044_v11, 0.0 }
 0x1cb   :  { %v937_v26 = vadd.f32 %v936_v62, %v6260_v8  ;;  %v1050_v32 = vadd.f32 %v1049_v24, %v6267_v60  ;;  %v1157_v39 = vmax.f32 %v933_v25, 0.0  ;;  %v1159_v17 = vmax.f32 %v1046_v19, 0.0 }
 0x1cc   :  { %v1164_v27 = vmax.f32 %v935_v45, 0.0  ;;  %v1166_v37 = vmax.f32 %v1048_v4, 0.0 }
 0x1cd   :  { %v1165_v38 = vmax.f32 %v937_v26, 0.0  ;;  %v1167_v41 = vmax.f32 %v1050_v32, 0.0 }
 0x1ce   :  { %v6363_v48 = vpack.c.bf16 %v1164_v27, %v1156_v18  ;;  %v6365_v12 = vpack.c.bf16 %v1166_v37, %v1158_v36 }
 0x1cf   :  { %v6367_v14 = vpack.c.bf16 %v1165_v38, %v1157_v39  ;;  %v940_v9 = vpop.f32.mrb[56].mxu0  ;;  %v6369_v29 = vpack.c.bf16 %v1167_v41, %v1159_v17  ;;  %v1053_v45 = vpop.f32.mrb[56].mxu1 }
 0x1d0   :  { %7063 = vst [vmem:[#allocation38_spill] sm:$0xff] %v6363_v48  ;;  %7064 = vst [vmem:[#allocation39_spill] sm:$0xff] %v6365_v12  ;;  %v941_v1 = vadd.f32 %v940_v9, %v6249_v34  ;;  %v942_v62 = vpop.f32.mrb[57].mxu0  ;;  %v1054_v11 = vadd.f32 %v1053_v45, %v6254_v35  ;;  %v1055_v4 = vpop.f32.mrb[57].mxu1 }
 0x1d1   :  { %7065 = vst [vmem:[#allocation40_spill] sm:$0xff] %v6367_v14  ;;  %7066 = vst [vmem:[#allocation41_spill] sm:$0xff] %v6369_v29  ;;  %v943_v25 = vadd.f32 %v942_v62, %v6260_v8  ;;  %v944_v19 = vpop.f32.mrb[58].mxu0  ;;  %v1056_v26 = vadd.f32 %v1055_v4, %v6267_v60  ;;  %v1057_v18 = vpop.f32.mrb[58].mxu1 }
 0x1d2   :  { %v945_v24 = vadd.f32 %v944_v19, %v6249_v34  ;;  %v946_v27 = vpop.f32.mrb[59].mxu0  ;;  %v1058_v32 = vadd.f32 %v1057_v18, %v6254_v35  ;;  %v1059_v36 = vpop.f32.mrb[59].mxu1  ;;  %v1172_v39 = vmax.f32 %v941_v1, 0.0  ;;  %v1174_v41 = vmax.f32 %v1054_v11, 0.0 }
 0x1d3   :  { %v947_v17 = vadd.f32 %v946_v27, %v6260_v8  ;;  %v1060_v38 = vadd.f32 %v1059_v36, %v6267_v60  ;;  %v1173_v9 = vmax.f32 %v943_v25, 0.0  ;;  %v1175_v12 = vmax.f32 %v1056_v26, 0.0 }
 0x1d4   :  { %v1180_v37 = vmax.f32 %v945_v24, 0.0  ;;  %v1182_v45 = vmax.f32 %v1058_v32, 0.0 }
 0x1d5   :  { %v1181_v62 = vmax.f32 %v947_v17, 0.0  ;;  %v1183_v4 = vmax.f32 %v1060_v38, 0.0 }
 0x1d6   :  { %v6379_v29 = vpack.c.bf16 %v1180_v37, %v1172_v39  ;;  %v6381_v19 = vpack.c.bf16 %v1182_v45, %v1174_v41 }
 0x1d7   :  { %v6383_v48 = vpack.c.bf16 %v1181_v62, %v1173_v9  ;;  %v950_v18 = vpop.f32.mrb[60].mxu0  ;;  %v6385_v14 = vpack.c.bf16 %v1183_v4, %v1175_v12  ;;  %v1063_v24 = vpop.f32.mrb[60].mxu1 }
 0x1d8   :  { %7067 = vst [vmem:[#allocation42_spill] sm:$0xff] %v6381_v19  ;;  %v951_v1 = vadd.f32 %v950_v18, %v6249_v34  ;;  %v952_v27 = vpop.f32.mrb[61].mxu0  ;;  %v1064_v11 = vadd.f32 %v1063_v24, %v6254_v35  ;;  %v1065_v32 = vpop.f32.mrb[61].mxu1 }
 0x1d9   :  { %7068 = vst [vmem:[#allocation43_spill] sm:$0xff] %v6385_v14  ;;  %v953_v25 = vadd.f32 %v952_v27, %v6260_v8  ;;  %v954_v26 = vpop.f32.mrb[62].mxu0  ;;  %v1066_v17 = vadd.f32 %v1065_v32, %v6267_v60  ;;  %v1067_v39 = vpop.f32.mrb[62].mxu1 }
 0x1da   :  { %v955_v36 = vadd.f32 %v954_v26, %v6249_v34  ;;  %v956_v37 = vpop.f32.mrb[63].mxu0  ;;  %v1068_v38 = vadd.f32 %v1067_v39, %v6254_v35  ;;  %v1069_v41 = vpop.f32.mrb[63].mxu1  ;;  %v1188_v9 = vmax.f32 %v951_v1, 0.0  ;;  %v1190_v4 = vmax.f32 %v1064_v11, 0.0 }
 0x1db   :  { %v957_v12 = vadd.f32 %v956_v37, %v6260_v8  ;;  %v1070_v62 = vadd.f32 %v1069_v41, %v6267_v60  ;;  %v1189_v18 = vmax.f32 %v953_v25, 0.0  ;;  %v1191_v19 = vmax.f32 %v1066_v17, 0.0 }
 0x1dc   :  { %v1196_v45 = vmax.f32 %v955_v36, 0.0  ;;  %v1198_v24 = vmax.f32 %v1068_v38, 0.0 }
 0x1dd   :  { %v1197_v27 = vmax.f32 %v957_v12, 0.0  ;;  %v1199_v32 = vmax.f32 %v1070_v62, 0.0 }
 0x1de   :  { %v6395_v14 = vpack.c.bf16 %v1196_v45, %v1188_v9  ;;  %v6397_v34 = vpack.c.bf16 %v1198_v24, %v1190_v4 }
 0x1df   :  { %v6399_v26 = vpack.c.bf16 %v1197_v27, %v1189_v18  ;;  %v6401_v35 = vpack.c.bf16 %v1199_v32, %v1191_v19 }
 0x1e0   :  { %5909 = dma.done.wait [#allocation3], 65536 }
 0x1e1   :  { %5910 = vsyncadd [#allocation3], 4294901760  ;;  %1857 = vmatprep.mubr.bf16.mxu0 %v6135_v47  ;;  %2309 = vmatprep.mubr.bf16.mxu1 %v6135_v47  ;;  %v1272_v8 = vld [vmem:[#allocation2 + $0x8] sm:$0xff]  ;;  %v1274_v60 = vld [vmem:[#allocation2 + $0x18] sm:$0xff] }
 0x1e2   :  { %v1271_v1 = vld [vmem:[#allocation2] sm:$0xff]  ;;  %1825 = vmatprep.subr.bf16.mxu0 %v1272_v8  ;;  %2277 = vmatprep.subr.bf16.mxu1 %v1274_v60  ;;  %v1273_v11 = vld [vmem:[#allocation2 + $0x10] sm:$0xff]  ;;  %v1280_v25 = vld [vmem:[#allocation2 + $0x48] sm:$0xff] }
 0x1e3   :  { %v1282_v17 = vld [vmem:[#allocation2 + $0x58] sm:$0xff]  ;;  %1826 = vmatpush1.bf16.msra.mxu0 %v1271_v1  ;;  %2278 = vmatpush1.bf16.msra.mxu1 %v1273_v11  ;;  %v1279_v19 = vld [vmem:[#allocation2 + $0x40] sm:$0xff]  ;;  %v1281_v36 = vld [vmem:[#allocation2 + $0x50] sm:$0xff] }
 0x1e4   :  { %1827 = vmatprep.subr.bf16.mxu0 %v1280_v25  ;;  %2279 = vmatprep.subr.bf16.mxu1 %v1282_v17  ;;  %v1288_v39 = vld [vmem:[#allocation2 + $0x88] sm:$0xff]  ;;  %v1290_v37 = vld [vmem:[#allocation2 + $0x98] sm:$0xff]  ;;  %v1287_v38 = vld [vmem:[#allocation2 + $0x80] sm:$0xff] }
 0x1e5   :  { %v1289_v12 = vld [vmem:[#allocation2 + $0x90] sm:$0xff]  ;;  %v1296_v41 = vld [vmem:[#allocation2 + $0xc8] sm:$0xff]  ;;  %v1298_v9 = vld [vmem:[#allocation2 + $0xd8] sm:$0xff] }
 0x1e6   :  { %v1295_v45 = vld [vmem:[#allocation2 + $0xc0] sm:$0xff]  ;;  %v1297_v62 = vld [vmem:[#allocation2 + $0xd0] sm:$0xff]  ;;  %v1304_v4 = vld [vmem:[#allocation2 + $0x108] sm:$0xff] }
 0x1e7   :  { %1828 = vmatpush1.bf16.msra.mxu0 %v1279_v19  ;;  %2280 = vmatpush1.bf16.msra.mxu1 %v1281_v36  ;;  %v1306_v18 = vld [vmem:[#allocation2 + $0x118] sm:$0xff]  ;;  %v1303_v24 = vld [vmem:[#allocation2 + $0x100] sm:$0xff]  ;;  %v1305_v27 = vld [vmem:[#allocation2 + $0x110] sm:$0xff] }
 0x1e8   :  { %1829 = vmatprep.subr.bf16.mxu0 %v1288_v39  ;;  %2281 = vmatprep.subr.bf16.mxu1 %v1290_v37  ;;  %v1312_v32 = vld [vmem:[#allocation2 + $0x148] sm:$0xff]  ;;  %v1314_v8 = vld [vmem:[#allocation2 + $0x158] sm:$0xff]  ;;  %v1311_v60 = vld [vmem:[#allocation2 + $0x140] sm:$0xff] }
 0x1e9   :  { %v1313_v1 = vld [vmem:[#allocation2 + $0x150] sm:$0xff]  ;;  %v1320_v11 = vld [vmem:[#allocation2 + $0x188] sm:$0xff]  ;;  %v1322_v25 = vld [vmem:[#allocation2 + $0x198] sm:$0xff] }
 0x1ea   :  { %v1319_v17 = vld [vmem:[#allocation2 + $0x180] sm:$0xff]  ;;  %v1321_v19 = vld [vmem:[#allocation2 + $0x190] sm:$0xff]  ;;  %v1328_v36 = vld [vmem:[#allocation2 + $0x1c8] sm:$0xff] }
 0x1eb   :  { %1830 = vmatpush1.bf16.msra.mxu0 %v1287_v38  ;;  %2282 = vmatpush1.bf16.msra.mxu1 %v1289_v12  ;;  %v1330_v39 = vld [vmem:[#allocation2 + $0x1d8] sm:$0xff]  ;;  %v1327_v37 = vld [vmem:[#allocation2 + $0x1c0] sm:$0xff]  ;;  %v1329_v38 = vld [vmem:[#allocation2 + $0x1d0] sm:$0xff] }
 0x1ec   :  { %1831 = vmatprep.subr.bf16.mxu0 %v1296_v41  ;;  %2283 = vmatprep.subr.bf16.mxu1 %v1298_v9  ;;  %v1336_v12 = vld [vmem:[#allocation2 + $0x208] sm:$0xff]  ;;  %v1338_v41 = vld [vmem:[#allocation2 + $0x218] sm:$0xff]  ;;  %v1335_v9 = vld [vmem:[#allocation2 + $0x200] sm:$0xff] }
 0x1ef   :  { %1832 = vmatpush1.bf16.msra.mxu0 %v1295_v45  ;;  %2284 = vmatpush1.bf16.msra.mxu1 %v1297_v62  ;;  %v1337_v45 = vld [vmem:[#allocation2 + $0x210] sm:$0xff]  ;;  %v1344_v62 = vld [vmem:[#allocation2 + $0x248] sm:$0xff] }
 0x1f0   :  { %1833 = vmatprep.subr.bf16.mxu0 %v1304_v4  ;;  %2285 = vmatprep.subr.bf16.mxu1 %v1306_v18  ;;  %v1346_v4 = vld [vmem:[#allocation2 + $0x258] sm:$0xff]  ;;  %v1343_v18 = vld [vmem:[#allocation2 + $0x240] sm:$0xff] }
 0x1f3   :  { %1834 = vmatpush1.bf16.msra.mxu0 %v1303_v24  ;;  %2286 = vmatpush1.bf16.msra.mxu1 %v1305_v27  ;;  %v1345_v24 = vld [vmem:[#allocation2 + $0x250] sm:$0xff]  ;;  %v1352_v27 = vld [vmem:[#allocation2 + $0x288] sm:$0xff] }
 0x1f4   :  { %1835 = vmatprep.subr.bf16.mxu0 %v1312_v32  ;;  %2287 = vmatprep.subr.bf16.mxu1 %v1314_v8  ;;  %v1354_v32 = vld [vmem:[#allocation2 + $0x298] sm:$0xff]  ;;  %v1351_v8 = vld [vmem:[#allocation2 + $0x280] sm:$0xff] }
 0x1f7   :  { %1836 = vmatpush1.bf16.msra.mxu0 %v1311_v60  ;;  %2288 = vmatpush1.bf16.msra.mxu1 %v1313_v1  ;;  %v1353_v60 = vld [vmem:[#allocation2 + $0x290] sm:$0xff]  ;;  %v1360_v1 = vld [vmem:[#allocation2 + $0x2c8] sm:$0xff] }
 0x1f8   :  { %1837 = vmatprep.subr.bf16.mxu0 %v1320_v11  ;;  %2289 = vmatprep.subr.bf16.mxu1 %v1322_v25  ;;  %v1362_v11 = vld [vmem:[#allocation2 + $0x2d8] sm:$0xff]  ;;  %v1359_v25 = vld [vmem:[#allocation2 + $0x2c0] sm:$0xff] }
 0x1fb   :  { %1838 = vmatpush1.bf16.msra.mxu0 %v1319_v17  ;;  %2290 = vmatpush1.bf16.msra.mxu1 %v1321_v19  ;;  %v1361_v17 = vld [vmem:[#allocation2 + $0x2d0] sm:$0xff]  ;;  %v1368_v19 = vld [vmem:[#allocation2 + $0x308] sm:$0xff] }
 0x1fc   :  { %1839 = vmatprep.subr.bf16.mxu0 %v1328_v36  ;;  %2291 = vmatprep.subr.bf16.mxu1 %v1330_v39  ;;  %v1370_v36 = vld [vmem:[#allocation2 + $0x318] sm:$0xff]  ;;  %v1367_v39 = vld [vmem:[#allocation2 + $0x300] sm:$0xff] }
 0x1ff   :  { %1840 = vmatpush1.bf16.msra.mxu0 %v1327_v37  ;;  %2292 = vmatpush1.bf16.msra.mxu1 %v1329_v38  ;;  %v1369_v37 = vld [vmem:[#allocation2 + $0x310] sm:$0xff]  ;;  %v1376_v38 = vld [vmem:[#allocation2 + $0x348] sm:$0xff] }
 0x200   :  { %1841 = vmatprep.subr.bf16.mxu0 %v1336_v12  ;;  %2293 = vmatprep.subr.bf16.mxu1 %v1338_v41  ;;  %v1378_v12 = vld [vmem:[#allocation2 + $0x358] sm:$0xff]  ;;  %v1375_v41 = vld [vmem:[#allocation2 + $0x340] sm:$0xff] }
 0x203   :  { %1842 = vmatpush1.bf16.msra.mxu0 %v1335_v9  ;;  %2294 = vmatpush1.bf16.msra.mxu1 %v1337_v45  ;;  %v1377_v9 = vld [vmem:[#allocation2 + $0x350] sm:$0xff]  ;;  %v1384_v45 = vld [vmem:[#allocation2 + $0x388] sm:$0xff] }
 0x204   :  { %1843 = vmatprep.subr.bf16.mxu0 %v1344_v62  ;;  %2295 = vmatprep.subr.bf16.mxu1 %v1346_v4  ;;  %v1386_v62 = vld [vmem:[#allocation2 + $0x398] sm:$0xff]  ;;  %v1383_v4 = vld [vmem:[#allocation2 + $0x380] sm:$0xff] }
 0x207   :  { %1844 = vmatpush1.bf16.msra.mxu0 %v1343_v18  ;;  %2296 = vmatpush1.bf16.msra.mxu1 %v1345_v24  ;;  %v1385_v18 = vld [vmem:[#allocation2 + $0x390] sm:$0xff]  ;;  %v1392_v24 = vld [vmem:[#allocation2 + $0x3c8] sm:$0xff] }
 0x208   :  { %1845 = vmatprep.subr.bf16.mxu0 %v1352_v27  ;;  %2297 = vmatprep.subr.bf16.mxu1 %v1354_v32  ;;  %v1394_v27 = vld [vmem:[#allocation2 + $0x3d8] sm:$0xff]  ;;  %v1391_v32 = vld [vmem:[#allocation2 + $0x3c0] sm:$0xff] }
 0x20b   :  { %1846 = vmatpush1.bf16.msra.mxu0 %v1351_v8  ;;  %2298 = vmatpush1.bf16.msra.mxu1 %v1353_v60  ;;  %v1393_v8 = vld [vmem:[#allocation2 + $0x3d0] sm:$0xff]  ;;  %v1400_v60 = vld [vmem:[#allocation2 + $0x408] sm:$0xff] }
 0x20c   :  { %1847 = vmatprep.subr.bf16.mxu0 %v1360_v1  ;;  %2299 = vmatprep.subr.bf16.mxu1 %v1362_v11  ;;  %v1402_v1 = vld [vmem:[#allocation2 + $0x418] sm:$0xff]  ;;  %v1399_v11 = vld [vmem:[#allocation2 + $0x400] sm:$0xff] }
 0x20f   :  { %1848 = vmatpush1.bf16.msra.mxu0 %v1359_v25  ;;  %2300 = vmatpush1.bf16.msra.mxu1 %v1361_v17  ;;  %v1401_v25 = vld [vmem:[#allocation2 + $0x410] sm:$0xff]  ;;  %v1408_v17 = vld [vmem:[#allocation2 + $0x448] sm:$0xff] }
 0x210   :  { %1849 = vmatprep.subr.bf16.mxu0 %v1368_v19  ;;  %2301 = vmatprep.subr.bf16.mxu1 %v1370_v36  ;;  %v1410_v19 = vld [vmem:[#allocation2 + $0x458] sm:$0xff]  ;;  %v1407_v36 = vld [vmem:[#allocation2 + $0x440] sm:$0xff] }
 0x213   :  { %1850 = vmatpush1.bf16.msra.mxu0 %v1367_v39  ;;  %2302 = vmatpush1.bf16.msra.mxu1 %v1369_v37  ;;  %v1409_v39 = vld [vmem:[#allocation2 + $0x450] sm:$0xff]  ;;  %v1416_v37 = vld [vmem:[#allocation2 + $0x488] sm:$0xff] }
 0x214   :  { %1851 = vmatprep.subr.bf16.mxu0 %v1376_v38  ;;  %2303 = vmatprep.subr.bf16.mxu1 %v1378_v12  ;;  %v1418_v38 = vld [vmem:[#allocation2 + $0x498] sm:$0xff]  ;;  %v1415_v12 = vld [vmem:[#allocation2 + $0x480] sm:$0xff] }
 0x217   :  { %1852 = vmatpush1.bf16.msra.mxu0 %v1375_v41  ;;  %2304 = vmatpush1.bf16.msra.mxu1 %v1377_v9  ;;  %v1417_v41 = vld [vmem:[#allocation2 + $0x490] sm:$0xff]  ;;  %v1424_v9 = vld [vmem:[#allocation2 + $0x4c8] sm:$0xff] }
 0x218   :  { %1853 = vmatprep.subr.bf16.mxu0 %v1384_v45  ;;  %2305 = vmatprep.subr.bf16.mxu1 %v1386_v62  ;;  %v1426_v45 = vld [vmem:[#allocation2 + $0x4d8] sm:$0xff]  ;;  %v1423_v62 = vld [vmem:[#allocation2 + $0x4c0] sm:$0xff] }
 0x21b   :  { %1854 = vmatpush1.bf16.msra.mxu0 %v1383_v4  ;;  %2306 = vmatpush1.bf16.msra.mxu1 %v1385_v18  ;;  %v1425_v4 = vld [vmem:[#allocation2 + $0x4d0] sm:$0xff]  ;;  %v1432_v18 = vld [vmem:[#allocation2 + $0x508] sm:$0xff] }
 0x21c   :  { %1855 = vmatprep.subr.bf16.mxu0 %v1392_v24  ;;  %2307 = vmatprep.subr.bf16.mxu1 %v1394_v27  ;;  %v1434_v24 = vld [vmem:[#allocation2 + $0x518] sm:$0xff]  ;;  %v1431_v27 = vld [vmem:[#allocation2 + $0x500] sm:$0xff] }
 0x21f   :  { %1856 = vmatpush1.bf16.msra.mxu0 %v1391_v32  ;;  %2308 = vmatpush1.bf16.msra.mxu1 %v1393_v8  ;;  %v1433_v32 = vld [vmem:[#allocation2 + $0x510] sm:$0xff]  ;;  %v1440_v8 = vld [vmem:[#allocation2 + $0x548] sm:$0xff] }
 0x220   :  { %1938 = vmatprep.subr.bf16.mxu0 %v1400_v60  ;;  %2390 = vmatprep.subr.bf16.mxu1 %v1402_v1  ;;  %v1442_v60 = vld [vmem:[#allocation2 + $0x558] sm:$0xff]  ;;  %v1439_v1 = vld [vmem:[#allocation2 + $0x540] sm:$0xff] }
 0x222   :  { %1858 = vmatmul.mubr.bf16.vlgmr.msra.gmra.mrb[64].mxu0 %v6131_v44  ;;  %2310 = vmatmul.mubr.bf16.vlgmr.msra.gmra.mrb[64].mxu1 %v6131_v44 }
 0x223   :  { %1939 = vmatpush1.bf16.msra.mxu0 %v1399_v11  ;;  %2391 = vmatpush1.bf16.msra.mxu1 %v1401_v25  ;;  %v1441_v11 = vld [vmem:[#allocation2 + $0x550] sm:$0xff]  ;;  %v1448_v25 = vld [vmem:[#allocation2 + $0x588] sm:$0xff] }
 0x224   :  { %1940 = vmatprep.subr.bf16.mxu0 %v1408_v17  ;;  %2392 = vmatprep.subr.bf16.mxu1 %v1410_v19  ;;  %v1450_v17 = vld [vmem:[#allocation2 + $0x598] sm:$0xff]  ;;  %v1447_v19 = vld [vmem:[#allocation2 + $0x580] sm:$0xff] }
 0x225   :  { %1867 = vmatprep.mubr.bf16.mxu0 %v6151_v21  ;;  %2319 = vmatprep.mubr.bf16.mxu1 %v6151_v21 }
 0x227   :  { %1941 = vmatpush1.bf16.msra.mxu0 %v1407_v36  ;;  %2393 = vmatpush1.bf16.msra.mxu1 %v1409_v39  ;;  %v1449_v36 = vld [vmem:[#allocation2 + $0x590] sm:$0xff]  ;;  %v1456_v39 = vld [vmem:[#allocation2 + $0x5c8] sm:$0xff] }
 0x228   :  { %1942 = vmatprep.subr.bf16.mxu0 %v1416_v37  ;;  %2394 = vmatprep.subr.bf16.mxu1 %v1418_v38  ;;  %v1458_v37 = vld [vmem:[#allocation2 + $0x5d8] sm:$0xff]  ;;  %v1455_v38 = vld [vmem:[#allocation2 + $0x5c0] sm:$0xff] }
 0x22a   :  { %1868 = vmatmul.mubr.bf16.gmra.mrb[68].mxu0 %v6147_v10  ;;  %2320 = vmatmul.mubr.bf16.gmra.mrb[68].mxu1 %v6147_v10 }
 0x22b   :  { %1943 = vmatpush1.bf16.msra.mxu0 %v1415_v12  ;;  %2395 = vmatpush1.bf16.msra.mxu1 %v1417_v41  ;;  %v1457_v12 = vld [vmem:[#allocation2 + $0x5d0] sm:$0xff]  ;;  %v1464_v41 = vld [vmem:[#allocation2 + $0x608] sm:$0xff] }
 0x22c   :  { %1944 = vmatprep.subr.bf16.mxu0 %v1424_v9  ;;  %2396 = vmatprep.subr.bf16.mxu1 %v1426_v45  ;;  %v1466_v9 = vld [vmem:[#allocation2 + $0x618] sm:$0xff]  ;;  %v1463_v45 = vld [vmem:[#allocation2 + $0x600] sm:$0xff] }
 0x22d   :  { %1877 = vmatprep.mubr.bf16.mxu0 %v6167_v53  ;;  %2329 = vmatprep.mubr.bf16.mxu1 %v6167_v53 }
 0x22f   :  { %1945 = vmatpush1.bf16.msra.mxu0 %v1423_v62  ;;  %2397 = vmatpush1.bf16.msra.mxu1 %v1425_v4  ;;  %v1465_v62 = vld [vmem:[#allocation2 + $0x610] sm:$0xff]  ;;  %v1472_v4 = vld [vmem:[#allocation2 + $0x648] sm:$0xff] }
 0x230   :  { %1946 = vmatprep.subr.bf16.mxu0 %v1432_v18  ;;  %2398 = vmatprep.subr.bf16.mxu1 %v1434_v24  ;;  %v1474_v18 = vld [vmem:[#allocation2 + $0x658] sm:$0xff]  ;;  %v1471_v24 = vld [vmem:[#allocation2 + $0x640] sm:$0xff] }
 0x232   :  { %1878 = vmatmul.mubr.bf16.gmra.mrb[72].mxu0 %v6163_v50  ;;  %2330 = vmatmul.mubr.bf16.gmra.mrb[72].mxu1 %v6163_v50 }
 0x233   :  { %1947 = vmatpush1.bf16.msra.mxu0 %v1431_v27  ;;  %2399 = vmatpush1.bf16.msra.mxu1 %v1433_v32  ;;  %v1473_v27 = vld [vmem:[#allocation2 + $0x650] sm:$0xff]  ;;  %v1480_v32 = vld [vmem:[#allocation2 + $0x688] sm:$0xff] }
 0x234   :  { %1948 = vmatprep.subr.bf16.mxu0 %v1440_v8  ;;  %2400 = vmatprep.subr.bf16.mxu1 %v1442_v60  ;;  %v1482_v8 = vld [vmem:[#allocation2 + $0x698] sm:$0xff]  ;;  %v1479_v60 = vld [vmem:[#allocation2 + $0x680] sm:$0xff] }
 0x235   :  { %1887 = vmatprep.mubr.bf16.mxu0 %v6183_v31  ;;  %2339 = vmatprep.mubr.bf16.mxu1 %v6183_v31 }
 0x237   :  { %1949 = vmatpush1.bf16.msra.mxu0 %v1439_v1  ;;  %2401 = vmatpush1.bf16.msra.mxu1 %v1441_v11  ;;  %v1481_v1 = vld [vmem:[#allocation2 + $0x690] sm:$0xff]  ;;  %v1488_v11 = vld [vmem:[#allocation2 + $0x6c8] sm:$0xff] }
 0x238   :  { %1950 = vmatprep.subr.bf16.mxu0 %v1448_v25  ;;  %2402 = vmatprep.subr.bf16.mxu1 %v1450_v17  ;;  %v1490_v25 = vld [vmem:[#allocation2 + $0x6d8] sm:$0xff]  ;;  %v1487_v17 = vld [vmem:[#allocation2 + $0x6c0] sm:$0xff] }
 0x23a   :  { %1888 = vmatmul.mubr.bf16.gmra.mrb[76].mxu0 %v6179_v28  ;;  %2340 = vmatmul.mubr.bf16.gmra.mrb[76].mxu1 %v6179_v28 }
 0x23b   :  { %1951 = vmatpush1.bf16.msra.mxu0 %v1447_v19  ;;  %2403 = vmatpush1.bf16.msra.mxu1 %v1449_v36  ;;  %v1489_v19 = vld [vmem:[#allocation2 + $0x6d0] sm:$0xff]  ;;  %v1496_v36 = vld [vmem:[#allocation2 + $0x708] sm:$0xff] }
 0x23c   :  { %1952 = vmatprep.subr.bf16.mxu0 %v1456_v39  ;;  %2404 = vmatprep.subr.bf16.mxu1 %v1458_v37  ;;  %v1498_v39 = vld [vmem:[#allocation2 + $0x718] sm:$0xff]  ;;  %v1495_v37 = vld [vmem:[#allocation2 + $0x700] sm:$0xff] }
 0x23d   :  { %1897 = vmatprep.mubr.bf16.mxu0 %v6199_v3  ;;  %2349 = vmatprep.mubr.bf16.mxu1 %v6199_v3 }
 0x23f   :  { %1953 = vmatpush1.bf16.msra.mxu0 %v1455_v38  ;;  %2405 = vmatpush1.bf16.msra.mxu1 %v1457_v12  ;;  %v1497_v38 = vld [vmem:[#allocation2 + $0x710] sm:$0xff]  ;;  %v1504_v12 = vld [vmem:[#allocation2 + $0x748] sm:$0xff] }
 0x240   :  { %1954 = vmatprep.subr.bf16.mxu0 %v1464_v41  ;;  %2406 = vmatprep.subr.bf16.mxu1 %v1466_v9  ;;  %v1506_v41 = vld [vmem:[#allocation2 + $0x758] sm:$0xff]  ;;  %v1503_v9 = vld [vmem:[#allocation2 + $0x740] sm:$0xff] }
 0x242   :  { %1898 = vmatmul.mubr.bf16.gmra.mrb[80].mxu0 %v6195_v0  ;;  %2350 = vmatmul.mubr.bf16.gmra.mrb[80].mxu1 %v6195_v0 }
 0x243   :  { %1955 = vmatpush1.bf16.msra.mxu0 %v1463_v45  ;;  %2407 = vmatpush1.bf16.msra.mxu1 %v1465_v62  ;;  %v1505_v45 = vld [vmem:[#allocation2 + $0x750] sm:$0xff]  ;;  %v1512_v62 = vld [vmem:[#allocation2 + $0x788] sm:$0xff] }
 0x244   :  { %1956 = vmatprep.subr.bf16.mxu0 %v1472_v4  ;;  %2408 = vmatprep.subr.bf16.mxu1 %v1474_v18  ;;  %v1514_v4 = vld [vmem:[#allocation2 + $0x798] sm:$0xff]  ;;  %v1511_v18 = vld [vmem:[#allocation2 + $0x780] sm:$0xff] }
 0x245   :  { %1907 = vmatprep.mubr.bf16.mxu0 %v6215_v57  ;;  %2359 = vmatprep.mubr.bf16.mxu1 %v6215_v57 }
 0x247   :  { %1957 = vmatpush1.bf16.msra.mxu0 %v1471_v24  ;;  %2409 = vmatpush1.bf16.msra.mxu1 %v1473_v27  ;;  %v1513_v24 = vld [vmem:[#allocation2 + $0x790] sm:$0xff]  ;;  %v1520_v27 = vld [vmem:[#allocation2 + $0x7c8] sm:$0xff] }
 0x248   :  { %1958 = vmatprep.subr.bf16.mxu0 %v1480_v32  ;;  %2410 = vmatprep.subr.bf16.mxu1 %v1482_v8  ;;  %v1522_v32 = vld [vmem:[#allocation2 + $0x7d8] sm:$0xff]  ;;  %v1519_v8 = vld [vmem:[#allocation2 + $0x7c0] sm:$0xff] }
 0x24a   :  { %1908 = vmatmul.mubr.bf16.gmra.mrb[84].mxu0 %v6211_v51  ;;  %2360 = vmatmul.mubr.bf16.gmra.mrb[84].mxu1 %v6211_v51 }
 0x24b   :  { %1959 = vmatpush1.bf16.msra.mxu0 %v1479_v60  ;;  %2411 = vmatpush1.bf16.msra.mxu1 %v1481_v1  ;;  %v1521_v60 = vld [vmem:[#allocation2 + $0x7d0] sm:$0xff]  ;;  %v1528_v1 = vld [vmem:[#allocation2 + $0x808] sm:$0xff] }
 0x24c   :  { %1960 = vmatprep.subr.bf16.mxu0 %v1488_v11  ;;  %2412 = vmatprep.subr.bf16.mxu1 %v1490_v25  ;;  %v1530_v11 = vld [vmem:[#allocation2 + $0x818] sm:$0xff]  ;;  %v1527_v25 = vld [vmem:[#allocation2 + $0x800] sm:$0xff] }
 0x24d   :  { %1917 = vmatprep.mubr.bf16.mxu0 %v6231_v43  ;;  %2369 = vmatprep.mubr.bf16.mxu1 %v6231_v43 }
 0x24f   :  { %1961 = vmatpush1.bf16.msra.mxu0 %v1487_v17  ;;  %2413 = vmatpush1.bf16.msra.mxu1 %v1489_v19  ;;  %v1529_v17 = vld [vmem:[#allocation2 + $0x810] sm:$0xff]  ;;  %v1536_v19 = vld [vmem:[#allocation2 + $0x848] sm:$0xff] }
 0x250   :  { %1962 = vmatprep.subr.bf16.mxu0 %v1496_v36  ;;  %2414 = vmatprep.subr.bf16.mxu1 %v1498_v39  ;;  %v1538_v36 = vld [vmem:[#allocation2 + $0x858] sm:$0xff]  ;;  %v1535_v39 = vld [vmem:[#allocation2 + $0x840] sm:$0xff] }
 0x252   :  { %1918 = vmatmul.mubr.bf16.gmra.mrb[88].mxu0 %v6227_v40  ;;  %2370 = vmatmul.mubr.bf16.gmra.mrb[88].mxu1 %v6227_v40 }
 0x253   :  { %1963 = vmatpush1.bf16.msra.mxu0 %v1495_v37  ;;  %2415 = vmatpush1.bf16.msra.mxu1 %v1497_v38  ;;  %v1537_v37 = vld [vmem:[#allocation2 + $0x850] sm:$0xff]  ;;  %v1544_v38 = vld [vmem:[#allocation2 + $0x888] sm:$0xff] }
 0x254   :  { %1964 = vmatprep.subr.bf16.mxu0 %v1504_v12  ;;  %2416 = vmatprep.subr.bf16.mxu1 %v1506_v41  ;;  %v1546_v12 = vld [vmem:[#allocation2 + $0x898] sm:$0xff]  ;;  %v1543_v41 = vld [vmem:[#allocation2 + $0x880] sm:$0xff] }
 0x255   :  { %1927 = vmatprep.mubr.bf16.mxu0 %v6271_v20  ;;  %2379 = vmatprep.mubr.bf16.mxu1 %v6271_v20 }
 0x257   :  { %1965 = vmatpush1.bf16.msra.mxu0 %v1503_v9  ;;  %2417 = vmatpush1.bf16.msra.mxu1 %v1505_v45  ;;  %v1545_v9 = vld [vmem:[#allocation2 + $0x890] sm:$0xff]  ;;  %v1552_v45 = vld [vmem:[#allocation2 + $0x8c8] sm:$0xff] }
 0x258   :  { %1966 = vmatprep.subr.bf16.mxu0 %v1512_v62  ;;  %2418 = vmatprep.subr.bf16.mxu1 %v1514_v4  ;;  %v1554_v62 = vld [vmem:[#allocation2 + $0x8d8] sm:$0xff]  ;;  %v1551_v4 = vld [vmem:[#allocation2 + $0x8c0] sm:$0xff] }
 0x25a   :  { %1928 = vmatmul.mubr.bf16.gmra.mrb[92].mxu0 %v6262_v61  ;;  %2380 = vmatmul.mubr.bf16.gmra.mrb[92].mxu1 %v6262_v61 }
 0x25b   :  { %1967 = vmatpush1.bf16.msra.mxu0 %v1511_v18  ;;  %2419 = vmatpush1.bf16.msra.mxu1 %v1513_v24  ;;  %v1553_v18 = vld [vmem:[#allocation2 + $0x8d0] sm:$0xff]  ;;  %v1560_v24 = vld [vmem:[#allocation2 + $0x908] sm:$0xff] }
 0x25c   :  { %1968 = vmatprep.subr.bf16.mxu0 %v1520_v27  ;;  %2420 = vmatprep.subr.bf16.mxu1 %v1522_v32  ;;  %v1562_v27 = vld [vmem:[#allocation2 + $0x918] sm:$0xff]  ;;  %v1559_v32 = vld [vmem:[#allocation2 + $0x900] sm:$0xff] }
 0x25d   :  { %1970 = vmatprep.mubr.bf16.mxu0 %v6137_v49  ;;  %2422 = vmatprep.mubr.bf16.mxu1 %v6137_v49 }
 0x25f   :  { %1969 = vmatpush1.bf16.msra.mxu0 %v1519_v8  ;;  %2421 = vmatpush1.bf16.msra.mxu1 %v1521_v60  ;;  %v1561_v8 = vld [vmem:[#allocation2 + $0x910] sm:$0xff]  ;;  %v1568_v60 = vld [vmem:[#allocation2 + $0x948] sm:$0xff] }
 0x260   :  { %2051 = vmatprep.subr.bf16.mxu0 %v1528_v1  ;;  %2503 = vmatprep.subr.bf16.mxu1 %v1530_v11  ;;  %v1570_v1 = vld [vmem:[#allocation2 + $0x958] sm:$0xff]  ;;  %v1567_v11 = vld [vmem:[#allocation2 + $0x940] sm:$0xff] }
 0x262   :  { %1971 = vmatmul.mubr.bf16.vlgmr.msra.gmra.mrb[64].mxu0 %v6133_v46  ;;  %2423 = vmatmul.mubr.bf16.vlgmr.msra.gmra.mrb[64].mxu1 %v6133_v46 }
 0x263   :  { %2052 = vmatpush1.bf16.msra.mxu0 %v1527_v25  ;;  %2504 = vmatpush1.bf16.msra.mxu1 %v1529_v17  ;;  %v1569_v25 = vld [vmem:[#allocation2 + $0x950] sm:$0xff]  ;;  %v1576_v17 = vld [vmem:[#allocation2 + $0x988] sm:$0xff] }
 0x264   :  { %2053 = vmatprep.subr.bf16.mxu0 %v1536_v19  ;;  %2505 = vmatprep.subr.bf16.mxu1 %v1538_v36  ;;  %v1578_v19 = vld [vmem:[#allocation2 + $0x998] sm:$0xff]  ;;  %v1575_v36 = vld [vmem:[#allocation2 + $0x980] sm:$0xff] }
 0x265   :  { %1980 = vmatprep.mubr.bf16.mxu0 %v6153_v23  ;;  %2432 = vmatprep.mubr.bf16.mxu1 %v6153_v23 }
 0x267   :  { %2054 = vmatpush1.bf16.msra.mxu0 %v1535_v39  ;;  %2506 = vmatpush1.bf16.msra.mxu1 %v1537_v37  ;;  %v1577_v39 = vld [vmem:[#allocation2 + $0x990] sm:$0xff]  ;;  %v1584_v37 = vld [vmem:[#allocation2 + $0x9c8] sm:$0xff] }
 0x268   :  { %2055 = vmatprep.subr.bf16.mxu0 %v1544_v38  ;;  %2507 = vmatprep.subr.bf16.mxu1 %v1546_v12  ;;  %v1586_v38 = vld [vmem:[#allocation2 + $0x9d8] sm:$0xff]  ;;  %v1583_v12 = vld [vmem:[#allocation2 + $0x9c0] sm:$0xff] }
 0x26a   :  { %1981 = vmatmul.mubr.bf16.gmra.mrb[68].mxu0 %v6149_v7  ;;  %2433 = vmatmul.mubr.bf16.gmra.mrb[68].mxu1 %v6149_v7 }
 0x26b   :  { %2056 = vmatpush1.bf16.msra.mxu0 %v1543_v41  ;;  %2508 = vmatpush1.bf16.msra.mxu1 %v1545_v9  ;;  %v1585_v41 = vld [vmem:[#allocation2 + $0x9d0] sm:$0xff]  ;;  %v1592_v9 = vld [vmem:[#allocation2 + $0xa08] sm:$0xff] }
 0x26c   :  { %2057 = vmatprep.subr.bf16.mxu0 %v1552_v45  ;;  %2509 = vmatprep.subr.bf16.mxu1 %v1554_v62  ;;  %v1594_v45 = vld [vmem:[#allocation2 + $0xa18] sm:$0xff]  ;;  %v1591_v62 = vld [vmem:[#allocation2 + $0xa00] sm:$0xff] }
 0x26d   :  { %1990 = vmatprep.mubr.bf16.mxu0 %v6169_v55  ;;  %2442 = vmatprep.mubr.bf16.mxu1 %v6169_v55 }
 0x26f   :  { %2058 = vmatpush1.bf16.msra.mxu0 %v1551_v4  ;;  %2510 = vmatpush1.bf16.msra.mxu1 %v1553_v18  ;;  %v1593_v4 = vld [vmem:[#allocation2 + $0xa10] sm:$0xff]  ;;  %v1600_v18 = vld [vmem:[#allocation2 + $0xa48] sm:$0xff] }
 0x270   :  { %2059 = vmatprep.subr.bf16.mxu0 %v1560_v24  ;;  %2511 = vmatprep.subr.bf16.mxu1 %v1562_v27  ;;  %v1602_v24 = vld [vmem:[#allocation2 + $0xa58] sm:$0xff]  ;;  %v1599_v27 = vld [vmem:[#allocation2 + $0xa40] sm:$0xff] }
 0x272   :  { %1991 = vmatmul.mubr.bf16.gmra.mrb[72].mxu0 %v6165_v52  ;;  %2443 = vmatmul.mubr.bf16.gmra.mrb[72].mxu1 %v6165_v52 }
 0x273   :  { %2060 = vmatpush1.bf16.msra.mxu0 %v1559_v32  ;;  %2512 = vmatpush1.bf16.msra.mxu1 %v1561_v8  ;;  %v1601_v32 = vld [vmem:[#allocation2 + $0xa50] sm:$0xff]  ;;  %v1608_v8 = vld [vmem:[#allocation2 + $0xa88] sm:$0xff] }
 0x274   :  { %2061 = vmatprep.subr.bf16.mxu0 %v1568_v60  ;;  %2513 = vmatprep.subr.bf16.mxu1 %v1570_v1  ;;  %v1610_v60 = vld [vmem:[#allocation2 + $0xa98] sm:$0xff]  ;;  %v1607_v1 = vld [vmem:[#allocation2 + $0xa80] sm:$0xff] }
 0x275   :  { %2000 = vmatprep.mubr.bf16.mxu0 %v6185_v33  ;;  %2452 = vmatprep.mubr.bf16.mxu1 %v6185_v33 }
 0x277   :  { %2062 = vmatpush1.bf16.msra.mxu0 %v1567_v11  ;;  %2514 = vmatpush1.bf16.msra.mxu1 %v1569_v25  ;;  %v1609_v11 = vld [vmem:[#allocation2 + $0xa90] sm:$0xff]  ;;  %v1616_v25 = vld [vmem:[#allocation2 + $0xac8] sm:$0xff] }
 0x278   :  { %2063 = vmatprep.subr.bf16.mxu0 %v1576_v17  ;;  %2515 = vmatprep.subr.bf16.mxu1 %v1578_v19  ;;  %v1618_v17 = vld [vmem:[#allocation2 + $0xad8] sm:$0xff]  ;;  %v1615_v19 = vld [vmem:[#allocation2 + $0xac0] sm:$0xff] }
 0x27a   :  { %2001 = vmatmul.mubr.bf16.gmra.mrb[76].mxu0 %v6181_v30  ;;  %2453 = vmatmul.mubr.bf16.gmra.mrb[76].mxu1 %v6181_v30 }
 0x27b   :  { %2064 = vmatpush1.bf16.msra.mxu0 %v1575_v36  ;;  %2516 = vmatpush1.bf16.msra.mxu1 %v1577_v39  ;;  %v1617_v36 = vld [vmem:[#allocation2 + $0xad0] sm:$0xff]  ;;  %v1624_v39 = vld [vmem:[#allocation2 + $0xb08] sm:$0xff] }
 0x27c   :  { %2065 = vmatprep.subr.bf16.mxu0 %v1584_v37  ;;  %2517 = vmatprep.subr.bf16.mxu1 %v1586_v38  ;;  %v1626_v37 = vld [vmem:[#allocation2 + $0xb18] sm:$0xff]  ;;  %v1623_v38 = vld [vmem:[#allocation2 + $0xb00] sm:$0xff] }
 0x27d   :  { %2010 = vmatprep.mubr.bf16.mxu0 %v6201_v5  ;;  %2462 = vmatprep.mubr.bf16.mxu1 %v6201_v5 }
 0x27f   :  { %2066 = vmatpush1.bf16.msra.mxu0 %v1583_v12  ;;  %2518 = vmatpush1.bf16.msra.mxu1 %v1585_v41  ;;  %v1625_v12 = vld [vmem:[#allocation2 + $0xb10] sm:$0xff]  ;;  %v1632_v41 = vld [vmem:[#allocation2 + $0xb48] sm:$0xff] }
 0x280   :  { %2067 = vmatprep.subr.bf16.mxu0 %v1592_v9  ;;  %2519 = vmatprep.subr.bf16.mxu1 %v1594_v45  ;;  %v1634_v9 = vld [vmem:[#allocation2 + $0xb58] sm:$0xff]  ;;  %v1631_v45 = vld [vmem:[#allocation2 + $0xb40] sm:$0xff] }
 0x282   :  { %2011 = vmatmul.mubr.bf16.gmra.mrb[80].mxu0 %v6197_v2  ;;  %2463 = vmatmul.mubr.bf16.gmra.mrb[80].mxu1 %v6197_v2 }
 0x283   :  { %2068 = vmatpush1.bf16.msra.mxu0 %v1591_v62  ;;  %2520 = vmatpush1.bf16.msra.mxu1 %v1593_v4  ;;  %v1633_v62 = vld [vmem:[#allocation2 + $0xb50] sm:$0xff]  ;;  %v1640_v4 = vld [vmem:[#allocation2 + $0xb88] sm:$0xff] }
 0x284   :  { %2069 = vmatprep.subr.bf16.mxu0 %v1600_v18  ;;  %2521 = vmatprep.subr.bf16.mxu1 %v1602_v24  ;;  %v1642_v18 = vld [vmem:[#allocation2 + $0xb98] sm:$0xff]  ;;  %v1639_v24 = vld [vmem:[#allocation2 + $0xb80] sm:$0xff] }
 0x285   :  { %2020 = vmatprep.mubr.bf16.mxu0 %v6217_v59  ;;  %2472 = vmatprep.mubr.bf16.mxu1 %v6217_v59 }
 0x287   :  { %2070 = vmatpush1.bf16.msra.mxu0 %v1599_v27  ;;  %2522 = vmatpush1.bf16.msra.mxu1 %v1601_v32  ;;  %v1641_v27 = vld [vmem:[#allocation2 + $0xb90] sm:$0xff]  ;;  %v1648_v32 = vld [vmem:[#allocation2 + $0xbc8] sm:$0xff] }
 0x288   :  { %2071 = vmatprep.subr.bf16.mxu0 %v1608_v8  ;;  %2523 = vmatprep.subr.bf16.mxu1 %v1610_v60  ;;  %v1650_v8 = vld [vmem:[#allocation2 + $0xbd8] sm:$0xff]  ;;  %v1647_v60 = vld [vmem:[#allocation2 + $0xbc0] sm:$0xff] }
 0x28a   :  { %2021 = vmatmul.mubr.bf16.gmra.mrb[84].mxu0 %v6213_v56  ;;  %2473 = vmatmul.mubr.bf16.gmra.mrb[84].mxu1 %v6213_v56 }
 0x28b   :  { %2072 = vmatpush1.bf16.msra.mxu0 %v1607_v1  ;;  %2524 = vmatpush1.bf16.msra.mxu1 %v1609_v11  ;;  %v1649_v1 = vld [vmem:[#allocation2 + $0xbd0] sm:$0xff]  ;;  %v1656_v11 = vld [vmem:[#allocation2 + $0xc08] sm:$0xff] }
 0x28c   :  { %2073 = vmatprep.subr.bf16.mxu0 %v1616_v25  ;;  %2525 = vmatprep.subr.bf16.mxu1 %v1618_v17  ;;  %v1658_v25 = vld [vmem:[#allocation2 + $0xc18] sm:$0xff]  ;;  %v1655_v17 = vld [vmem:[#allocation2 + $0xc00] sm:$0xff] }
 0x28d   :  { %2030 = vmatprep.mubr.bf16.mxu0 %v6235_v58  ;;  %2482 = vmatprep.mubr.bf16.mxu1 %v6235_v58 }
 0x28f   :  { %2074 = vmatpush1.bf16.msra.mxu0 %v1615_v19  ;;  %2526 = vmatpush1.bf16.msra.mxu1 %v1617_v36  ;;  %v1657_v19 = vld [vmem:[#allocation2 + $0xc10] sm:$0xff]  ;;  %v1664_v36 = vld [vmem:[#allocation2 + $0xc48] sm:$0xff] }
 0x290   :  { %2075 = vmatprep.subr.bf16.mxu0 %v1624_v39  ;;  %2527 = vmatprep.subr.bf16.mxu1 %v1626_v37  ;;  %v1666_v39 = vld [vmem:[#allocation2 + $0xc58] sm:$0xff]  ;;  %v1663_v37 = vld [vmem:[#allocation2 + $0xc40] sm:$0xff] }
 0x292   :  { %2031 = vmatmul.mubr.bf16.gmra.mrb[88].mxu0 %v6229_v42  ;;  %2483 = vmatmul.mubr.bf16.gmra.mrb[88].mxu1 %v6229_v42 }
 0x293   :  { %2076 = vmatpush1.bf16.msra.mxu0 %v1623_v38  ;;  %2528 = vmatpush1.bf16.msra.mxu1 %v1625_v12  ;;  %v1665_v38 = vld [vmem:[#allocation2 + $0xc50] sm:$0xff]  ;;  %v1672_v12 = vld [vmem:[#allocation2 + $0xc88] sm:$0xff] }
 0x294   :  { %2077 = vmatprep.subr.bf16.mxu0 %v1632_v41  ;;  %2529 = vmatprep.subr.bf16.mxu1 %v1634_v9  ;;  %v1674_v41 = vld [vmem:[#allocation2 + $0xc98] sm:$0xff]  ;;  %v1671_v9 = vld [vmem:[#allocation2 + $0xc80] sm:$0xff] }
 0x295   :  { %2040 = vmatprep.mubr.bf16.mxu0 %v6273_v22  ;;  %2492 = vmatprep.mubr.bf16.mxu1 %v6273_v22 }
 0x297   :  { %2078 = vmatpush1.bf16.msra.mxu0 %v1631_v45  ;;  %2530 = vmatpush1.bf16.msra.mxu1 %v1633_v62  ;;  %v1673_v45 = vld [vmem:[#allocation2 + $0xc90] sm:$0xff]  ;;  %v1680_v62 = vld [vmem:[#allocation2 + $0xcc8] sm:$0xff] }
 0x298   :  { %2079 = vmatprep.subr.bf16.mxu0 %v1640_v4  ;;  %2531 = vmatprep.subr.bf16.mxu1 %v1642_v18  ;;  %v1682_v4 = vld [vmem:[#allocation2 + $0xcd8] sm:$0xff]  ;;  %v1679_v18 = vld [vmem:[#allocation2 + $0xcc0] sm:$0xff] }
 0x29a   :  { %2041 = vmatmul.mubr.bf16.gmra.mrb[92].mxu0 %v6269_v6  ;;  %2493 = vmatmul.mubr.bf16.gmra.mrb[92].mxu1 %v6269_v6 }
 0x29b   :  { %2080 = vmatpush1.bf16.msra.mxu0 %v1639_v24  ;;  %2532 = vmatpush1.bf16.msra.mxu1 %v1641_v27  ;;  %v1681_v24 = vld [vmem:[#allocation2 + $0xcd0] sm:$0xff]  ;;  %v1688_v27 = vld [vmem:[#allocation2 + $0xd08] sm:$0xff] }
 0x29c   :  { %2081 = vmatprep.subr.bf16.mxu0 %v1648_v32  ;;  %2533 = vmatprep.subr.bf16.mxu1 %v1650_v8  ;;  %v1690_v32 = vld [vmem:[#allocation2 + $0xd18] sm:$0xff]  ;;  %v1687_v8 = vld [vmem:[#allocation2 + $0xd00] sm:$0xff] }
 0x29d   :  { %2083 = vmatprep.mubr.bf16.mxu0 %v6287_v54  ;;  %2535 = vmatprep.mubr.bf16.mxu1 %v6287_v54 }
 0x29f   :  { %2082 = vmatpush1.bf16.msra.mxu0 %v1647_v60  ;;  %2534 = vmatpush1.bf16.msra.mxu1 %v1649_v1  ;;  %v1689_v60 = vld [vmem:[#allocation2 + $0xd10] sm:$0xff]  ;;  %v1696_v1 = vld [vmem:[#allocation2 + $0xd48] sm:$0xff] }
 0x2a0   :  { %2164 = vmatprep.subr.bf16.mxu0 %v1656_v11  ;;  %2616 = vmatprep.subr.bf16.mxu1 %v1658_v25  ;;  %v1698_v11 = vld [vmem:[#allocation2 + $0xd58] sm:$0xff] }
 0x2a1   :  { %v7069_v25 = vld [vmem:[#allocation27_spill] sm:$0xff] }
 0x2a2   :  { %2084 = vmatmul.mubr.bf16.vlgmr.msra.gmra.mrb[64].mxu0 %v6283_v63  ;;  %2536 = vmatmul.mubr.bf16.vlgmr.msra.gmra.mrb[64].mxu1 %v6283_v63 }
 0x2a3   :  { %2165 = vmatpush1.bf16.msra.mxu0 %v1655_v17  ;;  %2617 = vmatpush1.bf16.msra.mxu1 %v1657_v19  ;;  %v1695_v17 = vld [vmem:[#allocation2 + $0xd40] sm:$0xff]  ;;  %v1697_v19 = vld [vmem:[#allocation2 + $0xd50] sm:$0xff] }
 0x2a4   :  { %2166 = vmatprep.subr.bf16.mxu0 %v1664_v36  ;;  %2618 = vmatprep.subr.bf16.mxu1 %v1666_v39  ;;  %v7070_v36 = vld [vmem:[#allocation32_spill] sm:$0xff]  ;;  %v1704_v39 = vld [vmem:[#allocation2 + $0xd88] sm:$0xff] }
 0x2a5   :  { %2093 = vmatprep.mubr.bf16.mxu0 %v6303_v15  ;;  %2545 = vmatprep.mubr.bf16.mxu1 %v6303_v15 }
 0x2a7   :  { %2167 = vmatpush1.bf16.msra.mxu0 %v1663_v37  ;;  %2619 = vmatpush1.bf16.msra.mxu1 %v1665_v38  ;;  %v1706_v37 = vld [vmem:[#allocation2 + $0xd98] sm:$0xff]  ;;  %v1703_v38 = vld [vmem:[#allocation2 + $0xd80] sm:$0xff] }
 0x2a8   :  { %2168 = vmatprep.subr.bf16.mxu0 %v1672_v12  ;;  %2620 = vmatprep.subr.bf16.mxu1 %v1674_v41  ;;  %v1705_v12 = vld [vmem:[#allocation2 + $0xd90] sm:$0xff]  ;;  %v1712_v41 = vld [vmem:[#allocation2 + $0xdc8] sm:$0xff] }
 0x2aa   :  { %2094 = vmatmul.mubr.bf16.gmra.mrb[68].mxu0 %v6299_v16  ;;  %2546 = vmatmul.mubr.bf16.gmra.mrb[68].mxu1 %v6299_v16 }
 0x2ab   :  { %2169 = vmatpush1.bf16.msra.mxu0 %v1671_v9  ;;  %2621 = vmatpush1.bf16.msra.mxu1 %v1673_v45  ;;  %v1714_v9 = vld [vmem:[#allocation2 + $0xdd8] sm:$0xff]  ;;  %v7071_v45 = vld [vmem:[#allocation30_spill] sm:$0xff] }
 0x2ac   :  { %2170 = vmatprep.subr.bf16.mxu0 %v1680_v62  ;;  %2622 = vmatprep.subr.bf16.mxu1 %v1682_v4  ;;  %v1711_v62 = vld [vmem:[#allocation2 + $0xdc0] sm:$0xff]  ;;  %v1713_v4 = vld [vmem:[#allocation2 + $0xdd0] sm:$0xff] }
 0x2ad   :  { %2103 = vmatprep.mubr.bf16.mxu0 %v6319_v13  ;;  %2555 = vmatprep.mubr.bf16.mxu1 %v6319_v13 }
 0x2af   :  { %2171 = vmatpush1.bf16.msra.mxu0 %v1679_v18  ;;  %2623 = vmatpush1.bf16.msra.mxu1 %v1681_v24  ;;  %v7072_v18 = vld [vmem:[#allocation36_spill] sm:$0xff]  ;;  %v1720_v24 = vld [vmem:[#allocation2 + $0xe08] sm:$0xff] }
 0x2b0   :  { %2172 = vmatprep.subr.bf16.mxu0 %v1688_v27  ;;  %2624 = vmatprep.subr.bf16.mxu1 %v1690_v32  ;;  %v1722_v27 = vld [vmem:[#allocation2 + $0xe18] sm:$0xff]  ;;  %v1719_v32 = vld [vmem:[#allocation2 + $0xe00] sm:$0xff] }
 0x2b2   :  { %2104 = vmatmul.mubr.bf16.gmra.mrb[72].mxu0 %v7069_v25  ;;  %2556 = vmatmul.mubr.bf16.gmra.mrb[72].mxu1 %v7069_v25 }
 0x2b3   :  { %2173 = vmatpush1.bf16.msra.mxu0 %v1687_v8  ;;  %2625 = vmatpush1.bf16.msra.mxu1 %v1689_v60  ;;  %v1721_v8 = vld [vmem:[#allocation2 + $0xe10] sm:$0xff]  ;;  %v1728_v60 = vld [vmem:[#allocation2 + $0xe48] sm:$0xff] }
 0x2b4   :  { %2174 = vmatprep.subr.bf16.mxu0 %v1696_v1  ;;  %2626 = vmatprep.subr.bf16.mxu1 %v1698_v11  ;;  %v1730_v1 = vld [vmem:[#allocation2 + $0xe58] sm:$0xff]  ;;  %v7073_v11 = vld [vmem:[#allocation34_spill] sm:$0xff] }
 0x2b5   :  { %2113 = vmatprep.mubr.bf16.mxu0 %v7070_v36  ;;  %2565 = vmatprep.mubr.bf16.mxu1 %v7070_v36 }
 0x2b7   :  { %2175 = vmatpush1.bf16.msra.mxu0 %v1695_v17  ;;  %2627 = vmatpush1.bf16.msra.mxu1 %v1697_v19  ;;  %v1727_v17 = vld [vmem:[#allocation2 + $0xe40] sm:$0xff]  ;;  %v1729_v19 = vld [vmem:[#allocation2 + $0xe50] sm:$0xff] }
 0x2b8   :  { %2176 = vmatprep.subr.bf16.mxu0 %v1704_v39  ;;  %2628 = vmatprep.subr.bf16.mxu1 %v1706_v37  ;;  %v7074_v39 = vld [vmem:[#allocation40_spill] sm:$0xff]  ;;  %v1736_v37 = vld [vmem:[#allocation2 + $0xe88] sm:$0xff] }
 0x2ba   :  { %2114 = vmatmul.mubr.bf16.gmra.mrb[76].mxu0 %v7071_v45  ;;  %2566 = vmatmul.mubr.bf16.gmra.mrb[76].mxu1 %v7071_v45 }
 0x2bb   :  { %2177 = vmatpush1.bf16.msra.mxu0 %v1703_v38  ;;  %2629 = vmatpush1.bf16.msra.mxu1 %v1705_v12  ;;  %v1738_v38 = vld [vmem:[#allocation2 + $0xe98] sm:$0xff]  ;;  %v1735_v12 = vld [vmem:[#allocation2 + $0xe80] sm:$0xff] }
 0x2bc   :  { %2178 = vmatprep.subr.bf16.mxu0 %v1712_v41  ;;  %2630 = vmatprep.subr.bf16.mxu1 %v1714_v9  ;;  %v1737_v41 = vld [vmem:[#allocation2 + $0xe90] sm:$0xff]  ;;  %v1744_v9 = vld [vmem:[#allocation2 + $0xec8] sm:$0xff] }
 0x2bd   :  { %2123 = vmatprep.mubr.bf16.mxu0 %v7072_v18  ;;  %2575 = vmatprep.mubr.bf16.mxu1 %v7072_v18 }
 0x2bf   :  { %2179 = vmatpush1.bf16.msra.mxu0 %v1711_v62  ;;  %2631 = vmatpush1.bf16.msra.mxu1 %v1713_v4  ;;  %v1746_v62 = vld [vmem:[#allocation2 + $0xed8] sm:$0xff]  ;;  %v7075_v4 = vld [vmem:[#allocation38_spill] sm:$0xff] }
 0x2c0   :  { %2180 = vmatprep.subr.bf16.mxu0 %v1720_v24  ;;  %2632 = vmatprep.subr.bf16.mxu1 %v1722_v27  ;;  %v1743_v24 = vld [vmem:[#allocation2 + $0xec0] sm:$0xff]  ;;  %v1745_v27 = vld [vmem:[#allocation2 + $0xed0] sm:$0xff] }
 0x2c2   :  { %2124 = vmatmul.mubr.bf16.gmra.mrb[80].mxu0 %v7073_v11  ;;  %2576 = vmatmul.mubr.bf16.gmra.mrb[80].mxu1 %v7073_v11 }
 0x2c3   :  { %2181 = vmatpush1.bf16.msra.mxu0 %v1719_v32  ;;  %2633 = vmatpush1.bf16.msra.mxu1 %v1721_v8  ;;  %v1752_v32 = vld [vmem:[#allocation2 + $0xf08] sm:$0xff]  ;;  %v1754_v8 = vld [vmem:[#allocation2 + $0xf18] sm:$0xff] }
 0x2c4   :  { %2182 = vmatprep.subr.bf16.mxu0 %v1728_v60  ;;  %2634 = vmatprep.subr.bf16.mxu1 %v1730_v1  ;;  %v1751_v60 = vld [vmem:[#allocation2 + $0xf00] sm:$0xff]  ;;  %v1753_v1 = vld [vmem:[#allocation2 + $0xf10] sm:$0xff] }
 0x2c5   :  { %2133 = vmatprep.mubr.bf16.mxu0 %v7074_v39  ;;  %2585 = vmatprep.mubr.bf16.mxu1 %v7074_v39 }
 0x2c7   :  { %2183 = vmatpush1.bf16.msra.mxu0 %v1727_v17  ;;  %2635 = vmatpush1.bf16.msra.mxu1 %v1729_v19  ;;  %v1760_v17 = vld [vmem:[#allocation2 + $0xf48] sm:$0xff]  ;;  %v1762_v19 = vld [vmem:[#allocation2 + $0xf58] sm:$0xff] }
 0x2c8   :  { %2184 = vmatprep.subr.bf16.mxu0 %v1736_v37  ;;  %2636 = vmatprep.subr.bf16.mxu1 %v1738_v38  ;;  %v1759_v37 = vld [vmem:[#allocation2 + $0xf40] sm:$0xff]  ;;  %v1761_v38 = vld [vmem:[#allocation2 + $0xf50] sm:$0xff] }
 0x2ca   :  { %2134 = vmatmul.mubr.bf16.gmra.mrb[84].mxu0 %v7075_v4  ;;  %2586 = vmatmul.mubr.bf16.gmra.mrb[84].mxu1 %v7075_v4 }
 0x2cb   :  { %2185 = vmatpush1.bf16.msra.mxu0 %v1735_v12  ;;  %2637 = vmatpush1.bf16.msra.mxu1 %v1737_v41  ;;  %v1768_v12 = vld [vmem:[#allocation2 + $0xf88] sm:$0xff]  ;;  %v1770_v41 = vld [vmem:[#allocation2 + $0xf98] sm:$0xff] }
 0x2cc   :  { %2186 = vmatprep.subr.bf16.mxu0 %v1744_v9  ;;  %2638 = vmatprep.subr.bf16.mxu1 %v1746_v62  ;;  %v1767_v9 = vld [vmem:[#allocation2 + $0xf80] sm:$0xff]  ;;  %v1769_v62 = vld [vmem:[#allocation2 + $0xf90] sm:$0xff] }
 0x2cd   :  { %2143 = vmatprep.mubr.bf16.mxu0 %v6383_v48  ;;  %2595 = vmatprep.mubr.bf16.mxu1 %v6383_v48 }
 0x2cf   :  { %2187 = vmatpush1.bf16.msra.mxu0 %v1743_v24  ;;  %2639 = vmatpush1.bf16.msra.mxu1 %v1745_v27  ;;  %v1776_v24 = vld [vmem:[#allocation2 + $0xfc8] sm:$0xff]  ;;  %v1778_v27 = vld [vmem:[#allocation2 + $0xfd8] sm:$0xff] }
 0x2d0   :  { %2188 = vmatprep.subr.bf16.mxu0 %v1752_v32  ;;  %2640 = vmatprep.subr.bf16.mxu1 %v1754_v8  ;;  %v1775_v32 = vld [vmem:[#allocation2 + $0xfc0] sm:$0xff]  ;;  %v1777_v8 = vld [vmem:[#allocation2 + $0xfd0] sm:$0xff] }
 0x2d2   :  { %2144 = vmatmul.mubr.bf16.gmra.mrb[88].mxu0 %v6379_v29  ;;  %2596 = vmatmul.mubr.bf16.gmra.mrb[88].mxu1 %v6379_v29 }
 0x2d3   :  { %2189 = vmatpush1.bf16.msra.mxu0 %v1751_v60  ;;  %2641 = vmatpush1.bf16.msra.mxu1 %v1753_v1  ;;  %v7076_v60 = vld [vmem:[#allocation24_spill] sm:$0xff]  ;;  %v1276_v1 = vld [vmem:[#allocation2 + $0x28] sm:$0xff] }
 0x2d4   :  { %2190 = vmatprep.subr.bf16.mxu0 %v1760_v17  ;;  %2642 = vmatprep.subr.bf16.mxu1 %v1762_v19  ;;  %v1278_v17 = vld [vmem:[#allocation2 + $0x38] sm:$0xff]  ;;  %v1275_v19 = vld [vmem:[#allocation2 + $0x20] sm:$0xff] }
 0x2d5   :  { %2153 = vmatprep.mubr.bf16.mxu0 %v6399_v26  ;;  %2605 = vmatprep.mubr.bf16.mxu1 %v6399_v26 }
 0x2d7   :  { %2191 = vmatpush1.bf16.msra.mxu0 %v1759_v37  ;;  %2643 = vmatpush1.bf16.msra.mxu1 %v1761_v38  ;;  %v1277_v37 = vld [vmem:[#allocation2 + $0x30] sm:$0xff]  ;;  %v1284_v38 = vld [vmem:[#allocation2 + $0x68] sm:$0xff] }
 0x2d8   :  { %2192 = vmatprep.subr.bf16.mxu0 %v1768_v12  ;;  %2644 = vmatprep.subr.bf16.mxu1 %v1770_v41  ;;  %v1286_v12 = vld [vmem:[#allocation2 + $0x78] sm:$0xff] }
 0x2d9   :  { %v7077_v41 = vld [vmem:[#allocation23_spill] sm:$0xff] }
 0x2da   :  { %2154 = vmatmul.mubr.bf16.gmra.mrb[92].mxu0 %v6395_v14  ;;  %2606 = vmatmul.mubr.bf16.gmra.mrb[92].mxu1 %v6395_v14 }
 0x2db   :  { %2193 = vmatpush1.bf16.msra.mxu0 %v1767_v9  ;;  %2645 = vmatpush1.bf16.msra.mxu1 %v1769_v62  ;;  %v1283_v9 = vld [vmem:[#allocation2 + $0x60] sm:$0xff]  ;;  %v1285_v62 = vld [vmem:[#allocation2 + $0x70] sm:$0xff] }
 0x2dc   :  { %2194 = vmatprep.subr.bf16.mxu0 %v1776_v24  ;;  %2646 = vmatprep.subr.bf16.mxu1 %v1778_v27  ;;  %v7078_v24 = vld [vmem:[#allocation26_spill] sm:$0xff]  ;;  %v1292_v27 = vld [vmem:[#allocation2 + $0xa8] sm:$0xff] }
 0x2dd   :  { %2196 = vmatprep.mubr.bf16.mxu0 %v7076_v60  ;;  %2648 = vmatprep.mubr.bf16.mxu1 %v7076_v60 }
 0x2df   :  { %2195 = vmatpush1.bf16.msra.mxu0 %v1775_v32  ;;  %2647 = vmatpush1.bf16.msra.mxu1 %v1777_v8  ;;  %v1294_v32 = vld [vmem:[#allocation2 + $0xb8] sm:$0xff]  ;;  %v1291_v8 = vld [vmem:[#allocation2 + $0xa0] sm:$0xff] }
 0x2e0   :  { %2729 = vmatprep.subr.bf16.mxu0 %v1276_v1  ;;  %3181 = vmatprep.subr.bf16.mxu1 %v1278_v17  ;;  %v1293_v1 = vld [vmem:[#allocation2 + $0xb0] sm:$0xff]  ;;  %v1300_v17 = vld [vmem:[#allocation2 + $0xe8] sm:$0xff] }
 0x2e2   :  { %2197 = vmatmul.mubr.bf16.vlgmr.msra.gmra.mrb[64].mxu0 %v7077_v41  ;;  %2649 = vmatmul.mubr.bf16.vlgmr.msra.gmra.mrb[64].mxu1 %v7077_v41  ;;  %v1302_v41 = vld [vmem:[#allocation2 + $0xf8] sm:$0xff] }
 0x2e3   :  { %2730 = vmatpush1.bf16.msra.mxu0 %v1275_v19  ;;  %3182 = vmatpush1.bf16.msra.mxu1 %v1277_v37  ;;  %v7079_v19 = vld [vmem:[#allocation25_spill] sm:$0xff]  ;;  %v1299_v37 = vld [vmem:[#allocation2 + $0xe0] sm:$0xff] }
 0x2e4   :  { %2731 = vmatprep.subr.bf16.mxu0 %v1284_v38  ;;  %3183 = vmatprep.subr.bf16.mxu1 %v1286_v12  ;;  %v1301_v38 = vld [vmem:[#allocation2 + $0xf0] sm:$0xff]  ;;  %v7080_v12 = vld [vmem:[#allocation29_spill] sm:$0xff] }
 0x2e5   :  { %2206 = vmatprep.mubr.bf16.mxu0 %v7078_v24  ;;  %2658 = vmatprep.mubr.bf16.mxu1 %v7078_v24  ;;  %v1316_v24 = vld [vmem:[#allocation2 + $0x168] sm:$0xff] }
 0x2e7   :  { %2732 = vmatpush1.bf16.msra.mxu0 %v1283_v9  ;;  %3184 = vmatpush1.bf16.msra.mxu1 %v1285_v62  ;;  %v1308_v9 = vld [vmem:[#allocation2 + $0x128] sm:$0xff]  ;;  %v1310_v62 = vld [vmem:[#allocation2 + $0x138] sm:$0xff] }
 0x2e8   :  { %2733 = vmatprep.subr.bf16.mxu0 %v1292_v27  ;;  %3185 = vmatprep.subr.bf16.mxu1 %v1294_v32  ;;  %v1307_v27 = vld [vmem:[#allocation2 + $0x120] sm:$0xff]  ;;  %v1309_v32 = vld [vmem:[#allocation2 + $0x130] sm:$0xff] }
 0x2ea   :  { %2207 = vmatmul.mubr.bf16.gmra.mrb[68].mxu0 %v7079_v19  ;;  %2659 = vmatmul.mubr.bf16.gmra.mrb[68].mxu1 %v7079_v19  ;;  %v1318_v19 = vld [vmem:[#allocation2 + $0x178] sm:$0xff] }
 0x2eb   :  { %2734 = vmatpush1.bf16.msra.mxu0 %v1291_v8  ;;  %3186 = vmatpush1.bf16.msra.mxu1 %v1293_v1  ;;  %v7081_v8 = vld [vmem:[#allocation28_spill] sm:$0xff]  ;;  %v1317_v1 = vld [vmem:[#allocation2 + $0x170] sm:$0xff] }
 0x2ec   :  { %2735 = vmatprep.subr.bf16.mxu0 %v1300_v17  ;;  %3187 = vmatprep.subr.bf16.mxu1 %v1302_v41  ;;  %v1315_v41 = vld [vmem:[#allocation2 + $0x160] sm:$0xff]  ;;  %v7082_v17 = vld [vmem:[#allocation33_spill] sm:$0xff] }
 0x2ed   :  { %2216 = vmatprep.mubr.bf16.mxu0 %v7080_v12  ;;  %2668 = vmatprep.mubr.bf16.mxu1 %v7080_v12  ;;  %v1332_v12 = vld [vmem:[#allocation2 + $0x1e8] sm:$0xff] }
 0x2ef   :  { %2736 = vmatpush1.bf16.msra.mxu0 %v1299_v37  ;;  %3188 = vmatpush1.bf16.msra.mxu1 %v1301_v38  ;;  %v1324_v37 = vld [vmem:[#allocation2 + $0x1a8] sm:$0xff]  ;;  %v1326_v38 = vld [vmem:[#allocation2 + $0x1b8] sm:$0xff] }
 0x2f0   :  { %2737 = vmatprep.subr.bf16.mxu0 %v1308_v9  ;;  %3189 = vmatprep.subr.bf16.mxu1 %v1310_v62  ;;  %v1323_v9 = vld [vmem:[#allocation2 + $0x1a0] sm:$0xff]  ;;  %v1325_v62 = vld [vmem:[#allocation2 + $0x1b0] sm:$0xff] }
 0x2f2   :  { %2217 = vmatmul.mubr.bf16.gmra.mrb[72].mxu0 %v7081_v8  ;;  %2669 = vmatmul.mubr.bf16.gmra.mrb[72].mxu1 %v7081_v8  ;;  %v1334_v8 = vld [vmem:[#allocation2 + $0x1f8] sm:$0xff] }
 0x2f3   :  { %2738 = vmatpush1.bf16.msra.mxu0 %v1307_v27  ;;  %3190 = vmatpush1.bf16.msra.mxu1 %v1309_v32  ;;  %v7083_v27 = vld [vmem:[#allocation31_spill] sm:$0xff]  ;;  %v7084_v32 = vld [vmem:[#allocation37_spill] sm:$0xff] }
 0x2f4   :  { %2739 = vmatprep.subr.bf16.mxu0 %v1316_v24  ;;  %3191 = vmatprep.subr.bf16.mxu1 %v1318_v19  ;;  %v1331_v24 = vld [vmem:[#allocation2 + $0x1e0] sm:$0xff]  ;;  %v1333_v19 = vld [vmem:[#allocation2 + $0x1f0] sm:$0xff] }
 0x2f5   :  { %2226 = vmatprep.mubr.bf16.mxu0 %v7082_v17  ;;  %2678 = vmatprep.mubr.bf16.mxu1 %v7082_v17  ;;  %v1348_v17 = vld [vmem:[#allocation2 + $0x268] sm:$0xff] }
 0x2f7   :  { %2740 = vmatpush1.bf16.msra.mxu0 %v1315_v41  ;;  %3192 = vmatpush1.bf16.msra.mxu1 %v1317_v1  ;;  %v1340_v41 = vld [vmem:[#allocation2 + $0x228] sm:$0xff]  ;;  %v1342_v1 = vld [vmem:[#allocation2 + $0x238] sm:$0xff] }
 0x2f8   :  { %2741 = vmatprep.subr.bf16.mxu0 %v1324_v37  ;;  %3193 = vmatprep.subr.bf16.mxu1 %v1326_v38  ;;  %v1339_v37 = vld [vmem:[#allocation2 + $0x220] sm:$0xff]  ;;  %v1341_v38 = vld [vmem:[#allocation2 + $0x230] sm:$0xff] }
 0x2fa   :  { %2227 = vmatmul.mubr.bf16.gmra.mrb[76].mxu0 %v7083_v27  ;;  %2679 = vmatmul.mubr.bf16.gmra.mrb[76].mxu1 %v7083_v27  ;;  %v1350_v27 = vld [vmem:[#allocation2 + $0x278] sm:$0xff] }
 0x2fb   :  { %2742 = vmatpush1.bf16.msra.mxu0 %v1323_v9  ;;  %3194 = vmatpush1.bf16.msra.mxu1 %v1325_v62  ;;  %v7085_v9 = vld [vmem:[#allocation35_spill] sm:$0xff]  ;;  %v7086_v62 = vld [vmem:[#allocation41_spill] sm:$0xff] }
 0x2fc   :  { %2743 = vmatprep.subr.bf16.mxu0 %v1332_v12  ;;  %3195 = vmatprep.subr.bf16.mxu1 %v1334_v8  ;;  %v1347_v12 = vld [vmem:[#allocation2 + $0x260] sm:$0xff]  ;;  %v1349_v8 = vld [vmem:[#allocation2 + $0x270] sm:$0xff] }
 0x2fd   :  { %2236 = vmatprep.mubr.bf16.mxu0 %v7084_v32  ;;  %2688 = vmatprep.mubr.bf16.mxu1 %v7084_v32  ;;  %v1364_v32 = vld [vmem:[#allocation2 + $0x2e8] sm:$0xff] }
 0x2ff   :  { %2744 = vmatpush1.bf16.msra.mxu0 %v1331_v24  ;;  %3196 = vmatpush1.bf16.msra.mxu1 %v1333_v19  ;;  %v1356_v24 = vld [vmem:[#allocation2 + $0x2a8] sm:$0xff]  ;;  %v1358_v19 = vld [vmem:[#allocation2 + $0x2b8] sm:$0xff] }
 0x300   :  { %2745 = vmatprep.subr.bf16.mxu0 %v1340_v41  ;;  %3197 = vmatprep.subr.bf16.mxu1 %v1342_v1  ;;  %v1355_v41 = vld [vmem:[#allocation2 + $0x2a0] sm:$0xff]  ;;  %v1357_v1 = vld [vmem:[#allocation2 + $0x2b0] sm:$0xff] }
 0x302   :  { %2237 = vmatmul.mubr.bf16.gmra.mrb[80].mxu0 %v7085_v9  ;;  %2689 = vmatmul.mubr.bf16.gmra.mrb[80].mxu1 %v7085_v9  ;;  %v1366_v9 = vld [vmem:[#allocation2 + $0x2f8] sm:$0xff] }
 0x303   :  { %2746 = vmatpush1.bf16.msra.mxu0 %v1339_v37  ;;  %3198 = vmatpush1.bf16.msra.mxu1 %v1341_v38  ;;  %v7087_v37 = vld [vmem:[#allocation39_spill] sm:$0xff] }
 0x304   :  { %2747 = vmatprep.subr.bf16.mxu0 %v1348_v17  ;;  %3199 = vmatprep.subr.bf16.mxu1 %v1350_v27  ;;  %v1363_v17 = vld [vmem:[#allocation2 + $0x2e0] sm:$0xff]  ;;  %v1365_v27 = vld [vmem:[#allocation2 + $0x2f0] sm:$0xff]  ;;  %v7088_v38 = vld [vmem:[#allocation43_spill] sm:$0xff] }
 0x305   :  { %2246 = vmatprep.mubr.bf16.mxu0 %v7086_v62  ;;  %2698 = vmatprep.mubr.bf16.mxu1 %v7086_v62  ;;  %v1380_v62 = vld [vmem:[#allocation2 + $0x368] sm:$0xff] }
 0x307   :  { %2748 = vmatpush1.bf16.msra.mxu0 %v1347_v12  ;;  %3200 = vmatpush1.bf16.msra.mxu1 %v1349_v8  ;;  %v1372_v12 = vld [vmem:[#allocation2 + $0x328] sm:$0xff]  ;;  %v1374_v8 = vld [vmem:[#allocation2 + $0x338] sm:$0xff] }
 0x308   :  { %2749 = vmatprep.subr.bf16.mxu0 %v1356_v24  ;;  %3201 = vmatprep.subr.bf16.mxu1 %v1358_v19  ;;  %v1371_v24 = vld [vmem:[#allocation2 + $0x320] sm:$0xff]  ;;  %v1373_v19 = vld [vmem:[#allocation2 + $0x330] sm:$0xff] }
 0x30a   :  { %2247 = vmatmul.mubr.bf16.gmra.mrb[84].mxu0 %v7087_v37  ;;  %2699 = vmatmul.mubr.bf16.gmra.mrb[84].mxu1 %v7087_v37  ;;  %v1382_v37 = vld [vmem:[#allocation2 + $0x378] sm:$0xff] }
 0x30b   :  { %2750 = vmatpush1.bf16.msra.mxu0 %v1355_v41  ;;  %3202 = vmatpush1.bf16.msra.mxu1 %v1357_v1  ;;  %v7089_v41 = vld [vmem:[#allocation42_spill] sm:$0xff]  ;;  %v1388_v1 = vld [vmem:[#allocation2 + $0x3a8] sm:$0xff] }
 0x30c   :  { %2751 = vmatprep.subr.bf16.mxu0 %v1364_v32  ;;  %3203 = vmatprep.subr.bf16.mxu1 %v1366_v9  ;;  %v1379_v32 = vld [vmem:[#allocation2 + $0x360] sm:$0xff]  ;;  %v1381_v9 = vld [vmem:[#allocation2 + $0x370] sm:$0xff] }
 0x30d   :  { %2256 = vmatprep.mubr.bf16.mxu0 %v7088_v38  ;;  %2708 = vmatprep.mubr.bf16.mxu1 %v7088_v38 }
 0x30f   :  { %2752 = vmatpush1.bf16.msra.mxu0 %v1363_v17  ;;  %3204 = vmatpush1.bf16.msra.mxu1 %v1365_v27  ;;  %v1390_v17 = vld [vmem:[#allocation2 + $0x3b8] sm:$0xff]  ;;  %v1387_v27 = vld [vmem:[#allocation2 + $0x3a0] sm:$0xff] }
 0x310   :  { %2753 = vmatprep.subr.bf16.mxu0 %v1372_v12  ;;  %3205 = vmatprep.subr.bf16.mxu1 %v1374_v8  ;;  %v1389_v12 = vld [vmem:[#allocation2 + $0x3b0] sm:$0xff]  ;;  %v1396_v8 = vld [vmem:[#allocation2 + $0x3e8] sm:$0xff] }
 0x312   :  { %2257 = vmatmul.mubr.bf16.gmra.mrb[88].mxu0 %v7089_v41  ;;  %2709 = vmatmul.mubr.bf16.gmra.mrb[88].mxu1 %v7089_v41  ;;  %v1398_v41 = vld [vmem:[#allocation2 + $0x3f8] sm:$0xff] }
 0x313   :  { %2754 = vmatpush1.bf16.msra.mxu0 %v1371_v24  ;;  %3206 = vmatpush1.bf16.msra.mxu1 %v1373_v19  ;;  %v1404_v24 = vld [vmem:[#allocation2 + $0x428] sm:$0xff]  ;;  %v1406_v19 = vld [vmem:[#allocation2 + $0x438] sm:$0xff] }
 0x314   :  { %2755 = vmatprep.subr.bf16.mxu0 %v1380_v62  ;;  %3207 = vmatprep.subr.bf16.mxu1 %v1382_v37  ;;  %v1395_v62 = vld [vmem:[#allocation2 + $0x3e0] sm:$0xff]  ;;  %v1397_v37 = vld [vmem:[#allocation2 + $0x3f0] sm:$0xff] }
 0x315   :  { %2266 = vmatprep.mubr.bf16.mxu0 %v6401_v35  ;;  %2718 = vmatprep.mubr.bf16.mxu1 %v6401_v35 }
 0x317   :  { %2756 = vmatpush1.bf16.msra.mxu0 %v1379_v32  ;;  %3208 = vmatpush1.bf16.msra.mxu1 %v1381_v9  ;;  %v1403_v32 = vld [vmem:[#allocation2 + $0x420] sm:$0xff]  ;;  %v1405_v9 = vld [vmem:[#allocation2 + $0x430] sm:$0xff] }
 0x318   :  { %2757 = vmatprep.subr.bf16.mxu0 %v1388_v1  ;;  %3209 = vmatprep.subr.bf16.mxu1 %v1390_v17  ;;  %v1412_v1 = vld [vmem:[#allocation2 + $0x468] sm:$0xff]  ;;  %v1414_v17 = vld [vmem:[#allocation2 + $0x478] sm:$0xff] }
 0x31a   :  { %2267 = vmatmul.mubr.bf16.gmra.mrb[92].mxu0 %v6397_v34  ;;  %2719 = vmatmul.mubr.bf16.gmra.mrb[92].mxu1 %v6397_v34 }
 0x31b   :  { %2758 = vmatpush1.bf16.msra.mxu0 %v1387_v27  ;;  %3210 = vmatpush1.bf16.msra.mxu1 %v1389_v12  ;;  %v1420_v27 = vld [vmem:[#allocation2 + $0x4a8] sm:$0xff]  ;;  %v1422_v12 = vld [vmem:[#allocation2 + $0x4b8] sm:$0xff] }
 0x31c   :  { %2759 = vmatprep.subr.bf16.mxu0 %v1396_v8  ;;  %3211 = vmatprep.subr.bf16.mxu1 %v1398_v41  ;;  %v1411_v41 = vld [vmem:[#allocation2 + $0x460] sm:$0xff] }
 0x31d   :  { %2761 = vmatprep.mubr.bf16.mxu0 %v6135_v47  ;;  %3213 = vmatprep.mubr.bf16.mxu1 %v6135_v47  ;;  %v1413_v47 = vld [vmem:[#allocation2 + $0x470] sm:$0xff]  ;;  %v1419_v8 = vld [vmem:[#allocation2 + $0x4a0] sm:$0xff] }
 0x31f   :  { %2760 = vmatpush1.bf16.msra.mxu0 %v1395_v62  ;;  %3212 = vmatpush1.bf16.msra.mxu1 %v1397_v37  ;;  %v1421_v62 = vld [vmem:[#allocation2 + $0x4b0] sm:$0xff]  ;;  %v1428_v37 = vld [vmem:[#allocation2 + $0x4e8] sm:$0xff] }
 0x320   :  { %2842 = vmatprep.subr.bf16.mxu0 %v1404_v24  ;;  %3294 = vmatprep.subr.bf16.mxu1 %v1406_v19  ;;  %v1427_v24 = vld [vmem:[#allocation2 + $0x4e0] sm:$0xff]  ;;  %v1436_v19 = vld [vmem:[#allocation2 + $0x528] sm:$0xff] }
 0x322   :  { %2762 = vmatmul.mubr.bf16.vlgmr.msra.gmra.mrb[96].mxu0 %v6131_v44  ;;  %3214 = vmatmul.mubr.bf16.vlgmr.msra.gmra.mrb[96].mxu1 %v6131_v44  ;;  %v1430_v44 = vld [vmem:[#allocation2 + $0x4f8] sm:$0xff] }
 0x323   :  { %2843 = vmatpush1.bf16.msra.mxu0 %v1403_v32  ;;  %3295 = vmatpush1.bf16.msra.mxu1 %v1405_v9  ;;  %v1438_v32 = vld [vmem:[#allocation2 + $0x538] sm:$0xff]  ;;  %v1435_v9 = vld [vmem:[#allocation2 + $0x520] sm:$0xff] }
 0x324   :  { %2844 = vmatprep.subr.bf16.mxu0 %v1412_v1  ;;  %3296 = vmatprep.subr.bf16.mxu1 %v1414_v17  ;;  %v1437_v1 = vld [vmem:[#allocation2 + $0x530] sm:$0xff]  ;;  %v1444_v17 = vld [vmem:[#allocation2 + $0x568] sm:$0xff] }
 0x325   :  { %2771 = vmatprep.mubr.bf16.mxu0 %v6151_v21  ;;  %3223 = vmatprep.mubr.bf16.mxu1 %v6151_v21  ;;  %v1429_v21 = vld [vmem:[#allocation2 + $0x4f0] sm:$0xff] }
 0x327   :  { %2845 = vmatpush1.bf16.msra.mxu0 %v1411_v41  ;;  %3297 = vmatpush1.bf16.msra.mxu1 %v1413_v47  ;;  %v1443_v41 = vld [vmem:[#allocation2 + $0x560] sm:$0xff]  ;;  %v1452_v47 = vld [vmem:[#allocation2 + $0x5a8] sm:$0xff] }
 0x328   :  { %2846 = vmatprep.subr.bf16.mxu0 %v1420_v27  ;;  %3298 = vmatprep.subr.bf16.mxu1 %v1422_v12  ;;  %v1454_v27 = vld [vmem:[#allocation2 + $0x5b8] sm:$0xff]  ;;  %v1451_v12 = vld [vmem:[#allocation2 + $0x5a0] sm:$0xff] }
 0x32a   :  { %2772 = vmatmul.mubr.bf16.gmra.mrb[100].mxu0 %v6147_v10  ;;  %3224 = vmatmul.mubr.bf16.gmra.mrb[100].mxu1 %v6147_v10  ;;  %v1446_v10 = vld [vmem:[#allocation2 + $0x578] sm:$0xff] }
 0x32b   :  { %2847 = vmatpush1.bf16.msra.mxu0 %v1419_v8  ;;  %3299 = vmatpush1.bf16.msra.mxu1 %v1421_v62  ;;  %v1453_v8 = vld [vmem:[#allocation2 + $0x5b0] sm:$0xff]  ;;  %v1460_v62 = vld [vmem:[#allocation2 + $0x5e8] sm:$0xff] }
 0x32c   :  { %2848 = vmatprep.subr.bf16.mxu0 %v1428_v37  ;;  %3300 = vmatprep.subr.bf16.mxu1 %v1430_v44  ;;  %v1459_v37 = vld [vmem:[#allocation2 + $0x5e0] sm:$0xff]  ;;  %v1468_v44 = vld [vmem:[#allocation2 + $0x628] sm:$0xff] }
 0x32d   :  { %2781 = vmatprep.mubr.bf16.mxu0 %v6167_v53  ;;  %3233 = vmatprep.mubr.bf16.mxu1 %v6167_v53  ;;  %v1445_v53 = vld [vmem:[#allocation2 + $0x570] sm:$0xff] }
 0x32f   :  { %2849 = vmatpush1.bf16.msra.mxu0 %v1427_v24  ;;  %3301 = vmatpush1.bf16.msra.mxu1 %v1429_v21  ;;  %v1470_v24 = vld [vmem:[#allocation2 + $0x638] sm:$0xff]  ;;  %v1467_v21 = vld [vmem:[#allocation2 + $0x620] sm:$0xff] }
 0x330   :  { %2850 = vmatprep.subr.bf16.mxu0 %v1436_v19  ;;  %3302 = vmatprep.subr.bf16.mxu1 %v1438_v32  ;;  %v1469_v19 = vld [vmem:[#allocation2 + $0x630] sm:$0xff]  ;;  %v1476_v32 = vld [vmem:[#allocation2 + $0x668] sm:$0xff] }
 0x332   :  { %2782 = vmatmul.mubr.bf16.gmra.mrb[104].mxu0 %v6163_v50  ;;  %3234 = vmatmul.mubr.bf16.gmra.mrb[104].mxu1 %v6163_v50  ;;  %v1462_v50 = vld [vmem:[#allocation2 + $0x5f8] sm:$0xff] }
 0x333   :  { %2851 = vmatpush1.bf16.msra.mxu0 %v1435_v9  ;;  %3303 = vmatpush1.bf16.msra.mxu1 %v1437_v1  ;;  %v1475_v9 = vld [vmem:[#allocation2 + $0x660] sm:$0xff]  ;;  %v1484_v1 = vld [vmem:[#allocation2 + $0x6a8] sm:$0xff] }
 0x334   :  { %2852 = vmatprep.subr.bf16.mxu0 %v1444_v17  ;;  %3304 = vmatprep.subr.bf16.mxu1 %v1446_v10  ;;  %v1486_v17 = vld [vmem:[#allocation2 + $0x6b8] sm:$0xff]  ;;  %v1483_v10 = vld [vmem:[#allocation2 + $0x6a0] sm:$0xff] }
 0x335   :  { %2791 = vmatprep.mubr.bf16.mxu0 %v6183_v31  ;;  %3243 = vmatprep.mubr.bf16.mxu1 %v6183_v31  ;;  %v1461_v31 = vld [vmem:[#allocation2 + $0x5f0] sm:$0xff] }
 0x337   :  { %2853 = vmatpush1.bf16.msra.mxu0 %v1443_v41  ;;  %3305 = vmatpush1.bf16.msra.mxu1 %v1445_v53  ;;  %v1485_v41 = vld [vmem:[#allocation2 + $0x6b0] sm:$0xff]  ;;  %v1492_v53 = vld [vmem:[#allocation2 + $0x6e8] sm:$0xff] }
 0x338   :  { %2854 = vmatprep.subr.bf16.mxu0 %v1452_v47  ;;  %3306 = vmatprep.subr.bf16.mxu1 %v1454_v27  ;;  %v1491_v47 = vld [vmem:[#allocation2 + $0x6e0] sm:$0xff]  ;;  %v1500_v27 = vld [vmem:[#allocation2 + $0x728] sm:$0xff] }
 0x33a   :  { %2792 = vmatmul.mubr.bf16.gmra.mrb[108].mxu0 %v6179_v28  ;;  %3244 = vmatmul.mubr.bf16.gmra.mrb[108].mxu1 %v6179_v28  ;;  %v1478_v28 = vld [vmem:[#allocation2 + $0x678] sm:$0xff] }
 0x33b   :  { %2855 = vmatpush1.bf16.msra.mxu0 %v1451_v12  ;;  %3307 = vmatpush1.bf16.msra.mxu1 %v1453_v8  ;;  %v1502_v12 = vld [vmem:[#allocation2 + $0x738] sm:$0xff]  ;;  %v1499_v8 = vld [vmem:[#allocation2 + $0x720] sm:$0xff] }
 0x33c   :  { %2856 = vmatprep.subr.bf16.mxu0 %v1460_v62  ;;  %3308 = vmatprep.subr.bf16.mxu1 %v1462_v50  ;;  %v1501_v62 = vld [vmem:[#allocation2 + $0x730] sm:$0xff]  ;;  %v1508_v50 = vld [vmem:[#allocation2 + $0x768] sm:$0xff] }
 0x33d   :  { %2801 = vmatprep.mubr.bf16.mxu0 %v6199_v3  ;;  %3253 = vmatprep.mubr.bf16.mxu1 %v6199_v3  ;;  %v1477_v3 = vld [vmem:[#allocation2 + $0x670] sm:$0xff] }
 0x33f   :  { %2857 = vmatpush1.bf16.msra.mxu0 %v1459_v37  ;;  %3309 = vmatpush1.bf16.msra.mxu1 %v1461_v31  ;;  %v1507_v37 = vld [vmem:[#allocation2 + $0x760] sm:$0xff]  ;;  %v1516_v31 = vld [vmem:[#allocation2 + $0x7a8] sm:$0xff] }
 0x340   :  { %2858 = vmatprep.subr.bf16.mxu0 %v1468_v44  ;;  %3310 = vmatprep.subr.bf16.mxu1 %v1470_v24  ;;  %v1518_v44 = vld [vmem:[#allocation2 + $0x7b8] sm:$0xff]  ;;  %v1515_v24 = vld [vmem:[#allocation2 + $0x7a0] sm:$0xff] }
 0x342   :  { %2802 = vmatmul.mubr.bf16.gmra.mrb[112].mxu0 %v6195_v0  ;;  %3254 = vmatmul.mubr.bf16.gmra.mrb[112].mxu1 %v6195_v0  ;;  %v1494_v0 = vld [vmem:[#allocation2 + $0x6f8] sm:$0xff] }
 0x343   :  { %2859 = vmatpush1.bf16.msra.mxu0 %v1467_v21  ;;  %3311 = vmatpush1.bf16.msra.mxu1 %v1469_v19  ;;  %v1517_v21 = vld [vmem:[#allocation2 + $0x7b0] sm:$0xff]  ;;  %v1524_v19 = vld [vmem:[#allocation2 + $0x7e8] sm:$0xff] }
 0x344   :  { %2860 = vmatprep.subr.bf16.mxu0 %v1476_v32  ;;  %3312 = vmatprep.subr.bf16.mxu1 %v1478_v28  ;;  %v1523_v32 = vld [vmem:[#allocation2 + $0x7e0] sm:$0xff]  ;;  %v1532_v28 = vld [vmem:[#allocation2 + $0x828] sm:$0xff] }
 0x345   :  { %2811 = vmatprep.mubr.bf16.mxu0 %v6215_v57  ;;  %3263 = vmatprep.mubr.bf16.mxu1 %v6215_v57  ;;  %v1493_v57 = vld [vmem:[#allocation2 + $0x6f0] sm:$0xff] }
 0x347   :  { %2861 = vmatpush1.bf16.msra.mxu0 %v1475_v9  ;;  %3313 = vmatpush1.bf16.msra.mxu1 %v1477_v3  ;;  %v1534_v9 = vld [vmem:[#allocation2 + $0x838] sm:$0xff]  ;;  %v1531_v3 = vld [vmem:[#allocation2 + $0x820] sm:$0xff] }
 0x348   :  { %2862 = vmatprep.subr.bf16.mxu0 %v1484_v1  ;;  %3314 = vmatprep.subr.bf16.mxu1 %v1486_v17  ;;  %v1533_v1 = vld [vmem:[#allocation2 + $0x830] sm:$0xff]  ;;  %v1540_v17 = vld [vmem:[#allocation2 + $0x868] sm:$0xff] }
 0x34a   :  { %2812 = vmatmul.mubr.bf16.gmra.mrb[116].mxu0 %v6211_v51  ;;  %3264 = vmatmul.mubr.bf16.gmra.mrb[116].mxu1 %v6211_v51  ;;  %v1510_v51 = vld [vmem:[#allocation2 + $0x778] sm:$0xff] }
 0x34b   :  { %2863 = vmatpush1.bf16.msra.mxu0 %v1483_v10  ;;  %3315 = vmatpush1.bf16.msra.mxu1 %v1485_v41  ;;  %v1539_v10 = vld [vmem:[#allocation2 + $0x860] sm:$0xff]  ;;  %v1548_v41 = vld [vmem:[#allocation2 + $0x8a8] sm:$0xff] }
 0x34c   :  { %2864 = vmatprep.subr.bf16.mxu0 %v1492_v53  ;;  %3316 = vmatprep.subr.bf16.mxu1 %v1494_v0  ;;  %v1550_v53 = vld [vmem:[#allocation2 + $0x8b8] sm:$0xff]  ;;  %v1547_v0 = vld [vmem:[#allocation2 + $0x8a0] sm:$0xff] }
 0x34d   :  { %2821 = vmatprep.mubr.bf16.mxu0 %v6231_v43  ;;  %3273 = vmatprep.mubr.bf16.mxu1 %v6231_v43  ;;  %v1509_v43 = vld [vmem:[#allocation2 + $0x770] sm:$0xff] }
 0x34f   :  { %2865 = vmatpush1.bf16.msra.mxu0 %v1491_v47  ;;  %3317 = vmatpush1.bf16.msra.mxu1 %v1493_v57  ;;  %v1549_v47 = vld [vmem:[#allocation2 + $0x8b0] sm:$0xff]  ;;  %v1556_v57 = vld [vmem:[#allocation2 + $0x8e8] sm:$0xff] }
 0x350   :  { %2866 = vmatprep.subr.bf16.mxu0 %v1500_v27  ;;  %3318 = vmatprep.subr.bf16.mxu1 %v1502_v12  ;;  %v1555_v27 = vld [vmem:[#allocation2 + $0x8e0] sm:$0xff]  ;;  %v1564_v12 = vld [vmem:[#allocation2 + $0x928] sm:$0xff] }
 0x352   :  { %2822 = vmatmul.mubr.bf16.gmra.mrb[120].mxu0 %v6227_v40  ;;  %3274 = vmatmul.mubr.bf16.gmra.mrb[120].mxu1 %v6227_v40  ;;  %v1526_v40 = vld [vmem:[#allocation2 + $0x7f8] sm:$0xff] }
 0x353   :  { %2867 = vmatpush1.bf16.msra.mxu0 %v1499_v8  ;;  %3319 = vmatpush1.bf16.msra.mxu1 %v1501_v62  ;;  %v1566_v8 = vld [vmem:[#allocation2 + $0x938] sm:$0xff]  ;;  %v1563_v62 = vld [vmem:[#allocation2 + $0x920] sm:$0xff] }
 0x354   :  { %2868 = vmatprep.subr.bf16.mxu0 %v1508_v50  ;;  %3320 = vmatprep.subr.bf16.mxu1 %v1510_v51  ;;  %v1565_v50 = vld [vmem:[#allocation2 + $0x930] sm:$0xff]  ;;  %v1572_v51 = vld [vmem:[#allocation2 + $0x968] sm:$0xff] }
 0x355   :  { %2831 = vmatprep.mubr.bf16.mxu0 %v6271_v20  ;;  %3283 = vmatprep.mubr.bf16.mxu1 %v6271_v20  ;;  %v1525_v20 = vld [vmem:[#allocation2 + $0x7f0] sm:$0xff] }
 0x357   :  { %2869 = vmatpush1.bf16.msra.mxu0 %v1507_v37  ;;  %3321 = vmatpush1.bf16.msra.mxu1 %v1509_v43  ;;  %v1571_v37 = vld [vmem:[#allocation2 + $0x960] sm:$0xff]  ;;  %v1580_v43 = vld [vmem:[#allocation2 + $0x9a8] sm:$0xff] }
 0x358   :  { %2870 = vmatprep.subr.bf16.mxu0 %v1516_v31  ;;  %3322 = vmatprep.subr.bf16.mxu1 %v1518_v44  ;;  %v1582_v31 = vld [vmem:[#allocation2 + $0x9b8] sm:$0xff]  ;;  %v1579_v44 = vld [vmem:[#allocation2 + $0x9a0] sm:$0xff] }
 0x35a   :  { %2832 = vmatmul.mubr.bf16.gmra.mrb[124].mxu0 %v6262_v61  ;;  %3284 = vmatmul.mubr.bf16.gmra.mrb[124].mxu1 %v6262_v61  ;;  %v1542_v61 = vld [vmem:[#allocation2 + $0x878] sm:$0xff] }
 0x35b   :  { %2871 = vmatpush1.bf16.msra.mxu0 %v1515_v24  ;;  %3323 = vmatpush1.bf16.msra.mxu1 %v1517_v21  ;;  %v1581_v24 = vld [vmem:[#allocation2 + $0x9b0] sm:$0xff]  ;;  %v1588_v21 = vld [vmem:[#allocation2 + $0x9e8] sm:$0xff] }
 0x35c   :  { %2872 = vmatprep.subr.bf16.mxu0 %v1524_v19  ;;  %3324 = vmatprep.subr.bf16.mxu1 %v1526_v40  ;;  %v1587_v19 = vld [vmem:[#allocation2 + $0x9e0] sm:$0xff]  ;;  %v1596_v40 = vld [vmem:[#allocation2 + $0xa28] sm:$0xff] }
 0x35d   :  { %2874 = vmatprep.mubr.bf16.mxu0 %v6137_v49  ;;  %3326 = vmatprep.mubr.bf16.mxu1 %v6137_v49  ;;  %v1541_v49 = vld [vmem:[#allocation2 + $0x870] sm:$0xff] }
 0x35f   :  { %2873 = vmatpush1.bf16.msra.mxu0 %v1523_v32  ;;  %3325 = vmatpush1.bf16.msra.mxu1 %v1525_v20  ;;  %v1598_v32 = vld [vmem:[#allocation2 + $0xa38] sm:$0xff]  ;;  %v1595_v20 = vld [vmem:[#allocation2 + $0xa20] sm:$0xff] }
 0x360   :  { %2955 = vmatprep.subr.bf16.mxu0 %v1532_v28  ;;  %3407 = vmatprep.subr.bf16.mxu1 %v1534_v9  ;;  %v1597_v28 = vld [vmem:[#allocation2 + $0xa30] sm:$0xff]  ;;  %v1604_v9 = vld [vmem:[#allocation2 + $0xa68] sm:$0xff] }
 0x362   :  { %2875 = vmatmul.mubr.bf16.vlgmr.msra.gmra.mrb[96].mxu0 %v6133_v46  ;;  %3327 = vmatmul.mubr.bf16.vlgmr.msra.gmra.mrb[96].mxu1 %v6133_v46  ;;  %v1558_v46 = vld [vmem:[#allocation2 + $0x8f8] sm:$0xff] }
 0x363   :  { %2956 = vmatpush1.bf16.msra.mxu0 %v1531_v3  ;;  %3408 = vmatpush1.bf16.msra.mxu1 %v1533_v1  ;;  %v1603_v3 = vld [vmem:[#allocation2 + $0xa60] sm:$0xff]  ;;  %v1612_v1 = vld [vmem:[#allocation2 + $0xaa8] sm:$0xff] }
 0x364   :  { %2957 = vmatprep.subr.bf16.mxu0 %v1540_v17  ;;  %3409 = vmatprep.subr.bf16.mxu1 %v1542_v61  ;;  %v1614_v17 = vld [vmem:[#allocation2 + $0xab8] sm:$0xff]  ;;  %v1611_v61 = vld [vmem:[#allocation2 + $0xaa0] sm:$0xff] }
 0x365   :  { %2884 = vmatprep.mubr.bf16.mxu0 %v6153_v23  ;;  %3336 = vmatprep.mubr.bf16.mxu1 %v6153_v23  ;;  %v1557_v23 = vld [vmem:[#allocation2 + $0x8f0] sm:$0xff] }
 0x367   :  { %2958 = vmatpush1.bf16.msra.mxu0 %v1539_v10  ;;  %3410 = vmatpush1.bf16.msra.mxu1 %v1541_v49  ;;  %v1613_v10 = vld [vmem:[#allocation2 + $0xab0] sm:$0xff]  ;;  %v1620_v49 = vld [vmem:[#allocation2 + $0xae8] sm:$0xff] }
 0x368   :  { %2959 = vmatprep.subr.bf16.mxu0 %v1548_v41  ;;  %3411 = vmatprep.subr.bf16.mxu1 %v1550_v53  ;;  %v1619_v41 = vld [vmem:[#allocation2 + $0xae0] sm:$0xff]  ;;  %v1628_v53 = vld [vmem:[#allocation2 + $0xb28] sm:$0xff] }
 0x36a   :  { %2885 = vmatmul.mubr.bf16.gmra.mrb[100].mxu0 %v6149_v7  ;;  %3337 = vmatmul.mubr.bf16.gmra.mrb[100].mxu1 %v6149_v7  ;;  %v1574_v7 = vld [vmem:[#allocation2 + $0x978] sm:$0xff] }
 0x36b   :  { %2960 = vmatpush1.bf16.msra.mxu0 %v1547_v0  ;;  %3412 = vmatpush1.bf16.msra.mxu1 %v1549_v47  ;;  %v1630_v0 = vld [vmem:[#allocation2 + $0xb38] sm:$0xff]  ;;  %v1627_v47 = vld [vmem:[#allocation2 + $0xb20] sm:$0xff] }
 0x36c   :  { %2961 = vmatprep.subr.bf16.mxu0 %v1556_v57  ;;  %3413 = vmatprep.subr.bf16.mxu1 %v1558_v46  ;;  %v1629_v57 = vld [vmem:[#allocation2 + $0xb30] sm:$0xff]  ;;  %v1636_v46 = vld [vmem:[#allocation2 + $0xb68] sm:$0xff] }
 0x36d   :  { %2894 = vmatprep.mubr.bf16.mxu0 %v6169_v55  ;;  %3346 = vmatprep.mubr.bf16.mxu1 %v6169_v55  ;;  %v1573_v55 = vld [vmem:[#allocation2 + $0x970] sm:$0xff] }
 0x36f   :  { %2962 = vmatpush1.bf16.msra.mxu0 %v1555_v27  ;;  %3414 = vmatpush1.bf16.msra.mxu1 %v1557_v23  ;;  %v1635_v27 = vld [vmem:[#allocation2 + $0xb60] sm:$0xff]  ;;  %v1644_v23 = vld [vmem:[#allocation2 + $0xba8] sm:$0xff] }
 0x370   :  { %2963 = vmatprep.subr.bf16.mxu0 %v1564_v12  ;;  %3415 = vmatprep.subr.bf16.mxu1 %v1566_v8  ;;  %v1646_v12 = vld [vmem:[#allocation2 + $0xbb8] sm:$0xff]  ;;  %v1643_v8 = vld [vmem:[#allocation2 + $0xba0] sm:$0xff] }
 0x372   :  { %2895 = vmatmul.mubr.bf16.gmra.mrb[104].mxu0 %v6165_v52  ;;  %3347 = vmatmul.mubr.bf16.gmra.mrb[104].mxu1 %v6165_v52  ;;  %v1590_v52 = vld [vmem:[#allocation2 + $0x9f8] sm:$0xff] }
 0x373   :  { %2964 = vmatpush1.bf16.msra.mxu0 %v1563_v62  ;;  %3416 = vmatpush1.bf16.msra.mxu1 %v1565_v50  ;;  %v1645_v62 = vld [vmem:[#allocation2 + $0xbb0] sm:$0xff]  ;;  %v1652_v50 = vld [vmem:[#allocation2 + $0xbe8] sm:$0xff] }
 0x374   :  { %2965 = vmatprep.subr.bf16.mxu0 %v1572_v51  ;;  %3417 = vmatprep.subr.bf16.mxu1 %v1574_v7  ;;  %v1651_v51 = vld [vmem:[#allocation2 + $0xbe0] sm:$0xff]  ;;  %v1660_v7 = vld [vmem:[#allocation2 + $0xc28] sm:$0xff] }
 0x375   :  { %2904 = vmatprep.mubr.bf16.mxu0 %v6185_v33  ;;  %3356 = vmatprep.mubr.bf16.mxu1 %v6185_v33  ;;  %v1589_v33 = vld [vmem:[#allocation2 + $0x9f0] sm:$0xff] }
 0x377   :  { %2966 = vmatpush1.bf16.msra.mxu0 %v1571_v37  ;;  %3418 = vmatpush1.bf16.msra.mxu1 %v1573_v55  ;;  %v1662_v37 = vld [vmem:[#allocation2 + $0xc38] sm:$0xff]  ;;  %v1659_v55 = vld [vmem:[#allocation2 + $0xc20] sm:$0xff] }
 0x378   :  { %2967 = vmatprep.subr.bf16.mxu0 %v1580_v43  ;;  %3419 = vmatprep.subr.bf16.mxu1 %v1582_v31  ;;  %v1661_v43 = vld [vmem:[#allocation2 + $0xc30] sm:$0xff]  ;;  %v1668_v31 = vld [vmem:[#allocation2 + $0xc68] sm:$0xff] }
 0x37a   :  { %2905 = vmatmul.mubr.bf16.gmra.mrb[108].mxu0 %v6181_v30  ;;  %3357 = vmatmul.mubr.bf16.gmra.mrb[108].mxu1 %v6181_v30  ;;  %v1606_v30 = vld [vmem:[#allocation2 + $0xa78] sm:$0xff] }
 0x37b   :  { %2968 = vmatpush1.bf16.msra.mxu0 %v1579_v44  ;;  %3420 = vmatpush1.bf16.msra.mxu1 %v1581_v24  ;;  %v1667_v44 = vld [vmem:[#allocation2 + $0xc60] sm:$0xff]  ;;  %v1676_v24 = vld [vmem:[#allocation2 + $0xca8] sm:$0xff] }
 0x37c   :  { %2969 = vmatprep.subr.bf16.mxu0 %v1588_v21  ;;  %3421 = vmatprep.subr.bf16.mxu1 %v1590_v52  ;;  %v1678_v21 = vld [vmem:[#allocation2 + $0xcb8] sm:$0xff]  ;;  %v1675_v52 = vld [vmem:[#allocation2 + $0xca0] sm:$0xff] }
 0x37d   :  { %2914 = vmatprep.mubr.bf16.mxu0 %v6201_v5  ;;  %3366 = vmatprep.mubr.bf16.mxu1 %v6201_v5  ;;  %v1605_v5 = vld [vmem:[#allocation2 + $0xa70] sm:$0xff] }
 0x37f   :  { %2970 = vmatpush1.bf16.msra.mxu0 %v1587_v19  ;;  %3422 = vmatpush1.bf16.msra.mxu1 %v1589_v33  ;;  %v1677_v19 = vld [vmem:[#allocation2 + $0xcb0] sm:$0xff]  ;;  %v1684_v33 = vld [vmem:[#allocation2 + $0xce8] sm:$0xff] }
 0x380   :  { %2971 = vmatprep.subr.bf16.mxu0 %v1596_v40  ;;  %3423 = vmatprep.subr.bf16.mxu1 %v1598_v32  ;;  %v1683_v40 = vld [vmem:[#allocation2 + $0xce0] sm:$0xff]  ;;  %v1692_v32 = vld [vmem:[#allocation2 + $0xd28] sm:$0xff] }
 0x382   :  { %2915 = vmatmul.mubr.bf16.gmra.mrb[112].mxu0 %v6197_v2  ;;  %3367 = vmatmul.mubr.bf16.gmra.mrb[112].mxu1 %v6197_v2  ;;  %v1622_v2 = vld [vmem:[#allocation2 + $0xaf8] sm:$0xff] }
 0x383   :  { %2972 = vmatpush1.bf16.msra.mxu0 %v1595_v20  ;;  %3424 = vmatpush1.bf16.msra.mxu1 %v1597_v28  ;;  %v1694_v20 = vld [vmem:[#allocation2 + $0xd38] sm:$0xff]  ;;  %v1783_v28 = vld [vmem:[#allocation11] sm:$0xff] }
 0x384   :  { %2973 = vmatprep.subr.bf16.mxu0 %v1604_v9  ;;  %3425 = vmatprep.subr.bf16.mxu1 %v1606_v30  ;;  %v1691_v9 = vld [vmem:[#allocation2 + $0xd20] sm:$0xff]  ;;  %v1693_v30 = vld [vmem:[#allocation2 + $0xd30] sm:$0xff] }
 0x385   :  { %2924 = vmatprep.mubr.bf16.mxu0 %v6217_v59  ;;  %3376 = vmatprep.mubr.bf16.mxu1 %v6217_v59  ;;  %v1621_v59 = vld [vmem:[#allocation2 + $0xaf0] sm:$0xff] }
 0x387   :  { %2974 = vmatpush1.bf16.msra.mxu0 %v1603_v3  ;;  %3426 = vmatpush1.bf16.msra.mxu1 %v1605_v5  ;;  %v1702_v3 = vld [vmem:[#allocation2 + $0xd78] sm:$0xff]  ;;  %v7090_v5 = vld [vmem:[#allocation22_spill] sm:$0xff] }
 0x388   :  { %2975 = vmatprep.subr.bf16.mxu0 %v1612_v1  ;;  %3427 = vmatprep.subr.bf16.mxu1 %v1614_v17  ;;  %v7091_v1 = vsub.s32 0, %v7090_v5 }
 0x38a   :  { %2925 = vmatmul.mubr.bf16.gmra.mrb[116].mxu0 %v6213_v56  ;;  %3377 = vmatmul.mubr.bf16.gmra.mrb[116].mxu1 %v6213_v56  ;;  %v1638_v56 = vld [vmem:[#allocation2 + $0xb78] sm:$0xff]  ;;  %v6609_v17 = vrot.slane %v1783_v28, %v7091_v1 }
 0x38b   :  { %2976 = vmatpush1.bf16.msra.mxu0 %v1611_v61  ;;  %3428 = vmatpush1.bf16.msra.mxu1 %v1613_v10  ;;  %v7093_v10 = vsub.s32 1, %v7090_v5 }
 0x38c   :  { %2977 = vmatprep.subr.bf16.mxu0 %v1620_v49  ;;  %3429 = vmatprep.subr.bf16.mxu1 %v1622_v2  ;;  %v7094_v2 = vsub.s32 3, %v7090_v5 }
 0x38d   :  { %2934 = vmatprep.mubr.bf16.mxu0 %v6235_v58  ;;  %3386 = vmatprep.mubr.bf16.mxu1 %v6235_v58  ;;  %v1637_v58 = vld [vmem:[#allocation2 + $0xb70] sm:$0xff]  ;;  %v6617_v49 = vrot.slane %v1783_v28, %v7093_v10 }
 0x38f   :  { %2978 = vmatpush1.bf16.msra.mxu0 %v1619_v41  ;;  %3430 = vmatpush1.bf16.msra.mxu1 %v1621_v59  ;;  %v6621_v41 = vrot.slane %v1783_v28, %v7094_v2  ;;  %v1701_v59 = vld [vmem:[#allocation2 + $0xd70] sm:$0xff] }
 0x390   :  { %2979 = vmatprep.subr.bf16.mxu0 %v1628_v53  ;;  %3431 = vmatprep.subr.bf16.mxu1 %v1630_v0 }
 0x392   :  { %2935 = vmatmul.mubr.bf16.gmra.mrb[120].mxu0 %v6229_v42  ;;  %3387 = vmatmul.mubr.bf16.gmra.mrb[120].mxu1 %v6229_v42  ;;  %v1654_v42 = vld [vmem:[#allocation2 + $0xbf8] sm:$0xff] }
 0x393   :  { %2980 = vmatpush1.bf16.msra.mxu0 %v1627_v47  ;;  %3432 = vmatpush1.bf16.msra.mxu1 %v1629_v57  ;;  %v1708_v47 = vld [vmem:[#allocation2 + $0xda8] sm:$0xff]  ;;  %v1710_v57 = vld [vmem:[#allocation2 + $0xdb8] sm:$0xff] }
 0x394   :  { %2981 = vmatprep.subr.bf16.mxu0 %v1636_v46  ;;  %3433 = vmatprep.subr.bf16.mxu1 %v1638_v56 }
 0x395   :  { %2944 = vmatprep.mubr.bf16.mxu0 %v6273_v22  ;;  %3396 = vmatprep.mubr.bf16.mxu1 %v6273_v22  ;;  %v1653_v22 = vld [vmem:[#allocation2 + $0xbf0] sm:$0xff] }
 0x397   :  { %2982 = vmatpush1.bf16.msra.mxu0 %v1635_v27  ;;  %3434 = vmatpush1.bf16.msra.mxu1 %v1637_v58 }
 0x398   :  { %2983 = vmatprep.subr.bf16.mxu0 %v1644_v23  ;;  %3435 = vmatprep.subr.bf16.mxu1 %v1646_v12 }
 0x39a   :  { %2945 = vmatmul.mubr.bf16.gmra.mrb[124].mxu0 %v6269_v6  ;;  %3397 = vmatmul.mubr.bf16.gmra.mrb[124].mxu1 %v6269_v6  ;;  %v1670_v6 = vld [vmem:[#allocation2 + $0xc78] sm:$0xff] }
 0x39b   :  { %2984 = vmatpush1.bf16.msra.mxu0 %v1643_v8  ;;  %3436 = vmatpush1.bf16.msra.mxu1 %v1645_v62 }
 0x39c   :  { %2985 = vmatprep.subr.bf16.mxu0 %v1652_v50  ;;  %3437 = vmatprep.subr.bf16.mxu1 %v1654_v42 }
 0x39d   :  { %2987 = vmatprep.mubr.bf16.mxu0 %v6287_v54  ;;  %3439 = vmatprep.mubr.bf16.mxu1 %v6287_v54  ;;  %v1669_v54 = vld [vmem:[#allocation2 + $0xc70] sm:$0xff] }
 0x39f   :  { %2986 = vmatpush1.bf16.msra.mxu0 %v1651_v51  ;;  %3438 = vmatpush1.bf16.msra.mxu1 %v1653_v22  ;;  %v1707_v22 = vld [vmem:[#allocation2 + $0xda0] sm:$0xff] }
 0x3a0   :  { %3068 = vmatprep.subr.bf16.mxu0 %v1660_v7  ;;  %3520 = vmatprep.subr.bf16.mxu1 %v1662_v37  ;;  %v1709_v7 = vld [vmem:[#allocation2 + $0xdb0] sm:$0xff] }
 0x3a2   :  { %2988 = vmatmul.mubr.bf16.vlgmr.msra.gmra.mrb[96].mxu0 %v6283_v63  ;;  %3440 = vmatmul.mubr.bf16.vlgmr.msra.gmra.mrb[96].mxu1 %v6283_v63  ;;  %v1686_v63 = vld [vmem:[#allocation2 + $0xcf8] sm:$0xff] }
 0x3a3   :  { %3069 = vmatpush1.bf16.msra.mxu0 %v1659_v55  ;;  %3521 = vmatpush1.bf16.msra.mxu1 %v1661_v43  ;;  %v1716_v43 = vld [vmem:[#allocation2 + $0xde8] sm:$0xff] }
 0x3a4   :  { %3070 = vmatprep.subr.bf16.mxu0 %v1668_v31  ;;  %3522 = vmatprep.subr.bf16.mxu1 %v1670_v6  ;;  %v1718_v31 = vld [vmem:[#allocation2 + $0xdf8] sm:$0xff] }
 0x3a5   :  { %2997 = vmatprep.mubr.bf16.mxu0 %v6303_v15  ;;  %3449 = vmatprep.mubr.bf16.mxu1 %v6303_v15  ;;  %v1685_v15 = vld [vmem:[#allocation2 + $0xcf0] sm:$0xff] }
 0x3a7   :  { %3071 = vmatpush1.bf16.msra.mxu0 %v1667_v44  ;;  %3523 = vmatpush1.bf16.msra.mxu1 %v1669_v54 }
 0x3a8   :  { %3072 = vmatprep.subr.bf16.mxu0 %v1676_v24  ;;  %3524 = vmatprep.subr.bf16.mxu1 %v1678_v21 }
 0x3aa   :  { %2998 = vmatmul.mubr.bf16.gmra.mrb[100].mxu0 %v6299_v16  ;;  %3450 = vmatmul.mubr.bf16.gmra.mrb[100].mxu1 %v6299_v16  ;;  %v1700_v16 = vld [vmem:[#allocation2 + $0xd68] sm:$0xff] }
 0x3ab   :  { %3073 = vmatpush1.bf16.msra.mxu0 %v1675_v52  ;;  %3525 = vmatpush1.bf16.msra.mxu1 %v1677_v19 }
 0x3ac   :  { %3074 = vmatprep.subr.bf16.mxu0 %v1684_v33  ;;  %3526 = vmatprep.subr.bf16.mxu1 %v1686_v63 }
 0x3ad   :  { %3007 = vmatprep.mubr.bf16.mxu0 %v6319_v13  ;;  %3459 = vmatprep.mubr.bf16.mxu1 %v6319_v13  ;;  %v7092_v13 = vsub.s32 2, %v7090_v5 }
 0x3af   :  { %3075 = vmatpush1.bf16.msra.mxu0 %v1683_v40  ;;  %3527 = vmatpush1.bf16.msra.mxu1 %v1685_v15  ;;  %v6613_v61 = vrot.slane %v1783_v28, %v7092_v13  ;;  %v1715_v15 = vld [vmem:[#allocation2 + $0xde0] sm:$0xff] }
 0x3b0   :  { %3076 = vmatprep.subr.bf16.mxu0 %v1692_v32  ;;  %3528 = vmatprep.subr.bf16.mxu1 %v1694_v20  ;;  %v1717_v32 = vld [vmem:[#allocation2 + $0xdf0] sm:$0xff] }
 0x3b2   :  { %3008 = vmatmul.mubr.bf16.gmra.mrb[104].mxu0 %v7069_v25  ;;  %3460 = vmatmul.mubr.bf16.gmra.mrb[104].mxu1 %v7069_v25  ;;  %v1699_v25 = vld [vmem:[#allocation2 + $0xd60] sm:$0xff] }
 0x3b3   :  { %3077 = vmatpush1.bf16.msra.mxu0 %v1691_v9  ;;  %3529 = vmatpush1.bf16.msra.mxu1 %v1693_v30  ;;  %v1724_v30 = vld [vmem:[#allocation2 + $0xe28] sm:$0xff] }
 0x3b4   :  { %3078 = vmatprep.subr.bf16.mxu0 %v1700_v16  ;;  %3530 = vmatprep.subr.bf16.mxu1 %v1702_v3  ;;  %v1726_v16 = vld [vmem:[#allocation2 + $0xe38] sm:$0xff] }
 0x3b5   :  { %v2198_v53 = vpop.f32.mrb[64].mxu0  ;;  %v2650_v0 = vpop.f32.mrb[64].mxu1  ;;  %3017 = vmatprep.mubr.bf16.mxu0 %v7070_v36  ;;  %3469 = vmatprep.mubr.bf16.mxu1 %v7070_v36 }
 0x3b6   :  { %v5163_v46 = vadd.f32 %v2198_v53, %v6609_v17  ;;  %v5195_v56 = vadd.f32 %v2650_v0, %v6613_v61  ;;  %v2200_v27 = vpop.f32.mrb[65].mxu0  ;;  %v2652_v58 = vpop.f32.mrb[65].mxu1 }
 0x3b7   :  { %v5164_v23 = vadd.f32 %v2200_v27, %v6617_v49  ;;  %v5196_v12 = vadd.f32 %v2652_v58, %v6621_v41  ;;  %v2202_v8 = vpop.f32.mrb[66].mxu0  ;;  %v2654_v62 = vpop.f32.mrb[66].mxu1  ;;  %3079 = vmatpush1.bf16.msra.mxu0 %v1699_v25  ;;  %3531 = vmatpush1.bf16.msra.mxu1 %v1701_v59 }
 0x3b8   :  { %v5165_v50 = vadd.f32 %v2202_v8, %v6609_v17  ;;  %v5197_v36 = vadd.f32 %v2654_v62, %v6613_v61  ;;  %v2204_v42 = vpop.f32.mrb[67].mxu0  ;;  %v2656_v51 = vpop.f32.mrb[67].mxu1  ;;  %3080 = vmatprep.subr.bf16.mxu0 %v1708_v47  ;;  %3532 = vmatprep.subr.bf16.mxu1 %v1710_v57  ;;  %v3633_v6 = vmax.f32 %v5163_v46, 0.0  ;;  %v3635_v44 = vmax.f32 %v5195_v56, 0.0  ;;  %v1723_v46 = vld [vmem:[#allocation2 + $0xe20] sm:$0xff]  ;;  %v1725_v56 = vld [vmem:[#allocation2 + $0xe30] sm:$0xff] }
 0x3b9   :  { %v5166_v37 = vadd.f32 %v2204_v42, %v6617_v49  ;;  %v5198_v55 = vadd.f32 %v2656_v51, %v6621_v41  ;;  %v3634_v21 = vmax.f32 %v5164_v23, 0.0  ;;  %v3636_v52 = vmax.f32 %v5196_v12, 0.0  ;;  %v1732_v23 = vld [vmem:[#allocation2 + $0xe68] sm:$0xff]  ;;  %v1734_v12 = vld [vmem:[#allocation2 + $0xe78] sm:$0xff] }
 0x3ba   :  { %v3641_v54 = vmax.f32 %v5165_v50, 0.0  ;;  %v3643_v24 = vmax.f32 %v5197_v36, 0.0  ;;  %3018 = vmatmul.mubr.bf16.gmra.mrb[108].mxu0 %v7071_v45  ;;  %3470 = vmatmul.mubr.bf16.gmra.mrb[108].mxu1 %v7071_v45 }
 0x3bb   :  { %v3642_v19 = vmax.f32 %v5166_v37, 0.0  ;;  %v3644_v33 = vmax.f32 %v5198_v55, 0.0  ;;  %3081 = vmatpush1.bf16.msra.mxu0 %v1707_v22  ;;  %3533 = vmatpush1.bf16.msra.mxu1 %v1709_v7 }
 0x3bc   :  { %v6635_v63 = vpack.c.bf16 %v3641_v54, %v3633_v6  ;;  %v6637_v40 = vpack.c.bf16 %v3643_v24, %v3635_v44  ;;  %3082 = vmatprep.subr.bf16.mxu0 %v1716_v43  ;;  %3534 = vmatprep.subr.bf16.mxu1 %v1718_v31  ;;  %v1731_v43 = vld [vmem:[#allocation2 + $0xe60] sm:$0xff]  ;;  %v1733_v31 = vld [vmem:[#allocation2 + $0xe70] sm:$0xff]  ;;  %v1740_v24 = vld [vmem:[#allocation2 + $0xea8] sm:$0xff] }
 0x3bd   :  { %v6639_v20 = vpack.c.bf16 %v3642_v19, %v3634_v21  ;;  %v6641_v28 = vpack.c.bf16 %v3644_v33, %v3636_v52  ;;  %v2208_v9 = vpop.f32.mrb[68].mxu0  ;;  %v2660_v45 = vpop.f32.mrb[68].mxu1  ;;  %3027 = vmatprep.mubr.bf16.mxu0 %v7072_v18  ;;  %3479 = vmatprep.mubr.bf16.mxu1 %v7072_v18  ;;  %v1742_v21 = vld [vmem:[#allocation2 + $0xeb8] sm:$0xff] }
 0x3be   :  { %v5167_v3 = vadd.f32 %v2208_v9, %v6609_v17  ;;  %v5199_v1 = vadd.f32 %v2660_v45, %v6613_v61  ;;  %v2210_v13 = vpop.f32.mrb[69].mxu0  ;;  %v2662_v10 = vpop.f32.mrb[69].mxu1 }
 0x3bf   :  { %v5168_v2 = vadd.f32 %v2210_v13, %v6617_v49  ;;  %v5200_v25 = vadd.f32 %v2662_v10, %v6621_v41  ;;  %v2212_v59 = vpop.f32.mrb[70].mxu0  ;;  %v2664_v53 = vpop.f32.mrb[70].mxu1  ;;  %3083 = vmatpush1.bf16.msra.mxu0 %v1715_v15  ;;  %3535 = vmatpush1.bf16.msra.mxu1 %v1717_v32  ;;  %v1739_v13 = vld [vmem:[#allocation2 + $0xea0] sm:$0xff]  ;;  %v1741_v10 = vld [vmem:[#allocation2 + $0xeb0] sm:$0xff] }
 0x3c0   :  { %v5169_v0 = vadd.f32 %v2212_v59, %v6609_v17  ;;  %v5201_v18 = vadd.f32 %v2664_v53, %v6613_v61  ;;  %v2214_v47 = vpop.f32.mrb[71].mxu0  ;;  %v2666_v57 = vpop.f32.mrb[71].mxu1  ;;  %3084 = vmatprep.subr.bf16.mxu0 %v1724_v30  ;;  %3536 = vmatprep.subr.bf16.mxu1 %v1726_v16  ;;  %v3649_v8 = vmax.f32 %v5167_v3, 0.0  ;;  %v3651_v62 = vmax.f32 %v5199_v1, 0.0  ;;  %v1748_v59 = vld [vmem:[#allocation2 + $0xee8] sm:$0xff]  ;;  %v1750_v53 = vld [vmem:[#allocation2 + $0xef8] sm:$0xff] }
 0x3c1   :  { %v5170_v27 = vadd.f32 %v2214_v47, %v6617_v49  ;;  %v5202_v58 = vadd.f32 %v2666_v57, %v6621_v41  ;;  %v3650_v42 = vmax.f32 %v5168_v2, 0.0  ;;  %v3652_v51 = vmax.f32 %v5200_v25, 0.0 }
 0x3c2   :  { %v3657_v50 = vmax.f32 %v5169_v0, 0.0  ;;  %v3659_v36 = vmax.f32 %v5201_v18, 0.0  ;;  %3028 = vmatmul.mubr.bf16.gmra.mrb[112].mxu0 %v7073_v11  ;;  %3480 = vmatmul.mubr.bf16.gmra.mrb[112].mxu1 %v7073_v11 }
 0x3c3   :  { %v3658_v22 = vmax.f32 %v5170_v27, 0.0  ;;  %v3660_v7 = vmax.f32 %v5202_v58, 0.0  ;;  %3085 = vmatpush1.bf16.msra.mxu0 %v1723_v46  ;;  %3537 = vmatpush1.bf16.msra.mxu1 %v1725_v56 }
 0x3c4   :  { %v6655_v37 = vpack.c.bf16 %v3657_v50, %v3649_v8  ;;  %v6657_v55 = vpack.c.bf16 %v3659_v36, %v3651_v62  ;;  %3086 = vmatprep.subr.bf16.mxu0 %v1732_v23  ;;  %3538 = vmatprep.subr.bf16.mxu1 %v1734_v12  ;;  %v1747_v8 = vld [vmem:[#allocation2 + $0xee0] sm:$0xff]  ;;  %v1749_v62 = vld [vmem:[#allocation2 + $0xef0] sm:$0xff] }
 0x3c5   :  { %v6659_v6 = vpack.c.bf16 %v3658_v22, %v3650_v42  ;;  %v6661_v44 = vpack.c.bf16 %v3660_v7, %v3652_v51  ;;  %v2218_v54 = vpop.f32.mrb[72].mxu0  ;;  %v2670_v11 = vpop.f32.mrb[72].mxu1  ;;  %3037 = vmatprep.mubr.bf16.mxu0 %v7074_v39  ;;  %3489 = vmatprep.mubr.bf16.mxu1 %v7074_v39  ;;  %v1756_v51 = vld [vmem:[#allocation2 + $0xf28] sm:$0xff]  ;;  %v1758_v22 = vld [vmem:[#allocation2 + $0xf38] sm:$0xff] }
 0x3c6   :  { %v5171_v52 = vadd.f32 %v2218_v54, %v6609_v17  ;;  %v5203_v19 = vadd.f32 %v2670_v11, %v6613_v61  ;;  %v2220_v33 = vpop.f32.mrb[73].mxu0  ;;  %v2672_v15 = vpop.f32.mrb[73].mxu1 }
 0x3c7   :  { %v5172_v32 = vadd.f32 %v2220_v33, %v6617_v49  ;;  %v5204_v9 = vadd.f32 %v2672_v15, %v6621_v41  ;;  %v2222_v45 = vpop.f32.mrb[74].mxu0  ;;  %v2674_v30 = vpop.f32.mrb[74].mxu1  ;;  %3087 = vmatpush1.bf16.msra.mxu0 %v1731_v43  ;;  %3539 = vmatpush1.bf16.msra.mxu1 %v1733_v31 }
 0x3c8   :  { %v5173_v16 = vadd.f32 %v2222_v45, %v6609_v17  ;;  %v5205_v39 = vadd.f32 %v2674_v30, %v6613_v61  ;;  %v2224_v3 = vpop.f32.mrb[75].mxu0  ;;  %v2676_v1 = vpop.f32.mrb[75].mxu1  ;;  %3088 = vmatprep.subr.bf16.mxu0 %v1740_v24  ;;  %3540 = vmatprep.subr.bf16.mxu1 %v1742_v21  ;;  %v3665_v0 = vmax.f32 %v5171_v52, 0.0  ;;  %v3667_v18 = vmax.f32 %v5203_v19, 0.0 }
 0x3c9   :  { %v5174_v2 = vadd.f32 %v2224_v3, %v6617_v49  ;;  %v5206_v25 = vadd.f32 %v2676_v1, %v6621_v41  ;;  %v3666_v46 = vmax.f32 %v5172_v32, 0.0  ;;  %v3668_v56 = vmax.f32 %v5204_v9, 0.0  ;;  %v1755_v32 = vld [vmem:[#allocation2 + $0xf20] sm:$0xff]  ;;  %v1757_v9 = vld [vmem:[#allocation2 + $0xf30] sm:$0xff] }
 0x3ca   :  { %v3673_v47 = vmax.f32 %v5173_v16, 0.0  ;;  %v3675_v57 = vmax.f32 %v5205_v39, 0.0  ;;  %3038 = vmatmul.mubr.bf16.gmra.mrb[116].mxu0 %v7075_v4  ;;  %3490 = vmatmul.mubr.bf16.gmra.mrb[116].mxu1 %v7075_v4  ;;  %v1764_v16 = vld [vmem:[#allocation2 + $0xf68] sm:$0xff]  ;;  %v1766_v39 = vld [vmem:[#allocation2 + $0xf78] sm:$0xff] }
 0x3cb   :  { %v3674_v27 = vmax.f32 %v5174_v2, 0.0  ;;  %v3676_v58 = vmax.f32 %v5206_v25, 0.0  ;;  %3089 = vmatpush1.bf16.msra.mxu0 %v1739_v13  ;;  %3541 = vmatpush1.bf16.msra.mxu1 %v1741_v10 }
 0x3cc   :  { %v6675_v23 = vpack.c.bf16 %v3673_v47, %v3665_v0  ;;  %v6677_v12 = vpack.c.bf16 %v3675_v57, %v3667_v18  ;;  %3090 = vmatprep.subr.bf16.mxu0 %v1748_v59  ;;  %3542 = vmatprep.subr.bf16.mxu1 %v1750_v53  ;;  %v1763_v47 = vld [vmem:[#allocation2 + $0xf60] sm:$0xff]  ;;  %v1765_v57 = vld [vmem:[#allocation2 + $0xf70] sm:$0xff] }
 0x3cd   :  { %v6679_v50 = vpack.c.bf16 %v3674_v27, %v3666_v46  ;;  %v6681_v36 = vpack.c.bf16 %v3676_v58, %v3668_v56  ;;  %v2228_v42 = vpop.f32.mrb[76].mxu0  ;;  %v2680_v4 = vpop.f32.mrb[76].mxu1  ;;  %3047 = vmatprep.mubr.bf16.mxu0 %v6383_v48  ;;  %3499 = vmatprep.mubr.bf16.mxu1 %v6383_v48  ;;  %v1772_v58 = vld [vmem:[#allocation2 + $0xfa8] sm:$0xff] }
 0x3ce   :  { %v5175_v7 = vadd.f32 %v2228_v42, %v6609_v17  ;;  %v5207_v43 = vadd.f32 %v2680_v4, %v6613_v61  ;;  %v2230_v31 = vpop.f32.mrb[77].mxu0  ;;  %v2682_v54 = vpop.f32.mrb[77].mxu1 }
 0x3cf   :  { %v5176_v11 = vadd.f32 %v2230_v31, %v6617_v49  ;;  %v5208_v24 = vadd.f32 %v2682_v54, %v6621_v41  ;;  %v2232_v21 = vpop.f32.mrb[78].mxu0  ;;  %v2684_v52 = vpop.f32.mrb[78].mxu1  ;;  %3091 = vmatpush1.bf16.msra.mxu0 %v1747_v8  ;;  %3543 = vmatpush1.bf16.msra.mxu1 %v1749_v62  ;;  %v1774_v8 = vld [vmem:[#allocation2 + $0xfb8] sm:$0xff] }
 0x3d0   :  { %v5177_v19 = vadd.f32 %v2232_v21, %v6609_v17  ;;  %v5209_v48 = vadd.f32 %v2684_v52, %v6613_v61  ;;  %v2234_v33 = vpop.f32.mrb[79].mxu0  ;;  %v2686_v15 = vpop.f32.mrb[79].mxu1  ;;  %3092 = vmatprep.subr.bf16.mxu0 %v1756_v51  ;;  %3544 = vmatprep.subr.bf16.mxu1 %v1758_v22  ;;  %v3681_v3 = vmax.f32 %v5175_v7, 0.0  ;;  %v3683_v1 = vmax.f32 %v5207_v43, 0.0  ;;  %v1771_v21 = vld [vmem:[#allocation2 + $0xfa0] sm:$0xff]  ;;  %v1773_v52 = vld [vmem:[#allocation2 + $0xfb0] sm:$0xff] }
 0x3d1   :  { %v5178_v45 = vadd.f32 %v2234_v33, %v6617_v49  ;;  %v5210_v30 = vadd.f32 %v2686_v15, %v6621_v41  ;;  %v3682_v2 = vmax.f32 %v5176_v11, 0.0  ;;  %v3684_v25 = vmax.f32 %v5208_v24, 0.0  ;;  %v1780_v33 = vld [vmem:[#allocation2 + $0xfe8] sm:$0xff]  ;;  %v1782_v15 = vld [vmem:[#allocation2 + $0xff8] sm:$0xff] }
 0x3d2   :  { %v3689_v13 = vmax.f32 %v5177_v19, 0.0  ;;  %v3691_v10 = vmax.f32 %v5209_v48, 0.0  ;;  %3048 = vmatmul.mubr.bf16.gmra.mrb[120].mxu0 %v6379_v29  ;;  %3500 = vmatmul.mubr.bf16.gmra.mrb[120].mxu1 %v6379_v29 }
 0x3d3   :  { %v3690_v59 = vmax.f32 %v5178_v45, 0.0  ;;  %v3692_v53 = vmax.f32 %v5210_v30, 0.0  ;;  %3093 = vmatpush1.bf16.msra.mxu0 %v1755_v32  ;;  %3545 = vmatpush1.bf16.msra.mxu1 %v1757_v9 }
 0x3d4   :  { %v6695_v0 = vpack.c.bf16 %v3689_v13, %v3681_v3  ;;  %v6697_v18 = vpack.c.bf16 %v3691_v10, %v3683_v1  ;;  %3094 = vmatprep.subr.bf16.mxu0 %v1764_v16  ;;  %3546 = vmatprep.subr.bf16.mxu1 %v1766_v39  ;;  %v1779_v13 = vld [vmem:[#allocation2 + $0xfe0] sm:$0xff] }
 0x3d5   :  { %v6699_v46 = vpack.c.bf16 %v3690_v59, %v3682_v2  ;;  %v6701_v56 = vpack.c.bf16 %v3692_v53, %v3684_v25  ;;  %v2238_v27 = vpop.f32.mrb[80].mxu0  ;;  %v2690_v29 = vpop.f32.mrb[80].mxu1  ;;  %3057 = vmatprep.mubr.bf16.mxu0 %v6399_v26  ;;  %3509 = vmatprep.mubr.bf16.mxu1 %v6399_v26  ;;  %v1781_v25 = vld [vmem:[#allocation2 + $0xff0] sm:$0xff] }
 0x3d6   :  { %v5179_v62 = vadd.f32 %v2238_v27, %v6609_v17  ;;  %v5211_v42 = vadd.f32 %v2690_v29, %v6613_v61  ;;  %v2240_v4 = vpop.f32.mrb[81].mxu0  ;;  %v2692_v51 = vpop.f32.mrb[81].mxu1  ;;  %v5706_v59 = vld [vmem:[#allocation13 + $0x40] sm:$0xff]  }
 0x3d7   :  { %v5180_v22 = vadd.f32 %v2240_v4, %v6617_v49  ;;  %v5212_v7 = vadd.f32 %v2692_v51, %v6621_v41  ;;  %v2242_v43 = vpop.f32.mrb[82].mxu0  ;;  %v2694_v31 = vpop.f32.mrb[82].mxu1  ;;  %3095 = vmatpush1.bf16.msra.mxu0 %v1763_v47  ;;  %3547 = vmatpush1.bf16.msra.mxu1 %v1765_v57  ;;  %v5707_v53 = vld [vmem:[#allocation13 + $0xc0] sm:$0xff]  }
 0x3d8   :  { %v5181_v54 = vadd.f32 %v2242_v43, %v6609_v17  ;;  %v5213_v26 = vadd.f32 %v2694_v31, %v6613_v61  ;;  %v2244_v11 = vpop.f32.mrb[83].mxu0  ;;  %v2696_v24 = vpop.f32.mrb[83].mxu1  ;;  %3096 = vmatprep.subr.bf16.mxu0 %v1772_v58  ;;  %3548 = vmatprep.subr.bf16.mxu1 %v1774_v8  ;;  %v3697_v32 = vmax.f32 %v5179_v62, 0.0  ;;  %v3699_v9 = vmax.f32 %v5211_v42, 0.0 }
 0x3d9   :  { %v5182_v19 = vadd.f32 %v2244_v11, %v6617_v49  ;;  %v5214_v48 = vadd.f32 %v2696_v24, %v6621_v41  ;;  %v3698_v16 = vmax.f32 %v5180_v22, 0.0  ;;  %v3700_v39 = vmax.f32 %v5212_v7, 0.0 }
 0x3da   :  { %v3705_v45 = vmax.f32 %v5181_v54, 0.0  ;;  %v3707_v30 = vmax.f32 %v5213_v26, 0.0  ;;  %3058 = vmatmul.mubr.bf16.gmra.mrb[124].mxu0 %v6395_v14  ;;  %3510 = vmatmul.mubr.bf16.gmra.mrb[124].mxu1 %v6395_v14  ;;  %v5708_v54 = vld [vmem:[#allocation13] sm:$0xff]  }
 0x3db   :  { %v3706_v3 = vmax.f32 %v5182_v19, 0.0  ;;  %v3708_v1 = vmax.f32 %v5214_v48, 0.0  ;;  %3097 = vmatpush1.bf16.msra.mxu0 %v1771_v21  ;;  %3549 = vmatpush1.bf16.msra.mxu1 %v1773_v52  ;;  %v5709_v26 = vld [vmem:[#allocation13 + $0x80] sm:$0xff]   ;;  %v5710_v21 = vld [vmem:[#allocation13 + $0x48] sm:$0xff]  }
 0x3dc   :  { %v6715_v10 = vpack.c.bf16 %v3705_v45, %v3697_v32  ;;  %v6717_v2 = vpack.c.bf16 %v3707_v30, %v3699_v9  ;;  %3098 = vmatprep.subr.bf16.mxu0 %v1780_v33  ;;  %3550 = vmatprep.subr.bf16.mxu1 %v1782_v15  ;;  %v5711_v52 = vld [vmem:[#allocation13 + $0xc8] sm:$0xff]  }
 0x3dd   :  { %v6719_v47 = vpack.c.bf16 %v3706_v3, %v3698_v16  ;;  %v6721_v57 = vpack.c.bf16 %v3708_v1, %v3700_v39  ;;  %v2248_v14 = vpop.f32.mrb[84].mxu0  ;;  %v2700_v27 = vpop.f32.mrb[84].mxu1  ;;  %3100 = vmatprep.mubr.bf16.mxu0 %v7076_v60  ;;  %3552 = vmatprep.mubr.bf16.mxu1 %v7076_v60  ;;  %v7095_v32 = vld [vmem:[#allocation23_spill] sm:$0xff]  ;;  %v7096_v39 = vld [vmem:[#allocation26_spill] sm:$0xff] }
 0x3de   :  { %v5183_v29 = vadd.f32 %v2248_v14, %v6609_v17  ;;  %v5215_v58 = vadd.f32 %v2700_v27, %v6613_v61  ;;  %v2250_v8 = vpop.f32.mrb[85].mxu0  ;;  %v2702_v62 = vpop.f32.mrb[85].mxu1 }
 0x3df   :  { %v5184_v42 = vadd.f32 %v2250_v8, %v6617_v49  ;;  %v5216_v4 = vadd.f32 %v2702_v62, %v6621_v41  ;;  %v2252_v51 = vpop.f32.mrb[86].mxu0  ;;  %v2704_v22 = vpop.f32.mrb[86].mxu1  ;;  %3099 = vmatpush1.bf16.msra.mxu0 %v1779_v13  ;;  %3551 = vmatpush1.bf16.msra.mxu1 %v1781_v25  ;;  %v5712_v13 = vld [vmem:[#allocation13 + $0x8] sm:$0xff]  }
 0x3e0   :  { %v5185_v7 = vadd.f32 %v2252_v51, %v6609_v17  ;;  %v5217_v43 = vadd.f32 %v2704_v22, %v6613_v61  ;;  %v2254_v31 = vpop.f32.mrb[87].mxu0  ;;  %v2706_v60 = vpop.f32.mrb[87].mxu1  ;;  %4907 = vmatprep.subr.bf16.mxu0 %v5706_v59  ;;  %4971 = vmatprep.subr.bf16.mxu1 %v5707_v53  ;;  %v3713_v19 = vmax.f32 %v5183_v29, 0.0  ;;  %v3715_v48 = vmax.f32 %v5215_v58, 0.0  ;;  %v5713_v25 = vld [vmem:[#allocation13 + $0x88] sm:$0xff]   ;;  %v5714_v29 = vld [vmem:[#allocation13 + $0x50] sm:$0xff]  }
 0x3e1   :  { %v5186_v11 = vadd.f32 %v2254_v31, %v6617_v49  ;;  %v5218_v24 = vadd.f32 %v2706_v60, %v6621_v41  ;;  %v3714_v9 = vmax.f32 %v5184_v42, 0.0  ;;  %v3716_v45 = vmax.f32 %v5216_v4, 0.0  ;;  %v5715_v58 = vld [vmem:[#allocation13 + $0xd0] sm:$0xff]  }
 0x3e2   :  { %v3721_v33 = vmax.f32 %v5185_v7, 0.0  ;;  %v3723_v15 = vmax.f32 %v5217_v43, 0.0  ;;  %3101 = vmatmul.mubr.bf16.vlgmr.msra.gmra.mrb[96].mxu0 %v7095_v32  ;;  %3553 = vmatmul.mubr.bf16.vlgmr.msra.gmra.mrb[96].mxu1 %v7095_v32 }
 0x3e3   :  { %v3722_v30 = vmax.f32 %v5186_v11, 0.0  ;;  %v3724_v16 = vmax.f32 %v5218_v24, 0.0  ;;  %3110 = vmatprep.mubr.bf16.mxu0 %v7096_v39  ;;  %3562 = vmatprep.mubr.bf16.mxu1 %v7096_v39  ;;  %v5716_v11 = vld [vmem:[#allocation13 + $0x10] sm:$0xff]  }
 0x3e4   :  { %v6737_v3 = vpack.c.bf16 %v3721_v33, %v3713_v19  ;;  %v6739_v1 = vpack.c.bf16 %v3723_v15, %v3715_v48  ;;  %4908 = vmatpush3.bf16.msra.mxu0 %v5708_v54  ;;  %4972 = vmatpush3.bf16.msra.mxu1 %v5709_v26  ;;  %v5717_v24 = vld [vmem:[#allocation13 + $0x90] sm:$0xff]   ;;  %v5718_v19 = vld [vmem:[#allocation13 + $0x58] sm:$0xff]  }
 0x3e5   :  { %v6741_v59 = vpack.c.bf16 %v3722_v30, %v3714_v9  ;;  %v6743_v53 = vpack.c.bf16 %v3724_v16, %v3716_v45  ;;  %v2258_v14 = vpop.f32.mrb[88].mxu0  ;;  %v2710_v27 = vpop.f32.mrb[88].mxu1  ;;  %4909 = vmatprep.subr.bf16.mxu0 %v5710_v21  ;;  %4973 = vmatprep.subr.bf16.mxu1 %v5711_v52  ;;  %v5719_v48 = vld [vmem:[#allocation13 + $0xd8] sm:$0xff]  }
 0x3e6   :  { %v5187_v8 = vadd.f32 %v2258_v14, %v6609_v17  ;;  %v5219_v62 = vadd.f32 %v2710_v27, %v6613_v61  ;;  %v2260_v42 = vpop.f32.mrb[89].mxu0  ;;  %v2712_v4 = vpop.f32.mrb[89].mxu1  ;;  %v7097_v45 = vld [vmem:[#allocation25_spill] sm:$0xff] }
 0x3e7   :  { %v5188_v51 = vadd.f32 %v2260_v42, %v6617_v49  ;;  %v5220_v22 = vadd.f32 %v2712_v4, %v6621_v41  ;;  %v2262_v7 = vpop.f32.mrb[90].mxu0  ;;  %v2714_v43 = vpop.f32.mrb[90].mxu1 }
 0x3e8   :  { %v5189_v31 = vadd.f32 %v2262_v7, %v6609_v17  ;;  %v5221_v60 = vadd.f32 %v2714_v43, %v6613_v61  ;;  %v2264_v54 = vpop.f32.mrb[91].mxu0  ;;  %v2716_v26 = vpop.f32.mrb[91].mxu1  ;;  %4910 = vmatpush3.bf16.msra.mxu0 %v5712_v13  ;;  %4974 = vmatpush3.bf16.msra.mxu1 %v5713_v25  ;;  %v3729_v33 = vmax.f32 %v5187_v8, 0.0  ;;  %v3731_v15 = vmax.f32 %v5219_v62, 0.0  ;;  %v7098_v25 = vld [vmem:[#allocation29_spill] sm:$0xff] }
 0x3e9   :  { %v5190_v21 = vadd.f32 %v2264_v54, %v6617_v49  ;;  %v5222_v52 = vadd.f32 %v2716_v26, %v6621_v41  ;;  %4911 = vmatprep.subr.bf16.mxu0 %v5714_v29  ;;  %4975 = vmatprep.subr.bf16.mxu1 %v5715_v58  ;;  %v3730_v30 = vmax.f32 %v5188_v51, 0.0  ;;  %v3732_v16 = vmax.f32 %v5220_v22, 0.0  ;;  %v5720_v29 = vld [vmem:[#allocation13 + $0x18] sm:$0xff]   ;;  %v5722_v51 = vld [vmem:[#allocation13 + $0x60] sm:$0xff]  }
 0x3ea   :  { %v3737_v32 = vmax.f32 %v5189_v31, 0.0  ;;  %v3739_v9 = vmax.f32 %v5221_v60, 0.0  ;;  %3111 = vmatmul.mubr.bf16.gmra.mrb[100].mxu0 %v7097_v45  ;;  %3563 = vmatmul.mubr.bf16.gmra.mrb[100].mxu1 %v7097_v45  ;;  %v5721_v58 = vld [vmem:[#allocation13 + $0x98] sm:$0xff]   ;;  %v5723_v22 = vld [vmem:[#allocation13 + $0xe0] sm:$0xff]   ;;  %v5726_v45 = vld [vmem:[#allocation13 + $0x68] sm:$0xff]  }
 0x3eb   :  { %v3738_v39 = vmax.f32 %v5190_v21, 0.0  ;;  %v3740_v13 = vmax.f32 %v5222_v52, 0.0  ;;  %3120 = vmatprep.mubr.bf16.mxu0 %v7098_v25  ;;  %3572 = vmatprep.mubr.bf16.mxu1 %v7098_v25  ;;  %v7099_v25 = vld [vmem:[#allocation28_spill] sm:$0xff] }
 0x3ec   :  { %v6757_v14 = vpack.c.bf16 %v3737_v32, %v3729_v33  ;;  %v6759_v27 = vpack.c.bf16 %v3739_v9, %v3731_v15  ;;  %4912 = vmatpush3.bf16.msra.mxu0 %v5716_v11  ;;  %4976 = vmatpush3.bf16.msra.mxu1 %v5717_v24  ;;  %v5724_v33 = vld [vmem:[#allocation13 + $0x20] sm:$0xff]  }
 0x3ed   :  { %v6761_v8 = vpack.c.bf16 %v3738_v39, %v3730_v30  ;;  %v6763_v62 = vpack.c.bf16 %v3740_v13, %v3732_v16  ;;  %v2268_v42 = vpop.f32.mrb[92].mxu0  ;;  %v2720_v4 = vpop.f32.mrb[92].mxu1  ;;  %4913 = vmatprep.subr.bf16.mxu0 %v5718_v19  ;;  %4977 = vmatprep.subr.bf16.mxu1 %v5719_v48  ;;  %v5725_v15 = vld [vmem:[#allocation13 + $0xa0] sm:$0xff]   ;;  %v5727_v30 = vld [vmem:[#allocation13 + $0xe8] sm:$0xff]  }
 0x3ee   :  { %v5191_v7 = vadd.f32 %v2268_v42, %v6609_v17  ;;  %v5223_v43 = vadd.f32 %v2720_v4, %v6613_v61  ;;  %v2270_v31 = vpop.f32.mrb[93].mxu0  ;;  %v2722_v60 = vpop.f32.mrb[93].mxu1  ;;  %v7100_v4 = vld [vmem:[#allocation33_spill] sm:$0xff] }
 0x3ef   :  { %v5192_v54 = vadd.f32 %v2270_v31, %v6617_v49  ;;  %v5224_v26 = vadd.f32 %v2722_v60, %v6621_v41  ;;  %v2272_v11 = vpop.f32.mrb[94].mxu0  ;;  %v2724_v24 = vpop.f32.mrb[94].mxu1  ;;  %v5730_v31 = vld [vmem:[#allocation13 + $0x70] sm:$0xff]  }
 0x3f0   :  { %v5193_v21 = vadd.f32 %v2272_v11, %v6609_v17  ;;  %v5225_v52 = vadd.f32 %v2724_v24, %v6613_v61  ;;  %v2274_v19 = vpop.f32.mrb[95].mxu0  ;;  %v2726_v48 = vpop.f32.mrb[95].mxu1  ;;  %4914 = vmatpush3.bf16.msra.mxu0 %v5720_v29  ;;  %4978 = vmatpush3.bf16.msra.mxu1 %v5721_v58  ;;  %v3745_v16 = vmax.f32 %v5191_v7, 0.0  ;;  %v3747_v39 = vmax.f32 %v5223_v43, 0.0  ;;  %v5731_v60 = vld [vmem:[#allocation13 + $0xf0] sm:$0xff]   ;;  %v5734_v11 = vld [vmem:[#allocation13 + $0x78] sm:$0xff]  }
 0x3f1   :  { %v5194_v32 = vadd.f32 %v2274_v19, %v6617_v49  ;;  %v5226_v9 = vadd.f32 %v2726_v48, %v6621_v41  ;;  %4915 = vmatprep.subr.bf16.mxu0 %v5722_v51  ;;  %4979 = vmatprep.subr.bf16.mxu1 %v5723_v22  ;;  %v3746_v61 = vmax.f32 %v5192_v54, 0.0  ;;  %v3748_v29 = vmax.f32 %v5224_v26, 0.0  ;;  %v5728_v51 = vld [vmem:[#allocation13 + $0x28] sm:$0xff]   ;;  %v5732_v54 = vld [vmem:[#allocation13 + $0x30] sm:$0xff]   ;;  %v5735_v24 = vld [vmem:[#allocation13 + $0xf8] sm:$0xff]  }
 0x3f2   :  { %v3753_v13 = vmax.f32 %v5193_v21, 0.0  ;;  %v3755_v17 = vmax.f32 %v5225_v52, 0.0  ;;  %3121 = vmatmul.mubr.bf16.gmra.mrb[104].mxu0 %v7099_v25  ;;  %3573 = vmatmul.mubr.bf16.gmra.mrb[104].mxu1 %v7099_v25  ;;  %v5729_v22 = vld [vmem:[#allocation13 + $0xa8] sm:$0xff]   ;;  %v5733_v26 = vld [vmem:[#allocation13 + $0xb0] sm:$0xff]   ;;  %v7102_v52 = vld [vmem:[#allocation37_spill] sm:$0xff] }
 0x3f3   :  { %v3754_v58 = vmax.f32 %v5194_v32, 0.0  ;;  %v3756_v42 = vmax.f32 %v5226_v9, 0.0  ;;  %3130 = vmatprep.mubr.bf16.mxu0 %v7100_v4  ;;  %3582 = vmatprep.mubr.bf16.mxu1 %v7100_v4  ;;  %v7101_v21 = vld [vmem:[#allocation31_spill] sm:$0xff]  ;;  %v5736_v19 = vld [vmem:[#allocation13 + $0x38] sm:$0xff]   ;;  %v5749_v25 = vld [vmem:[#allocation13 + $0x190] sm:$0xff]  }
 0x3f4   :  { %v6777_v49 = vpack.c.bf16 %v3753_v13, %v3745_v16  ;;  %v6779_v41 = vpack.c.bf16 %v3755_v17, %v3747_v39  ;;  %4916 = vmatpush3.bf16.msra.mxu0 %v5724_v33  ;;  %4980 = vmatpush3.bf16.msra.mxu1 %v5725_v15  ;;  %v5737_v48 = vld [vmem:[#allocation13 + $0xb8] sm:$0xff]   ;;  %v5738_v33 = vld [vmem:[#allocation13 + $0x140] sm:$0xff]   ;;  %v7103_v32 = vld [vmem:[#allocation35_spill] sm:$0xff] }
 0x3f5   :  { %v6781_v7 = vpack.c.bf16 %v3754_v58, %v3746_v61  ;;  %v6783_v43 = vpack.c.bf16 %v3756_v42, %v3748_v29  ;;  %4917 = vmatprep.subr.bf16.mxu0 %v5726_v45  ;;  %4981 = vmatprep.subr.bf16.mxu1 %v5727_v30  ;;  %v5740_v15 = vld [vmem:[#allocation13 + $0x1c0] sm:$0xff]   ;;  %v7104_v9 = vld [vmem:[#allocation41_spill] sm:$0xff]  ;;  %v7105_v45 = vld [vmem:[#allocation39_spill] sm:$0xff] }
 0x3f6   :  { %v7106_v30 = vld [vmem:[#allocation42_spill] sm:$0xff]  ;;  %v5742_v13 = vld [vmem:[#allocation13 + $0x148] sm:$0xff]   ;;  %v5747_v17 = vld [vmem:[#allocation13 + $0x110] sm:$0xff]  }
 0x3f7   :  { %v5739_v16 = vld [vmem:[#allocation13 + $0x100] sm:$0xff]   ;;  %v5762_v4 = vld [vmem:[#allocation13 + $0x170] sm:$0xff]  }
 0x3f8   :  { %4918 = vmatpush3.bf16.msra.mxu0 %v5728_v51  ;;  %4982 = vmatpush3.bf16.msra.mxu1 %v5729_v22  ;;  %v5741_v39 = vld [vmem:[#allocation13 + $0x180] sm:$0xff]   ;;  %v5764_v51 = vld [vmem:[#allocation13 + $0x1f0] sm:$0xff]  }
 0x3f9   :  { %4919 = vmatprep.subr.bf16.mxu0 %v5730_v31  ;;  %4983 = vmatprep.subr.bf16.mxu1 %v5731_v60  ;;  %v5754_v61 = vld [vmem:[#allocation13 + $0x160] sm:$0xff]   ;;  %v5763_v22 = vld [vmem:[#allocation13 + $0x130] sm:$0xff]  }
 0x3fa   :  { %3131 = vmatmul.mubr.bf16.gmra.mrb[108].mxu0 %v7101_v21  ;;  %3583 = vmatmul.mubr.bf16.gmra.mrb[108].mxu1 %v7101_v21  ;;  %v5756_v29 = vld [vmem:[#allocation13 + $0x1e0] sm:$0xff]   ;;  %v5765_v31 = vld [vmem:[#allocation13 + $0x1b0] sm:$0xff]  }
 0x3fb   :  { %3140 = vmatprep.mubr.bf16.mxu0 %v7102_v52  ;;  %3592 = vmatprep.mubr.bf16.mxu1 %v7102_v52  ;;  %v5755_v58 = vld [vmem:[#allocation13 + $0x120] sm:$0xff]  }
 0x3fc   :  { %4920 = vmatpush3.bf16.msra.mxu0 %v5732_v54  ;;  %4984 = vmatpush3.bf16.msra.mxu1 %v5733_v26  ;;  %v5757_v42 = vld [vmem:[#allocation13 + $0x1a0] sm:$0xff]  }
 0x3fd   :  { %4921 = vmatprep.subr.bf16.mxu0 %v5734_v11  ;;  %4985 = vmatprep.subr.bf16.mxu1 %v5735_v24 }
 0x400   :  { %4922 = vmatpush3.bf16.msra.mxu0 %v5736_v19  ;;  %4986 = vmatpush3.bf16.msra.mxu1 %v5737_v48 }
 0x401   :  { %5035 = vmatprep.subr.bf16.mxu0 %v5738_v33  ;;  %5099 = vmatprep.subr.bf16.mxu1 %v5740_v15 }
 0x402   :  { %3141 = vmatmul.mubr.bf16.gmra.mrb[112].mxu0 %v7103_v32  ;;  %3593 = vmatmul.mubr.bf16.gmra.mrb[112].mxu1 %v7103_v32 }
 0x403   :  { %3150 = vmatprep.mubr.bf16.mxu0 %v7104_v9  ;;  %3602 = vmatprep.mubr.bf16.mxu1 %v7104_v9 }
 0x40a   :  { %3151 = vmatmul.mubr.bf16.gmra.mrb[116].mxu0 %v7105_v45  ;;  %3603 = vmatmul.mubr.bf16.gmra.mrb[116].mxu1 %v7105_v45 }
 0x40b   :  { %3160 = vmatprep.mubr.bf16.mxu0 %v7088_v38  ;;  %3612 = vmatprep.mubr.bf16.mxu1 %v7088_v38  ;;  %v5744_v38 = vld [vmem:[#allocation13 + $0x1c8] sm:$0xff]  }
 0x412   :  { %3161 = vmatmul.mubr.bf16.gmra.mrb[120].mxu0 %v7106_v30  ;;  %3613 = vmatmul.mubr.bf16.gmra.mrb[120].mxu1 %v7106_v30 }
 0x413   :  { %3170 = vmatprep.mubr.bf16.mxu0 %v6401_v35  ;;  %3622 = vmatprep.mubr.bf16.mxu1 %v6401_v35  ;;  %v5743_v35 = vld [vmem:[#allocation13 + $0x108] sm:$0xff]  }
 0x41a   :  { %3171 = vmatmul.mubr.bf16.gmra.mrb[124].mxu0 %v6397_v34  ;;  %3623 = vmatmul.mubr.bf16.gmra.mrb[124].mxu1 %v6397_v34  ;;  %v5745_v34 = vld [vmem:[#allocation13 + $0x188] sm:$0xff]  }
 0x41b   :  { %4371 = vmatprep.mubr.bf16.mxu0 %v6639_v20  ;;  %4468 = vmatprep.mubr.bf16.mxu1 %v6641_v28  ;;  %v5746_v20 = vld [vmem:[#allocation13 + $0x150] sm:$0xff]  }
 0x41c   :  { %v5748_v28 = vld [vmem:[#allocation13 + $0x1d0] sm:$0xff]  }
 0x422   :  { %4372 = vmatmul.mubr.bf16.vlgmr.msra.gmra.mrb[128].mxu0 %v6635_v63  ;;  %4469 = vmatmul.mubr.bf16.vlgmr.msra.gmra.mrb[128].mxu1 %v6637_v40  ;;  %v5750_v63 = vld [vmem:[#allocation13 + $0x158] sm:$0xff]  }
 0x423   :  { %4379 = vmatprep.mubr.bf16.mxu0 %v6659_v6  ;;  %4476 = vmatprep.mubr.bf16.mxu1 %v6661_v44  ;;  %v5752_v40 = vld [vmem:[#allocation13 + $0x1d8] sm:$0xff]  }
 0x424   :  { %5036 = vmatpush3.bf16.msra.mxu0 %v5739_v16  ;;  %5100 = vmatpush3.bf16.msra.mxu1 %v5741_v39  ;;  %v5751_v6 = vld [vmem:[#allocation13 + $0x118] sm:$0xff]  }
 0x425   :  { %5037 = vmatprep.subr.bf16.mxu0 %v5742_v13  ;;  %5101 = vmatprep.subr.bf16.mxu1 %v5744_v38  ;;  %v5753_v44 = vld [vmem:[#allocation13 + $0x198] sm:$0xff]  }
 0x428   :  { %5038 = vmatpush3.bf16.msra.mxu0 %v5743_v35  ;;  %5102 = vmatpush3.bf16.msra.mxu1 %v5745_v34 }
 0x429   :  { %5039 = vmatprep.subr.bf16.mxu0 %v5746_v20  ;;  %5103 = vmatprep.subr.bf16.mxu1 %v5748_v28 }
 0x42a   :  { %4380 = vmatmul.mubr.bf16.gmra.mrb[132].mxu0 %v6655_v37  ;;  %4477 = vmatmul.mubr.bf16.gmra.mrb[132].mxu1 %v6657_v55  ;;  %v5758_v37 = vld [vmem:[#allocation13 + $0x168] sm:$0xff]  }
 0x42b   :  { %4387 = vmatprep.mubr.bf16.mxu0 %v6679_v50  ;;  %4484 = vmatprep.mubr.bf16.mxu1 %v6681_v36  ;;  %v5760_v55 = vld [vmem:[#allocation13 + $0x1e8] sm:$0xff]  }
 0x42c   :  { %5040 = vmatpush3.bf16.msra.mxu0 %v5747_v17  ;;  %5104 = vmatpush3.bf16.msra.mxu1 %v5749_v25  ;;  %v5759_v50 = vld [vmem:[#allocation13 + $0x128] sm:$0xff]  }
 0x42d   :  { %5041 = vmatprep.subr.bf16.mxu0 %v5750_v63  ;;  %5105 = vmatprep.subr.bf16.mxu1 %v5752_v40  ;;  %v5761_v36 = vld [vmem:[#allocation13 + $0x1a8] sm:$0xff]  }
 0x430   :  { %5042 = vmatpush3.bf16.msra.mxu0 %v5751_v6  ;;  %5106 = vmatpush3.bf16.msra.mxu1 %v5753_v44 }
 0x431   :  { %5043 = vmatprep.subr.bf16.mxu0 %v5754_v61  ;;  %5107 = vmatprep.subr.bf16.mxu1 %v5756_v29 }
 0x432   :  { %4388 = vmatmul.mubr.bf16.gmra.mrb[136].mxu0 %v6675_v23  ;;  %4485 = vmatmul.mubr.bf16.gmra.mrb[136].mxu1 %v6677_v12  ;;  %v5766_v23 = vld [vmem:[#allocation13 + $0x178] sm:$0xff]  }
 0x433   :  { %4395 = vmatprep.mubr.bf16.mxu0 %v6699_v46  ;;  %4492 = vmatprep.mubr.bf16.mxu1 %v6701_v56  ;;  %v5768_v12 = vld [vmem:[#allocation13 + $0x1f8] sm:$0xff]  }
 0x434   :  { %5044 = vmatpush3.bf16.msra.mxu0 %v5755_v58  ;;  %5108 = vmatpush3.bf16.msra.mxu1 %v5757_v42  ;;  %v5767_v46 = vld [vmem:[#allocation13 + $0x138] sm:$0xff]  }
 0x435   :  { %5045 = vmatprep.subr.bf16.mxu0 %v5758_v37  ;;  %5109 = vmatprep.subr.bf16.mxu1 %v5760_v55  ;;  %v5769_v56 = vld [vmem:[#allocation13 + $0x1b8] sm:$0xff]  }
 0x438   :  { %5046 = vmatpush3.bf16.msra.mxu0 %v5759_v50  ;;  %5110 = vmatpush3.bf16.msra.mxu1 %v5761_v36 }
 0x439   :  { %5047 = vmatprep.subr.bf16.mxu0 %v5762_v4  ;;  %5111 = vmatprep.subr.bf16.mxu1 %v5764_v51 }
 0x43a   :  { %4396 = vmatmul.mubr.bf16.gmra.mrb[140].mxu0 %v6695_v0  ;;  %4493 = vmatmul.mubr.bf16.gmra.mrb[140].mxu1 %v6697_v18  ;;  %v5770_v0 = vld [vmem:[#allocation11] sm:$0xff]  ;;  %v7107_v18 = vsub.s32 4, %v7090_v5 }
 0x43b   :  { %4403 = vmatprep.mubr.bf16.mxu0 %v6719_v47  ;;  %4500 = vmatprep.mubr.bf16.mxu1 %v6721_v57  ;;  %v7109_v57 = vsub.s32 5, %v7090_v5 }
 0x43c   :  { %5048 = vmatpush3.bf16.msra.mxu0 %v5763_v22  ;;  %5112 = vmatpush3.bf16.msra.mxu1 %v5765_v31 }
 0x43d   :  { %5049 = vmatprep.subr.bf16.mxu0 %v5766_v23  ;;  %5113 = vmatprep.subr.bf16.mxu1 %v5768_v12 }
 0x440   :  { %5050 = vmatpush3.bf16.msra.mxu0 %v5767_v46  ;;  %5114 = vmatpush3.bf16.msra.mxu1 %v5769_v56 }
 0x442   :  { %4404 = vmatmul.mubr.bf16.gmra.mrb[144].mxu0 %v6715_v10  ;;  %4501 = vmatmul.mubr.bf16.gmra.mrb[144].mxu1 %v6717_v2  ;;  %v6837_v10 = vrot.slane %v5770_v0, %v7107_v18  ;;  %v7108_v2 = vsub.s32 6, %v7090_v5 }
 0x443   :  { %4411 = vmatprep.mubr.bf16.mxu0 %v6741_v59  ;;  %4508 = vmatprep.mubr.bf16.mxu1 %v6743_v53 }
 0x444   :  { %v6841_v47 = vrot.slane %v5770_v0, %v7108_v2 }
 0x44a   :  { %4412 = vmatmul.mubr.bf16.gmra.mrb[148].mxu0 %v6737_v3  ;;  %4509 = vmatmul.mubr.bf16.gmra.mrb[148].mxu1 %v6739_v1  ;;  %v6845_v3 = vrot.slane %v5770_v0, %v7109_v57  ;;  %v7110_v1 = vsub.s32 7, %v7090_v5 }
 0x44b   :  { %4419 = vmatprep.mubr.bf16.mxu0 %v6761_v8  ;;  %4516 = vmatprep.mubr.bf16.mxu1 %v6763_v62 }
 0x44c   :  { %v6849_v59 = vrot.slane %v5770_v0, %v7110_v1 }
 0x452   :  { %4420 = vmatmul.mubr.bf16.gmra.mrb[152].mxu0 %v6757_v14  ;;  %4517 = vmatmul.mubr.bf16.gmra.mrb[152].mxu1 %v6759_v27 }
 0x453   :  { %4427 = vmatprep.mubr.bf16.mxu0 %v6781_v7  ;;  %4524 = vmatprep.mubr.bf16.mxu1 %v6783_v43 }
 0x45a   :  { %4428 = vmatmul.mubr.bf16.gmra.mrb[156].mxu0 %v6777_v49  ;;  %4525 = vmatmul.mubr.bf16.gmra.mrb[156].mxu1 %v6779_v41 }
 0x4b5   :  { %v3102_v53 = vpop.f32.mrb[96].mxu0  ;;  %v3554_v14 = vpop.f32.mrb[96].mxu1 }
 0x4b6   :  { %v5227_v27 = vadd.f32 %v3102_v53, %v6837_v10  ;;  %v5259_v8 = vadd.f32 %v3554_v14, %v6841_v47  ;;  %v3104_v62 = vpop.f32.mrb[97].mxu0  ;;  %v3556_v49 = vpop.f32.mrb[97].mxu1 }
 0x4b7   :  { %v5228_v41 = vadd.f32 %v3104_v62, %v6845_v3  ;;  %v5260_v7 = vadd.f32 %v3556_v49, %v6849_v59  ;;  %v3106_v43 = vpop.f32.mrb[98].mxu0  ;;  %v3558_v60 = vpop.f32.mrb[98].mxu1 }
 0x4b8   :  { %v5229_v54 = vadd.f32 %v3106_v43, %v6837_v10  ;;  %v5261_v5 = vadd.f32 %v3558_v60, %v6841_v47  ;;  %v3108_v26 = vpop.f32.mrb[99].mxu0  ;;  %v3560_v11 = vpop.f32.mrb[99].mxu1  ;;  %v3637_v52 = vmax.f32 %v5227_v27, 0.0  ;;  %v3639_v19 = vmax.f32 %v5259_v8, 0.0 }
 0x4b9   :  { %v5230_v24 = vadd.f32 %v3108_v26, %v6845_v3  ;;  %v5262_v21 = vadd.f32 %v3560_v11, %v6849_v59  ;;  %v3638_v15 = vmax.f32 %v5228_v41, 0.0  ;;  %v3640_v32 = vmax.f32 %v5260_v7, 0.0 }
 0x4ba   :  { %v3645_v48 = vmax.f32 %v5229_v54, 0.0  ;;  %v3647_v33 = vmax.f32 %v5261_v5, 0.0 }
 0x4bb   :  { %v3646_v9 = vmax.f32 %v5230_v24, 0.0  ;;  %v3648_v45 = vmax.f32 %v5262_v21, 0.0 }
 0x4bc   :  { %v3765_v30 = vpack.c.bf16 %v3645_v48, %v3637_v52  ;;  %v3767_v16 = vpack.c.bf16 %v3647_v33, %v3639_v19 }
 0x4bd   :  { %v3766_v39 = vpack.c.bf16 %v3646_v9, %v3638_v15  ;;  %v3768_v13 = vpack.c.bf16 %v3648_v45, %v3640_v32  ;;  %v3112_v38 = vpop.f32.mrb[100].mxu0  ;;  %v3564_v35 = vpop.f32.mrb[100].mxu1 }
 0x4be   :  { %v5231_v34 = vadd.f32 %v3112_v38, %v6837_v10  ;;  %v5263_v20 = vadd.f32 %v3564_v35, %v6841_v47  ;;  %v3114_v28 = vpop.f32.mrb[101].mxu0  ;;  %v3566_v17 = vpop.f32.mrb[101].mxu1 }
 0x4bf   :  { %v5232_v25 = vadd.f32 %v3114_v28, %v6845_v3  ;;  %v5264_v63 = vadd.f32 %v3566_v17, %v6849_v59  ;;  %v3116_v40 = vpop.f32.mrb[102].mxu0  ;;  %v3568_v6 = vpop.f32.mrb[102].mxu1  ;;  %4565 = vmatprep.mubr.bf16.mxu0 %v3766_v39  ;;  %4662 = vmatprep.mubr.bf16.mxu1 %v3768_v13 }
 0x4c0   :  { %v5233_v44 = vadd.f32 %v3116_v40, %v6837_v10  ;;  %v5265_v61 = vadd.f32 %v3568_v6, %v6841_v47  ;;  %v3118_v29 = vpop.f32.mrb[103].mxu0  ;;  %v3570_v58 = vpop.f32.mrb[103].mxu1  ;;  %4566 = vmatmul.mubr.bf16.vlgmr.msra.gmra.mrb[160].mxu0 %v3765_v30  ;;  %4663 = vmatmul.mubr.bf16.vlgmr.msra.gmra.mrb[160].mxu1 %v3767_v16  ;;  %v3653_v55 = vmax.f32 %v5231_v34, 0.0  ;;  %v3655_v50 = vmax.f32 %v5263_v20, 0.0 }
 0x4c1   :  { %v5234_v42 = vadd.f32 %v3118_v29, %v6845_v3  ;;  %v5266_v37 = vadd.f32 %v3570_v58, %v6849_v59  ;;  %v3654_v51 = vmax.f32 %v5232_v25, 0.0  ;;  %v3656_v22 = vmax.f32 %v5264_v63, 0.0 }
 0x4c2   :  { %v3661_v36 = vmax.f32 %v5233_v44, 0.0  ;;  %v3663_v4 = vmax.f32 %v5265_v61, 0.0 }
 0x4c3   :  { %v3662_v31 = vmax.f32 %v5234_v42, 0.0  ;;  %v3664_v23 = vmax.f32 %v5266_v37, 0.0 }
 0x4c4   :  { %v3773_v12 = vpack.c.bf16 %v3661_v36, %v3653_v55  ;;  %v3775_v46 = vpack.c.bf16 %v3663_v4, %v3655_v50 }
 0x4c5   :  { %v3774_v56 = vpack.c.bf16 %v3662_v31, %v3654_v51  ;;  %v3776_v0 = vpack.c.bf16 %v3664_v23, %v3656_v22  ;;  %v3122_v18 = vpop.f32.mrb[104].mxu0  ;;  %v3574_v2 = vpop.f32.mrb[104].mxu1 }
 0x4c6   :  { %v5235_v57 = vadd.f32 %v3122_v18, %v6837_v10  ;;  %v5267_v1 = vadd.f32 %v3574_v2, %v6841_v47  ;;  %v3124_v53 = vpop.f32.mrb[105].mxu0  ;;  %v3576_v14 = vpop.f32.mrb[105].mxu1 }
 0x4c7   :  { %v5236_v27 = vadd.f32 %v3124_v53, %v6845_v3  ;;  %v5268_v8 = vadd.f32 %v3576_v14, %v6849_v59  ;;  %v3126_v62 = vpop.f32.mrb[106].mxu0  ;;  %v3578_v49 = vpop.f32.mrb[106].mxu1  ;;  %4573 = vmatprep.mubr.bf16.mxu0 %v3774_v56  ;;  %4670 = vmatprep.mubr.bf16.mxu1 %v3776_v0 }
 0x4c8   :  { %v5237_v41 = vadd.f32 %v3126_v62, %v6837_v10  ;;  %v5269_v7 = vadd.f32 %v3578_v49, %v6841_v47  ;;  %v3128_v43 = vpop.f32.mrb[107].mxu0  ;;  %v3580_v60 = vpop.f32.mrb[107].mxu1  ;;  %4574 = vmatmul.mubr.bf16.gmra.mrb[164].mxu0 %v3773_v12  ;;  %4671 = vmatmul.mubr.bf16.gmra.mrb[164].mxu1 %v3775_v46  ;;  %v3669_v26 = vmax.f32 %v5235_v57, 0.0  ;;  %v3671_v11 = vmax.f32 %v5267_v1, 0.0 }
 0x4c9   :  { %v5238_v54 = vadd.f32 %v3128_v43, %v6845_v3  ;;  %v5270_v5 = vadd.f32 %v3580_v60, %v6849_v59  ;;  %v3670_v52 = vmax.f32 %v5236_v27, 0.0  ;;  %v3672_v19 = vmax.f32 %v5268_v8, 0.0 }
 0x4ca   :  { %v3677_v24 = vmax.f32 %v5237_v41, 0.0  ;;  %v3679_v21 = vmax.f32 %v5269_v7, 0.0 }
 0x4cb   :  { %v3678_v48 = vmax.f32 %v5238_v54, 0.0  ;;  %v3680_v33 = vmax.f32 %v5270_v5, 0.0 }
 0x4cc   :  { %v3781_v15 = vpack.c.bf16 %v3677_v24, %v3669_v26  ;;  %v3783_v32 = vpack.c.bf16 %v3679_v21, %v3671_v11 }
 0x4cd   :  { %v3782_v9 = vpack.c.bf16 %v3678_v48, %v3670_v52  ;;  %v3784_v45 = vpack.c.bf16 %v3680_v33, %v3672_v19  ;;  %v3132_v30 = vpop.f32.mrb[108].mxu0  ;;  %v3584_v16 = vpop.f32.mrb[108].mxu1 }
 0x4ce   :  { %v5239_v39 = vadd.f32 %v3132_v30, %v6837_v10  ;;  %v5271_v13 = vadd.f32 %v3584_v16, %v6841_v47  ;;  %v3134_v38 = vpop.f32.mrb[109].mxu0  ;;  %v3586_v35 = vpop.f32.mrb[109].mxu1 }
 0x4cf   :  { %v5240_v34 = vadd.f32 %v3134_v38, %v6845_v3  ;;  %v5272_v20 = vadd.f32 %v3586_v35, %v6849_v59  ;;  %v3136_v28 = vpop.f32.mrb[110].mxu0  ;;  %v3588_v17 = vpop.f32.mrb[110].mxu1  ;;  %4581 = vmatprep.mubr.bf16.mxu0 %v3782_v9  ;;  %4678 = vmatprep.mubr.bf16.mxu1 %v3784_v45 }
 0x4d0   :  { %v5241_v25 = vadd.f32 %v3136_v28, %v6837_v10  ;;  %v5273_v63 = vadd.f32 %v3588_v17, %v6841_v47  ;;  %v3138_v40 = vpop.f32.mrb[111].mxu0  ;;  %v3590_v6 = vpop.f32.mrb[111].mxu1  ;;  %4582 = vmatmul.mubr.bf16.gmra.mrb[168].mxu0 %v3781_v15  ;;  %4679 = vmatmul.mubr.bf16.gmra.mrb[168].mxu1 %v3783_v32  ;;  %v3685_v29 = vmax.f32 %v5239_v39, 0.0  ;;  %v3687_v58 = vmax.f32 %v5271_v13, 0.0 }
 0x4d1   :  { %v5242_v44 = vadd.f32 %v3138_v40, %v6845_v3  ;;  %v5274_v61 = vadd.f32 %v3590_v6, %v6849_v59  ;;  %v3686_v55 = vmax.f32 %v5240_v34, 0.0  ;;  %v3688_v50 = vmax.f32 %v5272_v20, 0.0 }
 0x4d2   :  { %v3693_v42 = vmax.f32 %v5241_v25, 0.0  ;;  %v3695_v37 = vmax.f32 %v5273_v63, 0.0 }
 0x4d3   :  { %v3694_v36 = vmax.f32 %v5242_v44, 0.0  ;;  %v3696_v4 = vmax.f32 %v5274_v61, 0.0 }
 0x4d4   :  { %v3789_v51 = vpack.c.bf16 %v3693_v42, %v3685_v29  ;;  %v3791_v22 = vpack.c.bf16 %v3695_v37, %v3687_v58 }
 0x4d5   :  { %v3790_v31 = vpack.c.bf16 %v3694_v36, %v3686_v55  ;;  %v3792_v23 = vpack.c.bf16 %v3696_v4, %v3688_v50  ;;  %v3142_v12 = vpop.f32.mrb[112].mxu0  ;;  %v3594_v46 = vpop.f32.mrb[112].mxu1 }
 0x4d6   :  { %v5243_v56 = vadd.f32 %v3142_v12, %v6837_v10  ;;  %v5275_v0 = vadd.f32 %v3594_v46, %v6841_v47  ;;  %v3144_v18 = vpop.f32.mrb[113].mxu0  ;;  %v3596_v2 = vpop.f32.mrb[113].mxu1 }
 0x4d7   :  { %v5244_v57 = vadd.f32 %v3144_v18, %v6845_v3  ;;  %v5276_v1 = vadd.f32 %v3596_v2, %v6849_v59  ;;  %v3146_v53 = vpop.f32.mrb[114].mxu0  ;;  %v3598_v14 = vpop.f32.mrb[114].mxu1  ;;  %4589 = vmatprep.mubr.bf16.mxu0 %v3790_v31  ;;  %4686 = vmatprep.mubr.bf16.mxu1 %v3792_v23 }
 0x4d8   :  { %v5245_v27 = vadd.f32 %v3146_v53, %v6837_v10  ;;  %v5277_v8 = vadd.f32 %v3598_v14, %v6841_v47  ;;  %v3148_v62 = vpop.f32.mrb[115].mxu0  ;;  %v3600_v49 = vpop.f32.mrb[115].mxu1  ;;  %4590 = vmatmul.mubr.bf16.gmra.mrb[172].mxu0 %v3789_v51  ;;  %4687 = vmatmul.mubr.bf16.gmra.mrb[172].mxu1 %v3791_v22  ;;  %v3701_v43 = vmax.f32 %v5243_v56, 0.0  ;;  %v3703_v60 = vmax.f32 %v5275_v0, 0.0 }
 0x4d9   :  { %v5246_v41 = vadd.f32 %v3148_v62, %v6845_v3  ;;  %v5278_v7 = vadd.f32 %v3600_v49, %v6849_v59  ;;  %v3702_v26 = vmax.f32 %v5244_v57, 0.0  ;;  %v3704_v11 = vmax.f32 %v5276_v1, 0.0 }
 0x4da   :  { %v3709_v54 = vmax.f32 %v5245_v27, 0.0  ;;  %v3711_v5 = vmax.f32 %v5277_v8, 0.0 }
 0x4db   :  { %v3710_v24 = vmax.f32 %v5246_v41, 0.0  ;;  %v3712_v21 = vmax.f32 %v5278_v7, 0.0 }
 0x4dc   :  { %v3797_v52 = vpack.c.bf16 %v3709_v54, %v3701_v43  ;;  %v3799_v19 = vpack.c.bf16 %v3711_v5, %v3703_v60 }
 0x4dd   :  { %v3798_v48 = vpack.c.bf16 %v3710_v24, %v3702_v26  ;;  %v3800_v33 = vpack.c.bf16 %v3712_v21, %v3704_v11  ;;  %v3152_v15 = vpop.f32.mrb[116].mxu0  ;;  %v3604_v32 = vpop.f32.mrb[116].mxu1 }
 0x4de   :  { %v5247_v9 = vadd.f32 %v3152_v15, %v6837_v10  ;;  %v5279_v45 = vadd.f32 %v3604_v32, %v6841_v47  ;;  %v3154_v30 = vpop.f32.mrb[117].mxu0  ;;  %v3606_v16 = vpop.f32.mrb[117].mxu1 }
 0x4df   :  { %v5248_v39 = vadd.f32 %v3154_v30, %v6845_v3  ;;  %v5280_v13 = vadd.f32 %v3606_v16, %v6849_v59  ;;  %v3156_v38 = vpop.f32.mrb[118].mxu0  ;;  %v3608_v35 = vpop.f32.mrb[118].mxu1  ;;  %4597 = vmatprep.mubr.bf16.mxu0 %v3798_v48  ;;  %4694 = vmatprep.mubr.bf16.mxu1 %v3800_v33 }
 0x4e0   :  { %v5249_v34 = vadd.f32 %v3156_v38, %v6837_v10  ;;  %v5281_v20 = vadd.f32 %v3608_v35, %v6841_v47  ;;  %v3158_v28 = vpop.f32.mrb[119].mxu0  ;;  %v3610_v17 = vpop.f32.mrb[119].mxu1  ;;  %4598 = vmatmul.mubr.bf16.gmra.mrb[176].mxu0 %v3797_v52  ;;  %4695 = vmatmul.mubr.bf16.gmra.mrb[176].mxu1 %v3799_v19  ;;  %v3717_v40 = vmax.f32 %v5247_v9, 0.0  ;;  %v3719_v6 = vmax.f32 %v5279_v45, 0.0 }
 0x4e1   :  { %v5250_v25 = vadd.f32 %v3158_v28, %v6845_v3  ;;  %v5282_v63 = vadd.f32 %v3610_v17, %v6849_v59  ;;  %v3718_v29 = vmax.f32 %v5248_v39, 0.0  ;;  %v3720_v58 = vmax.f32 %v5280_v13, 0.0 }
 0x4e2   :  { %v3725_v44 = vmax.f32 %v5249_v34, 0.0  ;;  %v3727_v61 = vmax.f32 %v5281_v20, 0.0 }
 0x4e3   :  { %v3726_v42 = vmax.f32 %v5250_v25, 0.0  ;;  %v3728_v37 = vmax.f32 %v5282_v63, 0.0 }
 0x4e4   :  { %v3805_v55 = vpack.c.bf16 %v3725_v44, %v3717_v40  ;;  %v3807_v50 = vpack.c.bf16 %v3727_v61, %v3719_v6 }
 0x4e5   :  { %v3806_v36 = vpack.c.bf16 %v3726_v42, %v3718_v29  ;;  %v3808_v4 = vpack.c.bf16 %v3728_v37, %v3720_v58  ;;  %v3162_v51 = vpop.f32.mrb[120].mxu0  ;;  %v3614_v22 = vpop.f32.mrb[120].mxu1 }
 0x4e6   :  { %v5251_v31 = vadd.f32 %v3162_v51, %v6837_v10  ;;  %v5283_v23 = vadd.f32 %v3614_v22, %v6841_v47  ;;  %v3164_v12 = vpop.f32.mrb[121].mxu0  ;;  %v3616_v46 = vpop.f32.mrb[121].mxu1 }
 0x4e7   :  { %v5252_v56 = vadd.f32 %v3164_v12, %v6845_v3  ;;  %v5284_v0 = vadd.f32 %v3616_v46, %v6849_v59  ;;  %v3166_v18 = vpop.f32.mrb[122].mxu0  ;;  %v3618_v2 = vpop.f32.mrb[122].mxu1  ;;  %4605 = vmatprep.mubr.bf16.mxu0 %v3806_v36  ;;  %4702 = vmatprep.mubr.bf16.mxu1 %v3808_v4 }
 0x4e8   :  { %v5253_v57 = vadd.f32 %v3166_v18, %v6837_v10  ;;  %v5285_v1 = vadd.f32 %v3618_v2, %v6841_v47  ;;  %v3168_v53 = vpop.f32.mrb[123].mxu0  ;;  %v3620_v14 = vpop.f32.mrb[123].mxu1  ;;  %4606 = vmatmul.mubr.bf16.gmra.mrb[180].mxu0 %v3805_v55  ;;  %4703 = vmatmul.mubr.bf16.gmra.mrb[180].mxu1 %v3807_v50  ;;  %v3733_v62 = vmax.f32 %v5251_v31, 0.0  ;;  %v3735_v49 = vmax.f32 %v5283_v23, 0.0 }
 0x4e9   :  { %v5254_v27 = vadd.f32 %v3168_v53, %v6845_v3  ;;  %v5286_v8 = vadd.f32 %v3620_v14, %v6849_v59  ;;  %v3734_v43 = vmax.f32 %v5252_v56, 0.0  ;;  %v3736_v60 = vmax.f32 %v5284_v0, 0.0 }
 0x4ea   :  { %v3741_v41 = vmax.f32 %v5253_v57, 0.0  ;;  %v3743_v7 = vmax.f32 %v5285_v1, 0.0 }
 0x4eb   :  { %v3742_v54 = vmax.f32 %v5254_v27, 0.0  ;;  %v3744_v5 = vmax.f32 %v5286_v8, 0.0 }
 0x4ec   :  { %v3813_v26 = vpack.c.bf16 %v3741_v41, %v3733_v62  ;;  %v3815_v11 = vpack.c.bf16 %v3743_v7, %v3735_v49 }
 0x4ed   :  { %v3814_v24 = vpack.c.bf16 %v3742_v54, %v3734_v43  ;;  %v3816_v21 = vpack.c.bf16 %v3744_v5, %v3736_v60  ;;  %v3172_v52 = vpop.f32.mrb[124].mxu0  ;;  %v3624_v19 = vpop.f32.mrb[124].mxu1 }
 0x4ee   :  { %v5255_v48 = vadd.f32 %v3172_v52, %v6837_v10  ;;  %v5287_v33 = vadd.f32 %v3624_v19, %v6841_v47  ;;  %v3174_v15 = vpop.f32.mrb[125].mxu0  ;;  %v3626_v32 = vpop.f32.mrb[125].mxu1 }
 0x4ef   :  { %v5256_v9 = vadd.f32 %v3174_v15, %v6845_v3  ;;  %v5288_v45 = vadd.f32 %v3626_v32, %v6849_v59  ;;  %v3176_v30 = vpop.f32.mrb[126].mxu0  ;;  %v3628_v16 = vpop.f32.mrb[126].mxu1  ;;  %4613 = vmatprep.mubr.bf16.mxu0 %v3814_v24  ;;  %4710 = vmatprep.mubr.bf16.mxu1 %v3816_v21 }
 0x4f0   :  { %v5257_v39 = vadd.f32 %v3176_v30, %v6837_v10  ;;  %v5289_v13 = vadd.f32 %v3628_v16, %v6841_v47  ;;  %v3178_v38 = vpop.f32.mrb[127].mxu0  ;;  %v3630_v35 = vpop.f32.mrb[127].mxu1  ;;  %4614 = vmatmul.mubr.bf16.gmra.mrb[184].mxu0 %v3813_v26  ;;  %4711 = vmatmul.mubr.bf16.gmra.mrb[184].mxu1 %v3815_v11  ;;  %v3749_v28 = vmax.f32 %v5255_v48, 0.0  ;;  %v3751_v17 = vmax.f32 %v5287_v33, 0.0 }
 0x4f1   :  { %v5258_v34 = vadd.f32 %v3178_v38, %v6845_v3  ;;  %v5290_v20 = vadd.f32 %v3630_v35, %v6849_v59  ;;  %v3750_v40 = vmax.f32 %v5256_v9, 0.0  ;;  %v3752_v6 = vmax.f32 %v5288_v45, 0.0 }
 0x4f2   :  { %v3757_v25 = vmax.f32 %v5257_v39, 0.0  ;;  %v3759_v63 = vmax.f32 %v5289_v13, 0.0  ;;  %v6918_v3 = vstv %s7002_s6  ;;  %s5933_s6 = smov [#allocation14]  }
 0x4f3   :  { %v3758_v44 = vmax.f32 %v5258_v34, 0.0  ;;  %v3760_v61 = vmax.f32 %v5290_v20, 0.0  ;;  %s4748_s27 = sshll.u32 %s5933_s6, 4  ;;  %s4749_s27 = int_to_ptr.vmem [resolvable:$true] %s4748_s27 }
 0x4f4   :  { %v3821_v29 = vpack.c.bf16 %v3757_v25, %v3749_v28  ;;  %v3823_v10 = vpack.c.bf16 %v3759_v63, %v3751_v17  ;;  %s5881_s28 = scalar_lea.vmem %s4749_s27, 2048  ;;  %p5886_p13 = scmp.lt.s32.totalorder %s4749_s27, %s4749_s27 }
 0x4f5   :  { %v3822_v58 = vpack.c.bf16 %v3758_v44, %v3750_v40  ;;  %v3824_v47 = vpack.c.bf16 %v3760_v61, %v3752_v6  ;;  %v4923_v42 = vpop.f32.mrb[128].mxu0  ;;  %v4987_v37 = vpop.f32.mrb[128].mxu1  ;;  %p5882_p12 = scmp.ne.s32.totalorder %s4749_s27, %s5881_s28  ;;  %p5887_p0 = scmp.lt.s32.totalorder %s5881_s28, %s5881_s28 }
 0x4f6   :  { %v4924_v59 = vpop.f32.mrb[129].mxu0  ;;  %v4988_v55 = vpop.f32.mrb[129].mxu1 }
 0x4f7   :  { %v4925_v50 = vadd.f32 %v4924_v59, %v4923_v42  ;;  %v4989_v36 = vadd.f32 %v4988_v55, %v4987_v37  ;;  %v4926_v4 = vpop.f32.mrb[130].mxu0  ;;  %v4990_v51 = vpop.f32.mrb[130].mxu1  ;;  %4621 = vmatprep.mubr.bf16.mxu0 %v3822_v58  ;;  %4718 = vmatprep.mubr.bf16.mxu1 %v3824_v47  ;;  %p5888_p1 = por %p5887_p0, %p5886_p13 }
 0x4f8   :  { %v4927_v22 = vpop.f32.mrb[131].mxu0  ;;  %v4991_v31 = vpop.f32.mrb[131].mxu1  ;;  %4622 = vmatmul.mubr.bf16.gmra.mrb[188].mxu0 %v3821_v29  ;;  %4719 = vmatmul.mubr.bf16.gmra.mrb[188].mxu1 %v3823_v10 }
 0x4f9   :  { %v4374_v23 = vadd.f32 %v4925_v50, %v6918_v3  ;;  %v4928_v12 = vadd.f32 %v4927_v22, %v4926_v4  ;;  %v4992_v46 = vadd.f32 %v4991_v31, %v4990_v51  ;;  %p5889_p2 = pnand %p5888_p1, %p5882_p12 }
 0x4fb   :  { %v6921_v56 = vadd.f32 %v4989_v36, %v4374_v23  ;;  %v4377_v0 = vadd.f32 %v4928_v12, %v6918_v3 }
 0x4fd   :  { %v6924_v18 = vadd.f32 %v4992_v46, %v4377_v0  ;;  %v4929_v2 = vpop.f32.mrb[132].mxu0  ;;  %v4993_v57 = vpop.f32.mrb[132].mxu1 }
 0x4fe   :  { %v4930_v1 = vpop.f32.mrb[133].mxu0  ;;  %v4994_v53 = vpop.f32.mrb[133].mxu1 }
 0x4ff   :  { %v4931_v14 = vadd.f32 %v4930_v1, %v4929_v2  ;;  %v4995_v27 = vadd.f32 %v4994_v53, %v4993_v57  ;;  %v4932_v8 = vpop.f32.mrb[134].mxu0  ;;  %v4996_v62 = vpop.f32.mrb[134].mxu1 }
 0x500   :  { %v4933_v49 = vpop.f32.mrb[135].mxu0  ;;  %v4997_v41 = vpop.f32.mrb[135].mxu1 }
 0x501   :  { %v4382_v7 = vadd.f32 %v4931_v14, %v6918_v3  ;;  %v4934_v43 = vadd.f32 %v4933_v49, %v4932_v8  ;;  %v4998_v60 = vadd.f32 %v4997_v41, %v4996_v62 }
 0x503   :  { %v6927_v54 = vadd.f32 %v4995_v27, %v4382_v7  ;;  %v4385_v5 = vadd.f32 %v4934_v43, %v6918_v3 }
 0x505   :  { %v6930_v26 = vadd.f32 %v4998_v60, %v4385_v5  ;;  %v4935_v11 = vpop.f32.mrb[136].mxu0  ;;  %v4999_v24 = vpop.f32.mrb[136].mxu1 }
 0x506   :  { %v4936_v21 = vpop.f32.mrb[137].mxu0  ;;  %v5000_v52 = vpop.f32.mrb[137].mxu1 }
 0x507   :  { %v4937_v19 = vadd.f32 %v4936_v21, %v4935_v11  ;;  %v5001_v48 = vadd.f32 %v5000_v52, %v4999_v24  ;;  %v4938_v33 = vpop.f32.mrb[138].mxu0  ;;  %v5002_v15 = vpop.f32.mrb[138].mxu1 }
 0x508   :  { %v4939_v32 = vpop.f32.mrb[139].mxu0  ;;  %v5003_v9 = vpop.f32.mrb[139].mxu1 }
 0x509   :  { %v4390_v45 = vadd.f32 %v4937_v19, %v6918_v3  ;;  %v4940_v30 = vadd.f32 %v4939_v32, %v4938_v33  ;;  %v5004_v16 = vadd.f32 %v5003_v9, %v5002_v15 }
 0x50b   :  { %v6933_v39 = vadd.f32 %v5001_v48, %v4390_v45  ;;  %v4393_v13 = vadd.f32 %v4940_v30, %v6918_v3 }
 0x50d   :  { %v6936_v38 = vadd.f32 %v5004_v16, %v4393_v13  ;;  %v4941_v35 = vpop.f32.mrb[140].mxu0  ;;  %v5005_v34 = vpop.f32.mrb[140].mxu1 }
 0x50e   :  { %v4942_v20 = vpop.f32.mrb[141].mxu0  ;;  %v5006_v28 = vpop.f32.mrb[141].mxu1 }
 0x50f   :  { %v4943_v17 = vadd.f32 %v4942_v20, %v4941_v35  ;;  %v5007_v25 = vadd.f32 %v5006_v28, %v5005_v34  ;;  %v4944_v63 = vpop.f32.mrb[142].mxu0  ;;  %v5008_v40 = vpop.f32.mrb[142].mxu1 }
 0x510   :  { %v4945_v6 = vpop.f32.mrb[143].mxu0  ;;  %v5009_v44 = vpop.f32.mrb[143].mxu1 }
 0x511   :  { %v4398_v61 = vadd.f32 %v4943_v17, %v6918_v3  ;;  %v4946_v29 = vadd.f32 %v4945_v6, %v4944_v63  ;;  %v5010_v10 = vadd.f32 %v5009_v44, %v5008_v40 }
 0x513   :  { %v6939_v58 = vadd.f32 %v5007_v25, %v4398_v61  ;;  %v4401_v47 = vadd.f32 %v4946_v29, %v6918_v3 }
 0x515   :  { %v6942_v42 = vadd.f32 %v5010_v10, %v4401_v47  ;;  %v4947_v37 = vpop.f32.mrb[144].mxu0  ;;  %v5011_v59 = vpop.f32.mrb[144].mxu1 }
 0x516   :  { %v4948_v55 = vpop.f32.mrb[145].mxu0  ;;  %v5012_v50 = vpop.f32.mrb[145].mxu1 }
 0x517   :  { %v4949_v36 = vadd.f32 %v4948_v55, %v4947_v37  ;;  %v5013_v4 = vadd.f32 %v5012_v50, %v5011_v59  ;;  %v4950_v51 = vpop.f32.mrb[146].mxu0  ;;  %v5014_v22 = vpop.f32.mrb[146].mxu1 }
 0x518   :  { %v4951_v31 = vpop.f32.mrb[147].mxu0  ;;  %v5015_v23 = vpop.f32.mrb[147].mxu1 }
 0x519   :  { %v4406_v12 = vadd.f32 %v4949_v36, %v6918_v3  ;;  %v4952_v46 = vadd.f32 %v4951_v31, %v4950_v51  ;;  %v5016_v0 = vadd.f32 %v5015_v23, %v5014_v22 }
 0x51b   :  { %v6945_v2 = vadd.f32 %v5013_v4, %v4406_v12  ;;  %v4409_v57 = vadd.f32 %v4952_v46, %v6918_v3 }
 0x51d   :  { %v6948_v1 = vadd.f32 %v5016_v0, %v4409_v57  ;;  %v4953_v53 = vpop.f32.mrb[148].mxu0  ;;  %v5017_v14 = vpop.f32.mrb[148].mxu1 }
 0x51e   :  { %v4954_v27 = vpop.f32.mrb[149].mxu0  ;;  %v5018_v8 = vpop.f32.mrb[149].mxu1 }
 0x51f   :  { %v4955_v62 = vadd.f32 %v4954_v27, %v4953_v53  ;;  %v5019_v49 = vadd.f32 %v5018_v8, %v5017_v14  ;;  %v4956_v41 = vpop.f32.mrb[150].mxu0  ;;  %v5020_v7 = vpop.f32.mrb[150].mxu1 }
 0x520   :  { %v4957_v43 = vpop.f32.mrb[151].mxu0  ;;  %v5021_v60 = vpop.f32.mrb[151].mxu1 }
 0x521   :  { %v4414_v5 = vadd.f32 %v4955_v62, %v6918_v3  ;;  %v4958_v11 = vadd.f32 %v4957_v43, %v4956_v41  ;;  %v5022_v24 = vadd.f32 %v5021_v60, %v5020_v7 }
 0x523   :  { %v6951_v21 = vadd.f32 %v5019_v49, %v4414_v5  ;;  %v4417_v52 = vadd.f32 %v4958_v11, %v6918_v3 }
 0x525   :  { %v6954_v19 = vadd.f32 %v5022_v24, %v4417_v52  ;;  %v4959_v48 = vpop.f32.mrb[152].mxu0  ;;  %v5023_v33 = vpop.f32.mrb[152].mxu1 }
 0x526   :  { %v4960_v15 = vpop.f32.mrb[153].mxu0  ;;  %v5024_v32 = vpop.f32.mrb[153].mxu1 }
 0x527   :  { %v4961_v9 = vadd.f32 %v4960_v15, %v4959_v48  ;;  %v5025_v45 = vadd.f32 %v5024_v32, %v5023_v33  ;;  %v4962_v30 = vpop.f32.mrb[154].mxu0  ;;  %v5026_v16 = vpop.f32.mrb[154].mxu1 }
 0x528   :  { %v4963_v13 = vpop.f32.mrb[155].mxu0  ;;  %v5027_v35 = vpop.f32.mrb[155].mxu1 }
 0x529   :  { %v4422_v34 = vadd.f32 %v4961_v9, %v6918_v3  ;;  %v4964_v20 = vadd.f32 %v4963_v13, %v4962_v30  ;;  %v5028_v28 = vadd.f32 %v5027_v35, %v5026_v16 }
 0x52b   :  { %v6957_v17 = vadd.f32 %v5025_v45, %v4422_v34  ;;  %v4425_v25 = vadd.f32 %v4964_v20, %v6918_v3 }
 0x52d   :  { %v6960_v63 = vadd.f32 %v5028_v28, %v4425_v25  ;;  %v4965_v40 = vpop.f32.mrb[156].mxu0  ;;  %v5029_v6 = vpop.f32.mrb[156].mxu1 }
 0x52e   :  { %v4966_v44 = vpop.f32.mrb[157].mxu0  ;;  %v5030_v61 = vpop.f32.mrb[157].mxu1 }
 0x52f   :  { %v4967_v29 = vadd.f32 %v4966_v44, %v4965_v40  ;;  %v5031_v10 = vadd.f32 %v5030_v61, %v5029_v6  ;;  %v4968_v47 = vpop.f32.mrb[158].mxu0  ;;  %v5032_v37 = vpop.f32.mrb[158].mxu1 }
 0x530   :  { %v4969_v59 = vpop.f32.mrb[159].mxu0  ;;  %v5033_v55 = vpop.f32.mrb[159].mxu1 }
 0x531   :  { %v4430_v50 = vadd.f32 %v4967_v29, %v6918_v3  ;;  %v4970_v36 = vadd.f32 %v4969_v59, %v4968_v47  ;;  %v5034_v4 = vadd.f32 %v5033_v55, %v5032_v37 }
 0x533   :  { %v6963_v51 = vadd.f32 %v5031_v10, %v4430_v50  ;;  %v4433_v22 = vadd.f32 %v4970_v36, %v6918_v3 }
 0x535   :  { %v6966_v31 = vadd.f32 %v5034_v4, %v4433_v22 }
 0x593   :  { %v5051_v23 = vpop.f32.mrb[160].mxu0  ;;  %v5115_v12 = vpop.f32.mrb[160].mxu1 }
 0x594   :  { %v5052_v46 = vpop.f32.mrb[161].mxu0  ;;  %v5116_v0 = vpop.f32.mrb[161].mxu1 }
 0x595   :  { %v5053_v57 = vadd.f32 %v5052_v46, %v5051_v23  ;;  %v5117_v53 = vadd.f32 %v5116_v0, %v5115_v12  ;;  %v5054_v14 = vpop.f32.mrb[162].mxu0  ;;  %v5118_v27 = vpop.f32.mrb[162].mxu1 }
 0x596   :  { %v5055_v8 = vpop.f32.mrb[163].mxu0  ;;  %v5119_v62 = vpop.f32.mrb[163].mxu1 }
 0x597   :  { %v4568_v49 = vadd.f32 %v5053_v57, %v6921_v56  ;;  %v5056_v41 = vadd.f32 %v5055_v8, %v5054_v14  ;;  %v5120_v7 = vadd.f32 %v5119_v62, %v5118_v27 }
 0x599   :  { %v4665_v43 = vadd.f32 %v5117_v53, %v4568_v49  ;;  %v4571_v60 = vadd.f32 %v5056_v41, %v6924_v18 }
 0x59b   :  { %4727 = vst [vmem:[#allocation14] sm:$0xff] %v4665_v43  ;;  %v4668_v3 = vadd.f32 %v5120_v7, %v4571_v60  ;;  %v5057_v5 = vpop.f32.mrb[164].mxu0  ;;  %v5121_v11 = vpop.f32.mrb[164].mxu1 }
 0x59c   :  { %v5058_v24 = vpop.f32.mrb[165].mxu0  ;;  %v5122_v52 = vpop.f32.mrb[165].mxu1 }
 0x59d   :  { %4728 = vst [vmem:[#allocation14 + $0x8] sm:$0xff] %v4668_v3  ;;  %v5059_v48 = vadd.f32 %v5058_v24, %v5057_v5  ;;  %v5123_v33 = vadd.f32 %v5122_v52, %v5121_v11  ;;  %v5060_v15 = vpop.f32.mrb[166].mxu0  ;;  %v5124_v32 = vpop.f32.mrb[166].mxu1 }
 0x59e   :  { %v5061_v9 = vpop.f32.mrb[167].mxu0  ;;  %v5125_v45 = vpop.f32.mrb[167].mxu1 }
 0x59f   :  { %v4576_v56 = vadd.f32 %v5059_v48, %v6927_v54  ;;  %v5062_v30 = vadd.f32 %v5061_v9, %v5060_v15  ;;  %v5126_v16 = vadd.f32 %v5125_v45, %v5124_v32 }
 0x5a1   :  { %v4673_v13 = vadd.f32 %v5123_v33, %v4576_v56  ;;  %v4579_v18 = vadd.f32 %v5062_v30, %v6930_v26 }
 0x5a3   :  { %4729 = vst [vmem:[#allocation14 + $0x10] sm:$0xff] %v4673_v13  ;;  %v4676_v35 = vadd.f32 %v5126_v16, %v4579_v18  ;;  %v5063_v34 = vpop.f32.mrb[168].mxu0  ;;  %v5127_v20 = vpop.f32.mrb[168].mxu1 }
 0x5a4   :  { %v5064_v28 = vpop.f32.mrb[169].mxu0  ;;  %v5128_v25 = vpop.f32.mrb[169].mxu1 }
 0x5a5   :  { %4730 = vst [vmem:[#allocation14 + $0x18] sm:$0xff] %v4676_v35  ;;  %v5065_v40 = vadd.f32 %v5064_v28, %v5063_v34  ;;  %v5129_v6 = vadd.f32 %v5128_v25, %v5127_v20  ;;  %v5066_v44 = vpop.f32.mrb[170].mxu0  ;;  %v5130_v61 = vpop.f32.mrb[170].mxu1 }
 0x5a6   :  { %v5067_v29 = vpop.f32.mrb[171].mxu0  ;;  %v5131_v10 = vpop.f32.mrb[171].mxu1 }
 0x5a7   :  { %v4584_v54 = vadd.f32 %v5065_v40, %v6933_v39  ;;  %v5068_v47 = vadd.f32 %v5067_v29, %v5066_v44  ;;  %v5132_v37 = vadd.f32 %v5131_v10, %v5130_v61 }
 0x5a9   :  { %v4681_v59 = vadd.f32 %v5129_v6, %v4584_v54  ;;  %v4587_v26 = vadd.f32 %v5068_v47, %v6936_v38 }
 0x5ab   :  { %4731 = vst [vmem:[#allocation14 + $0x20] sm:$0xff] %v4681_v59  ;;  %v4684_v55 = vadd.f32 %v5132_v37, %v4587_v26  ;;  %v5069_v50 = vpop.f32.mrb[172].mxu0  ;;  %v5133_v36 = vpop.f32.mrb[172].mxu1 }
 0x5ac   :  { %v5070_v4 = vpop.f32.mrb[173].mxu0  ;;  %v5134_v22 = vpop.f32.mrb[173].mxu1 }
 0x5ad   :  { %4732 = vst [vmem:[#allocation14 + $0x28] sm:$0xff] %v4684_v55  ;;  %v5071_v23 = vadd.f32 %v5070_v4, %v5069_v50  ;;  %v5135_v12 = vadd.f32 %v5134_v22, %v5133_v36  ;;  %v5072_v46 = vpop.f32.mrb[174].mxu0  ;;  %v5136_v0 = vpop.f32.mrb[174].mxu1 }
 0x5ae   :  { %v5073_v57 = vpop.f32.mrb[175].mxu0  ;;  %v5137_v53 = vpop.f32.mrb[175].mxu1 }
 0x5af   :  { %v4592_v39 = vadd.f32 %v5071_v23, %v6939_v58  ;;  %v5074_v14 = vadd.f32 %v5073_v57, %v5072_v46  ;;  %v5138_v27 = vadd.f32 %v5137_v53, %v5136_v0 }
 0x5b1   :  { %v4689_v8 = vadd.f32 %v5135_v12, %v4592_v39  ;;  %v4595_v38 = vadd.f32 %v5074_v14, %v6942_v42 }
 0x5b3   :  { %4733 = vst [vmem:[#allocation14 + $0x30] sm:$0xff] %v4689_v8  ;;  %v4692_v62 = vadd.f32 %v5138_v27, %v4595_v38  ;;  %v5075_v49 = vpop.f32.mrb[176].mxu0  ;;  %v5139_v41 = vpop.f32.mrb[176].mxu1 }
 0x5b4   :  { %v5076_v7 = vpop.f32.mrb[177].mxu0  ;;  %v5140_v43 = vpop.f32.mrb[177].mxu1 }
 0x5b5   :  { %4734 = vst [vmem:[#allocation14 + $0x38] sm:$0xff] %v4692_v62  ;;  %v5077_v60 = vadd.f32 %v5076_v7, %v5075_v49  ;;  %v5141_v3 = vadd.f32 %v5140_v43, %v5139_v41  ;;  %v5078_v5 = vpop.f32.mrb[178].mxu0  ;;  %v5142_v11 = vpop.f32.mrb[178].mxu1 }
 0x5b6   :  { %v5079_v24 = vpop.f32.mrb[179].mxu0  ;;  %v5143_v52 = vpop.f32.mrb[179].mxu1 }
 0x5b7   :  { %v4600_v58 = vadd.f32 %v5077_v60, %v6945_v2  ;;  %v5080_v48 = vadd.f32 %v5079_v24, %v5078_v5  ;;  %v5144_v33 = vadd.f32 %v5143_v52, %v5142_v11 }
 0x5b9   :  { %v4697_v15 = vadd.f32 %v5141_v3, %v4600_v58  ;;  %v4603_v42 = vadd.f32 %v5080_v48, %v6948_v1 }
 0x5bb   :  { %4735 = vst [vmem:[#allocation14 + $0x40] sm:$0xff] %v4697_v15  ;;  %v4700_v32 = vadd.f32 %v5144_v33, %v4603_v42  ;;  %v5081_v9 = vpop.f32.mrb[180].mxu0  ;;  %v5145_v45 = vpop.f32.mrb[180].mxu1 }
 0x5bc   :  { %v5082_v56 = vpop.f32.mrb[181].mxu0  ;;  %v5146_v30 = vpop.f32.mrb[181].mxu1 }
 0x5bd   :  { %4736 = vst [vmem:[#allocation14 + $0x48] sm:$0xff] %v4700_v32  ;;  %v5083_v16 = vadd.f32 %v5082_v56, %v5081_v9  ;;  %v5147_v13 = vadd.f32 %v5146_v30, %v5145_v45  ;;  %v5084_v18 = vpop.f32.mrb[182].mxu0  ;;  %v5148_v35 = vpop.f32.mrb[182].mxu1 }
 0x5be   :  { %v5085_v34 = vpop.f32.mrb[183].mxu0  ;;  %v5149_v20 = vpop.f32.mrb[183].mxu1 }
 0x5bf   :  { %v4608_v2 = vadd.f32 %v5083_v16, %v6951_v21  ;;  %v5086_v28 = vadd.f32 %v5085_v34, %v5084_v18  ;;  %v5150_v25 = vadd.f32 %v5149_v20, %v5148_v35 }
 0x5c1   :  { %v4705_v40 = vadd.f32 %v5147_v13, %v4608_v2  ;;  %v4611_v1 = vadd.f32 %v5086_v28, %v6954_v19 }
 0x5c3   :  { %4737 = vst [vmem:[#allocation14 + $0x50] sm:$0xff] %v4705_v40  ;;  %v4708_v6 = vadd.f32 %v5150_v25, %v4611_v1  ;;  %v5087_v44 = vpop.f32.mrb[184].mxu0  ;;  %v5151_v61 = vpop.f32.mrb[184].mxu1 }
 0x5c4   :  { %v5088_v29 = vpop.f32.mrb[185].mxu0  ;;  %v5152_v10 = vpop.f32.mrb[185].mxu1 }
 0x5c5   :  { %4738 = vst [vmem:[#allocation14 + $0x58] sm:$0xff] %v4708_v6  ;;  %v5089_v54 = vadd.f32 %v5088_v29, %v5087_v44  ;;  %v5153_v47 = vadd.f32 %v5152_v10, %v5151_v61  ;;  %v5090_v37 = vpop.f32.mrb[186].mxu0  ;;  %v5154_v59 = vpop.f32.mrb[186].mxu1 }
 0x5c6   :  { %v5091_v26 = vpop.f32.mrb[187].mxu0  ;;  %v5155_v55 = vpop.f32.mrb[187].mxu1 }
 0x5c7   :  { %v4616_v21 = vadd.f32 %v5089_v54, %v6957_v17  ;;  %v5092_v50 = vadd.f32 %v5091_v26, %v5090_v37  ;;  %v5156_v36 = vadd.f32 %v5155_v55, %v5154_v59 }
 0x5c9   :  { %v4713_v4 = vadd.f32 %v5153_v47, %v4616_v21  ;;  %v4619_v19 = vadd.f32 %v5092_v50, %v6960_v63 }
 0x5cb   :  { %4739 = vst [vmem:[#allocation14 + $0x60] sm:$0xff] %v4713_v4  ;;  %v4716_v22 = vadd.f32 %v5156_v36, %v4619_v19  ;;  %v5093_v23 = vpop.f32.mrb[188].mxu0  ;;  %v5157_v12 = vpop.f32.mrb[188].mxu1 }
 0x5cc   :  { %v5094_v46 = vpop.f32.mrb[189].mxu0  ;;  %v5158_v0 = vpop.f32.mrb[189].mxu1 }
 0x5cd   :  { %4740 = vst [vmem:[#allocation14 + $0x68] sm:$0xff] %v4716_v22  ;;  %v5095_v57 = vadd.f32 %v5094_v46, %v5093_v23  ;;  %v5159_v53 = vadd.f32 %v5158_v0, %v5157_v12  ;;  %v5096_v39 = vpop.f32.mrb[190].mxu0  ;;  %v5160_v14 = vpop.f32.mrb[190].mxu1 }
 0x5ce   :  { %v5097_v27 = vpop.f32.mrb[191].mxu0  ;;  %v5161_v8 = vpop.f32.mrb[191].mxu1 }
 0x5cf   :  { %v4624_v17 = vadd.f32 %v5095_v57, %v6963_v51  ;;  %v5098_v38 = vadd.f32 %v5097_v27, %v5096_v39  ;;  %v5162_v62 = vadd.f32 %v5161_v8, %v5160_v14 }
 0x5d1   :  { %v4721_v63 = vadd.f32 %v5159_v53, %v4624_v17  ;;  %v4627_v49 = vadd.f32 %v5098_v38, %v6966_v31 }
 0x5d3   :  { %4741 = vst [vmem:[#allocation14 + $0x70] sm:$0xff] %v4721_v63  ;;  %v4724_v41 = vadd.f32 %v5162_v62, %v4627_v49 }
 0x5d5   :  { %4742 = vst [vmem:[#allocation14 + $0x78] sm:$0xff] %v4724_v41 }
 0x5d6   :  { %5892 = shalt.err (!%p5889_p2)
}
 0x5d7   :  { %s5893_s8 = scalar_lea.hbm %s7003_s7, 2048 }
 0x5d8   :  { %p5894_p3 = scmp.ne.s32.totalorder %s7003_s7, %s5893_s8  ;;  %p5897_p4 = scmp.lt.u32.totalorder %s5893_s8, %s7003_s7 }
 0x5da   :  { %p5899_p5 = pnand %p5897_p4, %p5894_p3 }
 0x5dc   :  { %5902 = shalt.err (!%p5899_p5)
}
 0x5dd   :  { %s5934_s2 = smov 128   ;;  %s5935_s14 = smov 8  }
 0x5de   :  { %4754 = dma.vmem_to_hbm [thread:$0]  %s4749_s27, 2048, %s7003_s7, [#allocation7], %s5934_s2, %s5934_s2, %s5935_s14  }
 0x5df   :  { %5911 = dma.done.wait [#allocation7], 2048  }
 0x5e0   :  { %5912 = vsyncadd [#allocation7], 4294965248 }
 0x5e1   :  { %4758 = vsyncpa [#allocation6], 1 }
 0x5e2   :  { %4759 = vsyncpa [#allocation9], 1 }
 0x5e3   :  { %4760 = vsyncpa [#allocation12], 1 }
 0x5e4   :  { %4761 = vsyncpa [#allocation7], 1 }
 0x5e5   :  { %4762 = vsyncmov [#allocation3] }
 0x5e8   :  { %s4763_s17 = vpop.sfrf %4762 }
 0x5e9   :  { %p4906_p6 = scmp.ne.s32.totalorder %s4763_s17, 0 }
 0x5eb   :  { %4767 = shalt.err (%p4906_p6)  }

</bundles_post_ra>
